<compile_context>
chip_gen: v6e
topology: v6e:2x2x1
jax: 0.10.0
libtpu: 0.0.40
codegen_flags: <defaults>
</compile_context>

<pallas_src>
import jax
import jax.numpy as jnp
from jax.experimental import pallas as pl
from jax.experimental.pallas import tpu as pltpu

K = 10        # number of prototype h_vectors
NF = 128      # num_factors (final MLP input is 4*128)
REP = 768     # pretrained representation dim
H1 = 512      # 400-wide hidden layer zero-padded to 512
TEMP = 0.1


def _relu(x):
    return jnp.maximum(x, 0.0)


def _softmax_lastdim(x):
    m = jnp.max(x, axis=-1, keepdims=True)
    e = jnp.exp(x - m)
    return e / jnp.sum(e, axis=-1, keepdims=True)


def _round_up(n, m):
    return ((n + m - 1) // m) * m


def _pad_rows(x, n):
    if x.shape[0] == n:
        return x
    pad = jnp.zeros((n - x.shape[0],) + x.shape[1:], x.dtype)
    return jnp.concatenate([x, pad], axis=0)


def _pad_cols(x, n):
    if x.shape[1] == n:
        return x
    pad = jnp.zeros((x.shape[0], n - x.shape[1]), x.dtype)
    return jnp.concatenate([x, pad], axis=1)


def rmcl_kernel(
    uc_ref, ic_ref, ui_ref, h_ref,
    w1a_ref, b1a_ref, w1b_ref, b1b_ref, w2h_ref, b2_ref,
    w3a_ref, b3a_ref, w3b_ref, b3b_ref, w4h_ref, b4_ref,
    wm1ab_ref, wm1cd_ref, bm1_ref,
    wm2_ref, bm2_ref, wm3_ref, bm3_ref, wm4_ref, bm4_ref,
    out_ref,
):
    f32 = jnp.float32
    bf16 = jnp.bfloat16

    h_bf = h_ref[...]  # (K, 128) bf16 prototypes

    def branch(x_ref, wa_ref, ba_ref, wb_ref, bb_ref, wfused_ref, bcoe_ref):
        # mlp: 768 -> 512 (zero-padded 400) -> 128 ; dropout = identity here.
        y = _relu(jnp.dot(x_ref[...], wa_ref[...],
                          preferred_element_type=f32) + ba_ref[...])        # (TB,512) f32
        c = _relu(jnp.dot(y.astype(bf16), wb_ref[...],
                          preferred_element_type=f32) + bb_ref[...])        # (TB,128) f32

        # fused (128, 2K) weight: lanes [0:K] = coef logits, [K:2K] = c @ h^T
        fused = jnp.dot(c.astype(bf16), wfused_ref[...],
                        preferred_element_type=f32)                         # (TB,2K) f32
        coe = _softmax_lastdim(fused[:, :K] + bcoe_ref[...])                # (TB,K)

        # contrastive term (softmax + log(p + 1e-10), matching the reference)
        s = fused[:, K:] * (1.0 / TEMP)
        p = _softmax_lastdim(s)
        per_ex = jnp.sum(coe * jnp.log(p + 1e-10), axis=-1, keepdims=True)  # (TB,1)

        # weighted prototype mixture (K=10 contraction, explicit bf16 operands,
        # f32 accumulation -> single MXU pass, generation-independent)
        wh = jnp.dot(coe.astype(bf16), h_bf, preferred_element_type=f32)    # (TB,128)

        # mean cosine similarity (eps = 1e-8); rsqrt keeps the sqrt/divide on
        # the EUP slot instead of the VALU.
        num = jnp.sum(c * wh, axis=-1, keepdims=True)
        na2 = jnp.sum(c * c, axis=-1, keepdims=True)
        nb2 = jnp.sum(wh * wh, axis=-1, keepdims=True)
        cos = num * jax.lax.rsqrt(jnp.maximum(na2 * nb2, 1e-16))            # (TB,1)
        return wh, cos, per_ex

    wh_u, cos_u, per_u = branch(uc_ref, w1a_ref, b1a_ref, w1b_ref, b1b_ref,
                                w2h_ref, b2_ref)
    wh_i, cos_i, per_i = branch(ic_ref, w3a_ref, b3a_ref, w3b_ref, b3b_ref,
                                w4h_ref, b4_ref)

    # prediction head 512 -> 384 -> 256 -> 128 -> 1 as two K=256 contractions
    # (no (TB,512) concat / relayout; fills the 256-deep v6e/v7x MXU).
    hh = jnp.concatenate([wh_u * wh_i, wh_u - wh_i], axis=-1).astype(bf16)  # (TB,256)
    y = (jnp.dot(hh, wm1ab_ref[...], preferred_element_type=f32)
         + jnp.dot(ui_ref[...], wm1cd_ref[...], preferred_element_type=f32)
         + bm1_ref[...])
    y = _relu(y)
    y = _relu(jnp.dot(y.astype(bf16), wm2_ref[...],
                      preferred_element_type=f32) + bm2_ref[...])
    y = _relu(jnp.dot(y.astype(bf16), wm3_ref[...],
                      preferred_element_type=f32) + bm3_ref[...])
    pred = jnp.dot(y.astype(bf16), wm4_ref[...],
                   preferred_element_type=f32) + bm4_ref[...]               # (TB,1)

    # single (TB,8) output: [cos_u, cos_i, per_u, per_i, pred, 0, 0, 0]
    # (padded batch rows produce finite junk and are sliced off in the wrapper)
    z = jnp.zeros_like(cos_u)
    out_ref[...] = jnp.concatenate(
        [cos_u, cos_i, per_u, per_i, pred, z, z, z], axis=-1)


def _tpu_vmem_capacity_bytes():
    try:
        return int(pltpu.get_tpu_info().vmem_capacity_bytes)
    except Exception:
        return 64 << 20  # conservative (v7x-sized VMEM)


def _select_tiling(batch, tile_b):
    vmem = _tpu_vmem_capacity_bytes()
    if vmem >= (100 << 20):          # v5e / v6e: 128 MiB physical VMEM
        max_tb, vmem_limit = 1024, 80 << 20
    else:                            # v7x: 64 MiB physical VMEM
        max_tb, vmem_limit = 512, 40 << 20
    tb = max_tb if tile_b is None else min(int(tile_b), max_tb)
    b16 = _round_up(batch, 16)       # bf16 inputs -> multiples of 16 rows
    tb = min(tb, b16)
    if b16 > 16 and tb >= b16:
        # keep >= 2 grid steps so the ("parallel",) batch axis can be sharded
        # across both v7x TensorCores
        tb = _round_up((b16 + 1) // 2, 16)
    tb = max(16, (tb // 16) * 16)
    return tb, vmem_limit


def _const_spec(arr):
    shp = arr.shape
    idx = lambda b, _n=len(shp): (0,) * _n
    # grid-invariant weights/biases: single-buffered, stay resident in VMEM.
    try:
        return pl.BlockSpec(shp, idx, pipeline_mode=pl.Buffered(1))
    except Exception:
        return pl.BlockSpec(shp, idx)


def rmcl_forward(params, user_idx, item_idx, tile_b=None):
    f32 = jnp.float32
    bf16 = jnp.bfloat16

    # Embedding gathers = plain-JAX glue; cast MXU operands to bf16.
    uc = params["user_c"][user_idx].astype(bf16)              # (B, 768)
    ic = params["item_c"][item_idx].astype(bf16)              # (B, 768)
    ui_vec = jnp.concatenate(
        [params["user_id_vec"][user_idx],
         params["item_id_vec"][item_idx]], axis=1).astype(bf16)  # (B, 256)

    h = params["h_vectors"].astype(f32)                       # (K, 128) f32
    h_bf = h.astype(bf16)                                     # (K, 128) bf16
    h_bf_t = h_bf.T                                           # (128, K) bf16

    # fused coefficient + contrastive weights: (128, 2K)
    w2h = jnp.concatenate([params["w2"], h_bf_t], axis=1)
    w4h = jnp.concatenate([params["w4"], h_bf_t], axis=1)

    # pad the 400-wide hidden layer to 512 (zero cols/rows -> identical math)
    w1a_p = _pad_cols(params["w1a"], H1)
    b1a_p = _pad_cols(params["b1a"], H1)
    w1b_p = _pad_rows(params["w1b"], H1)
    w3a_p = _pad_cols(params["w3a"], H1)
    b3a_p = _pad_cols(params["b3a"], H1)
    w3b_p = _pad_rows(params["w3b"], H1)

    # head layer 1 as two K=256 contractions: rows [0:256) act on
    # [hu*hi | hu-hi], rows [256:512) act on [u_vec | i_vec]
    wm1 = params["wm1"]
    wm1ab, wm1cd = wm1[0:256], wm1[256:512]

    B = user_idx.shape[0]
    TB, vmem_limit = _select_tiling(B, tile_b)
    B_pad = _round_up(B, TB)
    grid = (B_pad // TB,)

    uc = _pad_rows(uc, B_pad)
    ic = _pad_rows(ic, B_pad)
    ui_vec = _pad_rows(ui_vec, B_pad)

    def act_spec(ncol):
        return pl.BlockSpec((TB, ncol), lambda b: (b, 0))

    ins = [
        uc, ic, ui_vec, h_bf,
        w1a_p, b1a_p, w1b_p, params["b1b"], w2h, params["b2"],
        w3a_p, b3a_p, w3b_p, params["b3b"], w4h, params["b4"],
        wm1ab, wm1cd, params["bm1"],
        params["wm2"], params["bm2"], params["wm3"], params["bm3"],
        params["wm4"], params["bm4"],
    ]
    in_specs = ([act_spec(REP), act_spec(REP), act_spec(2 * NF)]
                + [_const_spec(a) for a in ins[3:]])

    # advisory cost hint for XLA's scheduler
    branch_flops = 2 * REP * H1 + 2 * H1 * NF + 2 * NF * (2 * K) + 2 * K * NF
    head_flops = 2 * (2 * NF) * 384 * 2 + 2 * 384 * 256 + 2 * 256 * 128 + 2 * 128
    weight_bytes = (2 * (REP * H1 + H1 * NF + NF * 2 * K)
                    + 512 * 384 + 384 * 256 + 256 * 128 + 128) * 2
    cost = pl.CostEstimate(
        flops=B_pad * (2 * branch_flops + head_flops),
        transcendentals=B_pad * 8 * K,
        bytes_accessed=B_pad * ((2 * REP + 2 * NF) * 2 + 8 * 4) + weight_bytes,
    )

    comps = pl.pallas_call(
        rmcl_kernel,
        grid=grid,
        out_shape=jax.ShapeDtypeStruct((B_pad, 8), f32),
        in_specs=in_specs,
        out_specs=pl.BlockSpec((TB, 8), lambda b: (b, 0)),
        compiler_params=pltpu.CompilerParams(
            dimension_semantics=("parallel",),
            vmem_limit_bytes=vmem_limit,
        ),
        cost_estimate=cost,
    )(*ins)

    comps = comps[:B]
    predict = comps[:, 4:5]                                   # (B, 1)

    lsim_u = jnp.mean(comps[:, 0])
    lsim_i = jnp.mean(comps[:, 1])
    lcl_u = -jnp.mean(comps[:, 2])
    lcl_i = -jnp.mean(comps[:, 3])

    # independence regularizer over h_vectors: a K x K (=10x10) grid-invariant
    # term, computed once in plain JAX (explicit precision so numerics are
    # intentional and generation-independent).
    ip = jnp.dot(h, h.T, precision=jax.lax.Precision.HIGHEST)
    ip = ip * (1.0 - jnp.eye(K, dtype=f32))                   # zero diagonal
    norms = jnp.sum(h * h, axis=1, keepdims=True)             # (K,1) == ||h||^2
    lind = jnp.mean((ip * ip) / (norms * norms.T + 1e-8))

    loss = lcl_i + lcl_u + 100.0 * lind - (lsim_u + lsim_i)   # recon_loss = 0 (naive)
    return predict, loss


def init_params(key, num_users, num_items):
    keys = iter(jax.random.split(key, 24))

    def linear(fin, fout):
        # PyTorch init: weight ~ N(0, 0.01), bias = 0. Stored (in, out).
        # Weights bf16 (MXU operands / halve weight DMA); biases f32.
        w = (jax.random.normal(next(keys), (fin, fout), dtype=jnp.float32)
             * 0.01).astype(jnp.bfloat16)
        b = jnp.zeros((1, fout), dtype=jnp.float32)
        return w, b

    params = {}
    # embeddings (deterministic random stand-ins for pickled pretrained reps)
    params["user_c"] = jax.random.normal(next(keys), (num_users, REP), dtype=jnp.float32)
    params["item_c"] = jax.random.normal(next(keys), (num_items, REP), dtype=jnp.float32)
    params["user_id_vec"] = jax.random.normal(next(keys), (num_users, NF), dtype=jnp.float32)
    params["item_id_vec"] = jax.random.normal(next(keys), (num_items, NF), dtype=jnp.float32)
    params["h_vectors"] = jax.random.normal(next(keys), (K, NF), dtype=jnp.float32)

    # mlp1: 768 -> 400 -> 128 ; mlp2: 128 -> K
    params["w1a"], params["b1a"] = linear(REP, 400)
    params["w1b"], params["b1b"] = linear(400, 128)
    params["w2"], params["b2"] = linear(128, K)
    # mlp3 / mlp4
    params["w3a"], params["b3a"] = linear(REP, 400)
    params["w3b"], params["b3b"] = linear(400, 128)
    params["w4"], params["b4"] = linear(128, K)
    # prediction head: 512 -> 384 -> 256 -> 128 -> 1
    params["wm1"], params["bm1"] = linear(4 * 128, 3 * 128)
    params["wm2"], params["bm2"] = linear(3 * 128, 2 * 128)
    params["wm3"], params["bm3"] = linear(2 * 128, 128)
    params["wm4"], params["bm4"] = linear(128, 1)
    return params


if __name__ == "__main__":
    num_users, num_items, batch = 32, 32, 8
    root = jax.random.PRNGKey(0)
    k_params, k_user, k_item = jax.random.split(root, 3)

    params = init_params(k_params, num_users, num_items)
    user = jax.random.randint(k_user, (batch,), 0, num_users, dtype=jnp.int32)
    item = jax.random.randint(k_item, (batch,), 0, num_items, dtype=jnp.int32)

    fwd = jax.jit(rmcl_forward)
    predict, loss = fwd(params, user, item)
    jax.block_until_ready((predict, loss))
    assert predict.shape == (batch, 1)
    assert loss.shape == ()
    assert bool(jnp.isfinite(loss))
    print("KERNEL_OK")
</pallas_src>

<mosaic_0001>
module attributes {stable_mosaic.version = 11 : i64} {
  func.func @rmcl_kernel(%arg0: i32, %arg1: memref<16x768xbf16, #tpu.memory_space<vmem>>, %arg2: memref<16x768xbf16, #tpu.memory_space<vmem>>, %arg3: memref<16x256xbf16, #tpu.memory_space<vmem>>, %arg4: memref<10x128xbf16, #tpu.memory_space<vmem>>, %arg5: memref<768x512xbf16, #tpu.memory_space<vmem>>, %arg6: memref<1x512xf32, #tpu.memory_space<vmem>>, %arg7: memref<512x128xbf16, #tpu.memory_space<vmem>>, %arg8: memref<1x128xf32, #tpu.memory_space<vmem>>, %arg9: memref<128x20xbf16, #tpu.memory_space<vmem>>, %arg10: memref<1x10xf32, #tpu.memory_space<vmem>>, %arg11: memref<768x512xbf16, #tpu.memory_space<vmem>>, %arg12: memref<1x512xf32, #tpu.memory_space<vmem>>, %arg13: memref<512x128xbf16, #tpu.memory_space<vmem>>, %arg14: memref<1x128xf32, #tpu.memory_space<vmem>>, %arg15: memref<128x20xbf16, #tpu.memory_space<vmem>>, %arg16: memref<1x10xf32, #tpu.memory_space<vmem>>, %arg17: memref<256x384xbf16, #tpu.memory_space<vmem>>, %arg18: memref<256x384xbf16, #tpu.memory_space<vmem>>, %arg19: memref<1x384xf32, #tpu.memory_space<vmem>>, %arg20: memref<384x256xbf16, #tpu.memory_space<vmem>>, %arg21: memref<1x256xf32, #tpu.memory_space<vmem>>, %arg22: memref<256x128xbf16, #tpu.memory_space<vmem>>, %arg23: memref<1x128xf32, #tpu.memory_space<vmem>>, %arg24: memref<128x1xbf16, #tpu.memory_space<vmem>>, %arg25: memref<1x1xf32, #tpu.memory_space<vmem>>, %arg26: memref<16x8xf32, #tpu.memory_space<vmem>>) attributes {dimension_semantics = [#tpu.dimension_semantics<parallel>], iteration_bounds = array<i64: 1>, scalar_prefetch = 0 : i64, scratch_operands = 0 : i64, tpu.core_type = #tpu.core_type<tc>, window_params = [{transform_indices = @transform_0, window_bounds = array<i64: 16, 768>}, {transform_indices = @transform_1, window_bounds = array<i64: 16, 768>}, {transform_indices = @transform_2, window_bounds = array<i64: 16, 256>}, {pipeline_mode = #tpu.pipeline_mode<synchronous>, transform_indices = @transform_3, window_bounds = array<i64: 10, 128>}, {pipeline_mode = #tpu.pipeline_mode<synchronous>, transform_indices = @transform_4, window_bounds = array<i64: 768, 512>}, {pipeline_mode = #tpu.pipeline_mode<synchronous>, transform_indices = @transform_5, window_bounds = array<i64: 1, 512>}, {pipeline_mode = #tpu.pipeline_mode<synchronous>, transform_indices = @transform_6, window_bounds = array<i64: 512, 128>}, {pipeline_mode = #tpu.pipeline_mode<synchronous>, transform_indices = @transform_7, window_bounds = array<i64: 1, 128>}, {pipeline_mode = #tpu.pipeline_mode<synchronous>, transform_indices = @transform_8, window_bounds = array<i64: 128, 20>}, {pipeline_mode = #tpu.pipeline_mode<synchronous>, transform_indices = @transform_9, window_bounds = array<i64: 1, 10>}, {pipeline_mode = #tpu.pipeline_mode<synchronous>, transform_indices = @transform_10, window_bounds = array<i64: 768, 512>}, {pipeline_mode = #tpu.pipeline_mode<synchronous>, transform_indices = @transform_11, window_bounds = array<i64: 1, 512>}, {pipeline_mode = #tpu.pipeline_mode<synchronous>, transform_indices = @transform_12, window_bounds = array<i64: 512, 128>}, {pipeline_mode = #tpu.pipeline_mode<synchronous>, transform_indices = @transform_13, window_bounds = array<i64: 1, 128>}, {pipeline_mode = #tpu.pipeline_mode<synchronous>, transform_indices = @transform_14, window_bounds = array<i64: 128, 20>}, {pipeline_mode = #tpu.pipeline_mode<synchronous>, transform_indices = @transform_15, window_bounds = array<i64: 1, 10>}, {pipeline_mode = #tpu.pipeline_mode<synchronous>, transform_indices = @transform_16, window_bounds = array<i64: 256, 384>}, {pipeline_mode = #tpu.pipeline_mode<synchronous>, transform_indices = @transform_17, window_bounds = array<i64: 256, 384>}, {pipeline_mode = #tpu.pipeline_mode<synchronous>, transform_indices = @transform_18, window_bounds = array<i64: 1, 384>}, {pipeline_mode = #tpu.pipeline_mode<synchronous>, transform_indices = @transform_19, window_bounds = array<i64: 384, 256>}, {pipeline_mode = #tpu.pipeline_mode<synchronous>, transform_indices = @transform_20, window_bounds = array<i64: 1, 256>}, {pipeline_mode = #tpu.pipeline_mode<synchronous>, transform_indices = @transform_21, window_bounds = array<i64: 256, 128>}, {pipeline_mode = #tpu.pipeline_mode<synchronous>, transform_indices = @transform_22, window_bounds = array<i64: 1, 128>}, {pipeline_mode = #tpu.pipeline_mode<synchronous>, transform_indices = @transform_23, window_bounds = array<i64: 128, 1>}, {pipeline_mode = #tpu.pipeline_mode<synchronous>, transform_indices = @transform_24, window_bounds = array<i64: 1, 1>}, {transform_indices = @transform_25, window_bounds = array<i64: 16, 8>}]} {
    %c0 = arith.constant 0 : index
    %c0_0 = arith.constant 0 : index
    %0 = vector.load %arg4[%c0, %c0_0] : memref<10x128xbf16, #tpu.memory_space<vmem>>, vector<10x128xbf16>
    %c0_1 = arith.constant 0 : index
    %c0_2 = arith.constant 0 : index
    %1 = vector.load %arg1[%c0_1, %c0_2] : memref<16x768xbf16, #tpu.memory_space<vmem>>, vector<16x768xbf16>
    %c0_3 = arith.constant 0 : index
    %c0_4 = arith.constant 0 : index
    %2 = vector.load %arg5[%c0_3, %c0_4] : memref<768x512xbf16, #tpu.memory_space<vmem>>, vector<768x512xbf16>
    %cst = arith.constant dense<0.000000e+00> : vector<16x512xf32>
    %3 = tpu.matmul %1, %2, %cst {dimension_numbers = #tpu.dot_dimension_numbers<[1], [0], [0], [1], [0, 0, 1, 1], [], []>} : vector<16x768xbf16>, vector<768x512xbf16>, vector<16x512xf32> -> vector<16x512xf32>
    %c0_5 = arith.constant 0 : index
    %c0_6 = arith.constant 0 : index
    %4 = vector.load %arg6[%c0_5, %c0_6] : memref<1x512xf32, #tpu.memory_space<vmem>>, vector<1x512xf32>
    %5 = vector.broadcast %4 : vector<1x512xf32> to vector<16x512xf32>
    %6 = arith.addf %3, %5 : vector<16x512xf32>
    %cst_7 = arith.constant 0.000000e+00 : f32
    %7 = vector.broadcast %cst_7 : f32 to vector<16x512xf32>
    %8 = arith.maximumf %6, %7 : vector<16x512xf32>
    %9 = arith.truncf %8 : vector<16x512xf32> to vector<16x512xbf16>
    %c0_8 = arith.constant 0 : index
    %c0_9 = arith.constant 0 : index
    %10 = vector.load %arg7[%c0_8, %c0_9] : memref<512x128xbf16, #tpu.memory_space<vmem>>, vector<512x128xbf16>
    %cst_10 = arith.constant dense<0.000000e+00> : vector<16x128xf32>
    %11 = tpu.matmul %9, %10, %cst_10 {dimension_numbers = #tpu.dot_dimension_numbers<[1], [0], [0], [1], [0, 0, 1, 1], [], []>} : vector<16x512xbf16>, vector<512x128xbf16>, vector<16x128xf32> -> vector<16x128xf32>
    %c0_11 = arith.constant 0 : index
    %c0_12 = arith.constant 0 : index
    %12 = vector.load %arg8[%c0_11, %c0_12] : memref<1x128xf32, #tpu.memory_space<vmem>>, vector<1x128xf32>
    %13 = vector.broadcast %12 : vector<1x128xf32> to vector<16x128xf32>
    %14 = arith.addf %11, %13 : vector<16x128xf32>
    %cst_13 = arith.constant 0.000000e+00 : f32
    %15 = vector.broadcast %cst_13 : f32 to vector<16x128xf32>
    %16 = arith.maximumf %14, %15 : vector<16x128xf32>
    %17 = arith.truncf %16 : vector<16x128xf32> to vector<16x128xbf16>
    %c0_14 = arith.constant 0 : index
    %c0_15 = arith.constant 0 : index
    %18 = vector.load %arg9[%c0_14, %c0_15] : memref<128x20xbf16, #tpu.memory_space<vmem>>, vector<128x20xbf16>
    %cst_16 = arith.constant dense<0.000000e+00> : vector<16x20xf32>
    %19 = tpu.matmul %17, %18, %cst_16 {dimension_numbers = #tpu.dot_dimension_numbers<[1], [0], [0], [1], [0, 0, 1, 1], [], []>} : vector<16x128xbf16>, vector<128x20xbf16>, vector<16x20xf32> -> vector<16x20xf32>
    %20 = vector.extract_strided_slice %19 {offsets = [0, 0], sizes = [16, 10], strides = [1, 1]} : vector<16x20xf32> to vector<16x10xf32>
    %c0_17 = arith.constant 0 : index
    %c0_18 = arith.constant 0 : index
    %21 = vector.load %arg10[%c0_17, %c0_18] : memref<1x10xf32, #tpu.memory_space<vmem>>, vector<1x10xf32>
    %22 = vector.broadcast %21 : vector<1x10xf32> to vector<16x10xf32>
    %23 = arith.addf %20, %22 : vector<16x10xf32>
    %cst_19 = arith.constant dense<0xFF800000> : vector<16xf32>
    %24 = vector.multi_reduction <maximumf>, %23, %cst_19 [1] : vector<16x10xf32> to vector<16xf32>
    %25 = vector.shape_cast %24 : vector<16xf32> to vector<16x1xf32>
    %26 = vector.broadcast %25 : vector<16x1xf32> to vector<16x10xf32>
    %27 = arith.subf %23, %26 : vector<16x10xf32>
    %28 = math.exp %27 : vector<16x10xf32>
    %cst_20 = arith.constant dense<0.000000e+00> : vector<16xf32>
    %29 = vector.multi_reduction <add>, %28, %cst_20 [1] : vector<16x10xf32> to vector<16xf32>
    %30 = vector.shape_cast %29 : vector<16xf32> to vector<16x1xf32>
    %31 = vector.broadcast %30 : vector<16x1xf32> to vector<16x10xf32>
    %32 = arith.divf %28, %31 : vector<16x10xf32>
    %33 = vector.extract_strided_slice %19 {offsets = [0, 10], sizes = [16, 10], strides = [1, 1]} : vector<16x20xf32> to vector<16x10xf32>
    %cst_21 = arith.constant 1.000000e+01 : f32
    %34 = vector.broadcast %cst_21 : f32 to vector<16x10xf32>
    %35 = arith.mulf %33, %34 : vector<16x10xf32>
    %cst_22 = arith.constant dense<0xFF800000> : vector<16xf32>
    %36 = vector.multi_reduction <maximumf>, %35, %cst_22 [1] : vector<16x10xf32> to vector<16xf32>
    %37 = vector.shape_cast %36 : vector<16xf32> to vector<16x1xf32>
    %38 = vector.broadcast %37 : vector<16x1xf32> to vector<16x10xf32>
    %39 = arith.subf %35, %38 : vector<16x10xf32>
    %40 = math.exp %39 : vector<16x10xf32>
    %cst_23 = arith.constant dense<0.000000e+00> : vector<16xf32>
    %41 = vector.multi_reduction <add>, %40, %cst_23 [1] : vector<16x10xf32> to vector<16xf32>
    %42 = vector.shape_cast %41 : vector<16xf32> to vector<16x1xf32>
    %43 = vector.broadcast %42 : vector<16x1xf32> to vector<16x10xf32>
    %44 = arith.divf %40, %43 : vector<16x10xf32>
    %cst_24 = arith.constant 1.000000e-10 : f32
    %45 = vector.broadcast %cst_24 : f32 to vector<16x10xf32>
    %46 = arith.addf %44, %45 : vector<16x10xf32>
    %47 = math.log %46 : vector<16x10xf32>
    %48 = arith.mulf %32, %47 : vector<16x10xf32>
    %cst_25 = arith.constant dense<0.000000e+00> : vector<16xf32>
    %49 = vector.multi_reduction <add>, %48, %cst_25 [1] : vector<16x10xf32> to vector<16xf32>
    %50 = vector.shape_cast %49 : vector<16xf32> to vector<16x1xf32>
    %51 = arith.truncf %32 : vector<16x10xf32> to vector<16x10xbf16>
    %cst_26 = arith.constant dense<0.000000e+00> : vector<16x128xf32>
    %52 = tpu.matmul %51, %0, %cst_26 {dimension_numbers = #tpu.dot_dimension_numbers<[1], [0], [0], [1], [0, 0, 1, 1], [], []>} : vector<16x10xbf16>, vector<10x128xbf16>, vector<16x128xf32> -> vector<16x128xf32>
    %53 = arith.mulf %16, %52 : vector<16x128xf32>
    %cst_27 = arith.constant dense<0.000000e+00> : vector<16xf32>
    %54 = vector.multi_reduction <add>, %53, %cst_27 [1] : vector<16x128xf32> to vector<16xf32>
    %55 = vector.shape_cast %54 : vector<16xf32> to vector<16x1xf32>
    %56 = arith.mulf %16, %16 : vector<16x128xf32>
    %cst_28 = arith.constant dense<0.000000e+00> : vector<16xf32>
    %57 = vector.multi_reduction <add>, %56, %cst_28 [1] : vector<16x128xf32> to vector<16xf32>
    %58 = vector.shape_cast %57 : vector<16xf32> to vector<16x1xf32>
    %59 = arith.mulf %52, %52 : vector<16x128xf32>
    %cst_29 = arith.constant dense<0.000000e+00> : vector<16xf32>
    %60 = vector.multi_reduction <add>, %59, %cst_29 [1] : vector<16x128xf32> to vector<16xf32>
    %61 = vector.shape_cast %60 : vector<16xf32> to vector<16x1xf32>
    %62 = arith.mulf %58, %61 : vector<16x1xf32>
    %cst_30 = arith.constant 1.000000e-16 : f32
    %63 = vector.broadcast %cst_30 : f32 to vector<16x1xf32>
    %64 = arith.maximumf %62, %63 : vector<16x1xf32>
    %65 = math.rsqrt %64 : vector<16x1xf32>
    %66 = arith.mulf %55, %65 : vector<16x1xf32>
    %c0_31 = arith.constant 0 : index
    %c0_32 = arith.constant 0 : index
    %67 = vector.load %arg2[%c0_31, %c0_32] : memref<16x768xbf16, #tpu.memory_space<vmem>>, vector<16x768xbf16>
    %c0_33 = arith.constant 0 : index
    %c0_34 = arith.constant 0 : index
    %68 = vector.load %arg11[%c0_33, %c0_34] : memref<768x512xbf16, #tpu.memory_space<vmem>>, vector<768x512xbf16>
    %cst_35 = arith.constant dense<0.000000e+00> : vector<16x512xf32>
    %69 = tpu.matmul %67, %68, %cst_35 {dimension_numbers = #tpu.dot_dimension_numbers<[1], [0], [0], [1], [0, 0, 1, 1], [], []>} : vector<16x768xbf16>, vector<768x512xbf16>, vector<16x512xf32> -> vector<16x512xf32>
    %c0_36 = arith.constant 0 : index
    %c0_37 = arith.constant 0 : index
    %70 = vector.load %arg12[%c0_36, %c0_37] : memref<1x512xf32, #tpu.memory_space<vmem>>, vector<1x512xf32>
    %71 = vector.broadcast %70 : vector<1x512xf32> to vector<16x512xf32>
    %72 = arith.addf %69, %71 : vector<16x512xf32>
    %cst_38 = arith.constant 0.000000e+00 : f32
    %73 = vector.broadcast %cst_38 : f32 to vector<16x512xf32>
    %74 = arith.maximumf %72, %73 : vector<16x512xf32>
    %75 = arith.truncf %74 : vector<16x512xf32> to vector<16x512xbf16>
    %c0_39 = arith.constant 0 : index
    %c0_40 = arith.constant 0 : index
    %76 = vector.load %arg13[%c0_39, %c0_40] : memref<512x128xbf16, #tpu.memory_space<vmem>>, vector<512x128xbf16>
    %cst_41 = arith.constant dense<0.000000e+00> : vector<16x128xf32>
    %77 = tpu.matmul %75, %76, %cst_41 {dimension_numbers = #tpu.dot_dimension_numbers<[1], [0], [0], [1], [0, 0, 1, 1], [], []>} : vector<16x512xbf16>, vector<512x128xbf16>, vector<16x128xf32> -> vector<16x128xf32>
    %c0_42 = arith.constant 0 : index
    %c0_43 = arith.constant 0 : index
    %78 = vector.load %arg14[%c0_42, %c0_43] : memref<1x128xf32, #tpu.memory_space<vmem>>, vector<1x128xf32>
    %79 = vector.broadcast %78 : vector<1x128xf32> to vector<16x128xf32>
    %80 = arith.addf %77, %79 : vector<16x128xf32>
    %cst_44 = arith.constant 0.000000e+00 : f32
    %81 = vector.broadcast %cst_44 : f32 to vector<16x128xf32>
    %82 = arith.maximumf %80, %81 : vector<16x128xf32>
    %83 = arith.truncf %82 : vector<16x128xf32> to vector<16x128xbf16>
    %c0_45 = arith.constant 0 : index
    %c0_46 = arith.constant 0 : index
    %84 = vector.load %arg15[%c0_45, %c0_46] : memref<128x20xbf16, #tpu.memory_space<vmem>>, vector<128x20xbf16>
    %cst_47 = arith.constant dense<0.000000e+00> : vector<16x20xf32>
    %85 = tpu.matmul %83, %84, %cst_47 {dimension_numbers = #tpu.dot_dimension_numbers<[1], [0], [0], [1], [0, 0, 1, 1], [], []>} : vector<16x128xbf16>, vector<128x20xbf16>, vector<16x20xf32> -> vector<16x20xf32>
    %86 = vector.extract_strided_slice %85 {offsets = [0, 0], sizes = [16, 10], strides = [1, 1]} : vector<16x20xf32> to vector<16x10xf32>
    %c0_48 = arith.constant 0 : index
    %c0_49 = arith.constant 0 : index
    %87 = vector.load %arg16[%c0_48, %c0_49] : memref<1x10xf32, #tpu.memory_space<vmem>>, vector<1x10xf32>
    %88 = vector.broadcast %87 : vector<1x10xf32> to vector<16x10xf32>
    %89 = arith.addf %86, %88 : vector<16x10xf32>
    %cst_50 = arith.constant dense<0xFF800000> : vector<16xf32>
    %90 = vector.multi_reduction <maximumf>, %89, %cst_50 [1] : vector<16x10xf32> to vector<16xf32>
    %91 = vector.shape_cast %90 : vector<16xf32> to vector<16x1xf32>
    %92 = vector.broadcast %91 : vector<16x1xf32> to vector<16x10xf32>
    %93 = arith.subf %89, %92 : vector<16x10xf32>
    %94 = math.exp %93 : vector<16x10xf32>
    %cst_51 = arith.constant dense<0.000000e+00> : vector<16xf32>
    %95 = vector.multi_reduction <add>, %94, %cst_51 [1] : vector<16x10xf32> to vector<16xf32>
    %96 = vector.shape_cast %95 : vector<16xf32> to vector<16x1xf32>
    %97 = vector.broadcast %96 : vector<16x1xf32> to vector<16x10xf32>
    %98 = arith.divf %94, %97 : vector<16x10xf32>
    %99 = vector.extract_strided_slice %85 {offsets = [0, 10], sizes = [16, 10], strides = [1, 1]} : vector<16x20xf32> to vector<16x10xf32>
    %cst_52 = arith.constant 1.000000e+01 : f32
    %100 = vector.broadcast %cst_52 : f32 to vector<16x10xf32>
    %101 = arith.mulf %99, %100 : vector<16x10xf32>
    %cst_53 = arith.constant dense<0xFF800000> : vector<16xf32>
    %102 = vector.multi_reduction <maximumf>, %101, %cst_53 [1] : vector<16x10xf32> to vector<16xf32>
    %103 = vector.shape_cast %102 : vector<16xf32> to vector<16x1xf32>
    %104 = vector.broadcast %103 : vector<16x1xf32> to vector<16x10xf32>
    %105 = arith.subf %101, %104 : vector<16x10xf32>
    %106 = math.exp %105 : vector<16x10xf32>
    %cst_54 = arith.constant dense<0.000000e+00> : vector<16xf32>
    %107 = vector.multi_reduction <add>, %106, %cst_54 [1] : vector<16x10xf32> to vector<16xf32>
    %108 = vector.shape_cast %107 : vector<16xf32> to vector<16x1xf32>
    %109 = vector.broadcast %108 : vector<16x1xf32> to vector<16x10xf32>
    %110 = arith.divf %106, %109 : vector<16x10xf32>
    %cst_55 = arith.constant 1.000000e-10 : f32
    %111 = vector.broadcast %cst_55 : f32 to vector<16x10xf32>
    %112 = arith.addf %110, %111 : vector<16x10xf32>
    %113 = math.log %112 : vector<16x10xf32>
    %114 = arith.mulf %98, %113 : vector<16x10xf32>
    %cst_56 = arith.constant dense<0.000000e+00> : vector<16xf32>
    %115 = vector.multi_reduction <add>, %114, %cst_56 [1] : vector<16x10xf32> to vector<16xf32>
    %116 = vector.shape_cast %115 : vector<16xf32> to vector<16x1xf32>
    %117 = arith.truncf %98 : vector<16x10xf32> to vector<16x10xbf16>
    %cst_57 = arith.constant dense<0.000000e+00> : vector<16x128xf32>
    %118 = tpu.matmul %117, %0, %cst_57 {dimension_numbers = #tpu.dot_dimension_numbers<[1], [0], [0], [1], [0, 0, 1, 1], [], []>} : vector<16x10xbf16>, vector<10x128xbf16>, vector<16x128xf32> -> vector<16x128xf32>
    %119 = arith.mulf %82, %118 : vector<16x128xf32>
    %cst_58 = arith.constant dense<0.000000e+00> : vector<16xf32>
    %120 = vector.multi_reduction <add>, %119, %cst_58 [1] : vector<16x128xf32> to vector<16xf32>
    %121 = vector.shape_cast %120 : vector<16xf32> to vector<16x1xf32>
    %122 = arith.mulf %82, %82 : vector<16x128xf32>
    %cst_59 = arith.constant dense<0.000000e+00> : vector<16xf32>
    %123 = vector.multi_reduction <add>, %122, %cst_59 [1] : vector<16x128xf32> to vector<16xf32>
    %124 = vector.shape_cast %123 : vector<16xf32> to vector<16x1xf32>
    %125 = arith.mulf %118, %118 : vector<16x128xf32>
    %cst_60 = arith.constant dense<0.000000e+00> : vector<16xf32>
    %126 = vector.multi_reduction <add>, %125, %cst_60 [1] : vector<16x128xf32> to vector<16xf32>
    %127 = vector.shape_cast %126 : vector<16xf32> to vector<16x1xf32>
    %128 = arith.mulf %124, %127 : vector<16x1xf32>
    %cst_61 = arith.constant 1.000000e-16 : f32
    %129 = vector.broadcast %cst_61 : f32 to vector<16x1xf32>
    %130 = arith.maximumf %128, %129 : vector<16x1xf32>
    %131 = math.rsqrt %130 : vector<16x1xf32>
    %132 = arith.mulf %121, %131 : vector<16x1xf32>
    %133 = arith.mulf %52, %118 : vector<16x128xf32>
    %134 = arith.subf %52, %118 : vector<16x128xf32>
    %135 = tpu.concatenate %133, %134 in 1 : vector<16x128xf32>, vector<16x128xf32> -> vector<16x256xf32>
    %136 = arith.truncf %135 : vector<16x256xf32> to vector<16x256xbf16>
    %c0_62 = arith.constant 0 : index
    %c0_63 = arith.constant 0 : index
    %137 = vector.load %arg17[%c0_62, %c0_63] : memref<256x384xbf16, #tpu.memory_space<vmem>>, vector<256x384xbf16>
    %cst_64 = arith.constant dense<0.000000e+00> : vector<16x384xf32>
    %138 = tpu.matmul %136, %137, %cst_64 {dimension_numbers = #tpu.dot_dimension_numbers<[1], [0], [0], [1], [0, 0, 1, 1], [], []>} : vector<16x256xbf16>, vector<256x384xbf16>, vector<16x384xf32> -> vector<16x384xf32>
    %c0_65 = arith.constant 0 : index
    %c0_66 = arith.constant 0 : index
    %139 = vector.load %arg3[%c0_65, %c0_66] : memref<16x256xbf16, #tpu.memory_space<vmem>>, vector<16x256xbf16>
    %c0_67 = arith.constant 0 : index
    %c0_68 = arith.constant 0 : index
    %140 = vector.load %arg18[%c0_67, %c0_68] : memref<256x384xbf16, #tpu.memory_space<vmem>>, vector<256x384xbf16>
    %cst_69 = arith.constant dense<0.000000e+00> : vector<16x384xf32>
    %141 = tpu.matmul %139, %140, %cst_69 {dimension_numbers = #tpu.dot_dimension_numbers<[1], [0], [0], [1], [0, 0, 1, 1], [], []>} : vector<16x256xbf16>, vector<256x384xbf16>, vector<16x384xf32> -> vector<16x384xf32>
    %142 = arith.addf %138, %141 : vector<16x384xf32>
    %c0_70 = arith.constant 0 : index
    %c0_71 = arith.constant 0 : index
    %143 = vector.load %arg19[%c0_70, %c0_71] : memref<1x384xf32, #tpu.memory_space<vmem>>, vector<1x384xf32>
    %144 = vector.broadcast %143 : vector<1x384xf32> to vector<16x384xf32>
    %145 = arith.addf %142, %144 : vector<16x384xf32>
    %cst_72 = arith.constant 0.000000e+00 : f32
    %146 = vector.broadcast %cst_72 : f32 to vector<16x384xf32>
    %147 = arith.maximumf %145, %146 : vector<16x384xf32>
    %148 = arith.truncf %147 : vector<16x384xf32> to vector<16x384xbf16>
    %c0_73 = arith.constant 0 : index
    %c0_74 = arith.constant 0 : index
    %149 = vector.load %arg20[%c0_73, %c0_74] : memref<384x256xbf16, #tpu.memory_space<vmem>>, vector<384x256xbf16>
    %cst_75 = arith.constant dense<0.000000e+00> : vector<16x256xf32>
    %150 = tpu.matmul %148, %149, %cst_75 {dimension_numbers = #tpu.dot_dimension_numbers<[1], [0], [0], [1], [0, 0, 1, 1], [], []>} : vector<16x384xbf16>, vector<384x256xbf16>, vector<16x256xf32> -> vector<16x256xf32>
    %c0_76 = arith.constant 0 : index
    %c0_77 = arith.constant 0 : index
    %151 = vector.load %arg21[%c0_76, %c0_77] : memref<1x256xf32, #tpu.memory_space<vmem>>, vector<1x256xf32>
    %152 = vector.broadcast %151 : vector<1x256xf32> to vector<16x256xf32>
    %153 = arith.addf %150, %152 : vector<16x256xf32>
    %cst_78 = arith.constant 0.000000e+00 : f32
    %154 = vector.broadcast %cst_78 : f32 to vector<16x256xf32>
    %155 = arith.maximumf %153, %154 : vector<16x256xf32>
    %156 = arith.truncf %155 : vector<16x256xf32> to vector<16x256xbf16>
    %c0_79 = arith.constant 0 : index
    %c0_80 = arith.constant 0 : index
    %157 = vector.load %arg22[%c0_79, %c0_80] : memref<256x128xbf16, #tpu.memory_space<vmem>>, vector<256x128xbf16>
    %cst_81 = arith.constant dense<0.000000e+00> : vector<16x128xf32>
    %158 = tpu.matmul %156, %157, %cst_81 {dimension_numbers = #tpu.dot_dimension_numbers<[1], [0], [0], [1], [0, 0, 1, 1], [], []>} : vector<16x256xbf16>, vector<256x128xbf16>, vector<16x128xf32> -> vector<16x128xf32>
    %c0_82 = arith.constant 0 : index
    %c0_83 = arith.constant 0 : index
    %159 = vector.load %arg23[%c0_82, %c0_83] : memref<1x128xf32, #tpu.memory_space<vmem>>, vector<1x128xf32>
    %160 = vector.broadcast %159 : vector<1x128xf32> to vector<16x128xf32>
    %161 = arith.addf %158, %160 : vector<16x128xf32>
    %cst_84 = arith.constant 0.000000e+00 : f32
    %162 = vector.broadcast %cst_84 : f32 to vector<16x128xf32>
    %163 = arith.maximumf %161, %162 : vector<16x128xf32>
    %164 = arith.truncf %163 : vector<16x128xf32> to vector<16x128xbf16>
    %c0_85 = arith.constant 0 : index
    %c0_86 = arith.constant 0 : index
    %165 = vector.load %arg24[%c0_85, %c0_86] : memref<128x1xbf16, #tpu.memory_space<vmem>>, vector<128x1xbf16>
    %cst_87 = arith.constant dense<0.000000e+00> : vector<16x1xf32>
    %166 = tpu.matmul %164, %165, %cst_87 {dimension_numbers = #tpu.dot_dimension_numbers<[1], [0], [0], [1], [0, 0, 1, 1], [], []>} : vector<16x128xbf16>, vector<128x1xbf16>, vector<16x1xf32> -> vector<16x1xf32>
    %c0_88 = arith.constant 0 : index
    %c0_89 = arith.constant 0 : index
    %167 = vector.load %arg25[%c0_88, %c0_89] : memref<1x1xf32, #tpu.memory_space<vmem>>, vector<1x1xf32>
    %168 = vector.broadcast %167 : vector<1x1xf32> to vector<16x1xf32>
    %169 = arith.addf %166, %168 : vector<16x1xf32>
    %cst_90 = arith.constant 0.000000e+00 : f32
    %170 = vector.broadcast %cst_90 : f32 to vector<16x1xf32>
    %171 = tpu.concatenate %66, %132, %50, %116, %169, %170, %170, %170 in 1 : vector<16x1xf32>, vector<16x1xf32>, vector<16x1xf32>, vector<16x1xf32>, vector<16x1xf32>, vector<16x1xf32>, vector<16x1xf32>, vector<16x1xf32> -> vector<16x8xf32>
    %c0_91 = arith.constant 0 : index
    %c0_92 = arith.constant 0 : index
    %172 = vector.load %arg26[%c0_91, %c0_92] : memref<16x8xf32, #tpu.memory_space<vmem>>, vector<16x8xf32>
    tpu.vector_store %arg26[%c0_91, %c0_92], %171 {strides = array<i32>} : memref<16x8xf32, #tpu.memory_space<vmem>>, vector<16x8xf32>,
    return
  }
  func.func @transform_0(%arg0: i32) -> (i32, i32) {
    %c0_i32 = arith.constant 0 : i32
    %c0_i32_0 = arith.constant 0 : i32
    return %arg0, %c0_i32 : i32, i32
  }
  func.func @transform_1(%arg0: i32) -> (i32, i32) {
    %c0_i32 = arith.constant 0 : i32
    %c0_i32_0 = arith.constant 0 : i32
    return %arg0, %c0_i32 : i32, i32
  }
  func.func @transform_2(%arg0: i32) -> (i32, i32) {
    %c0_i32 = arith.constant 0 : i32
    %c0_i32_0 = arith.constant 0 : i32
    return %arg0, %c0_i32 : i32, i32
  }
  func.func @transform_3(%arg0: i32) -> (i32, i32) {
    %c0_i32 = arith.constant 0 : i32
    %c0_i32_0 = arith.constant 0 : i32
    %c0_i32_1 = arith.constant 0 : i32
    return %c0_i32, %c0_i32_0 : i32, i32
  }
  func.func @transform_4(%arg0: i32) -> (i32, i32) {
    %c0_i32 = arith.constant 0 : i32
    %c0_i32_0 = arith.constant 0 : i32
    %c0_i32_1 = arith.constant 0 : i32
    return %c0_i32, %c0_i32_0 : i32, i32
  }
  func.func @transform_5(%arg0: i32) -> (i32, i32) {
    %c0_i32 = arith.constant 0 : i32
    %c0_i32_0 = arith.constant 0 : i32
    %c0_i32_1 = arith.constant 0 : i32
    return %c0_i32, %c0_i32_0 : i32, i32
  }
  func.func @transform_6(%arg0: i32) -> (i32, i32) {
    %c0_i32 = arith.constant 0 : i32
    %c0_i32_0 = arith.constant 0 : i32
    %c0_i32_1 = arith.constant 0 : i32
    return %c0_i32, %c0_i32_0 : i32, i32
  }
  func.func @transform_7(%arg0: i32) -> (i32, i32) {
    %c0_i32 = arith.constant 0 : i32
    %c0_i32_0 = arith.constant 0 : i32
    %c0_i32_1 = arith.constant 0 : i32
    return %c0_i32, %c0_i32_0 : i32, i32
  }
  func.func @transform_8(%arg0: i32) -> (i32, i32) {
    %c0_i32 = arith.constant 0 : i32
    %c0_i32_0 = arith.constant 0 : i32
    %c0_i32_1 = arith.constant 0 : i32
    return %c0_i32, %c0_i32_0 : i32, i32
  }
  func.func @transform_9(%arg0: i32) -> (i32, i32) {
    %c0_i32 = arith.constant 0 : i32
    %c0_i32_0 = arith.constant 0 : i32
    %c0_i32_1 = arith.constant 0 : i32
    return %c0_i32, %c0_i32_0 : i32, i32
  }
  func.func @transform_10(%arg0: i32) -> (i32, i32) {
    %c0_i32 = arith.constant 0 : i32
    %c0_i32_0 = arith.constant 0 : i32
    %c0_i32_1 = arith.constant 0 : i32
    return %c0_i32, %c0_i32_0 : i32, i32
  }
  func.func @transform_11(%arg0: i32) -> (i32, i32) {
    %c0_i32 = arith.constant 0 : i32
    %c0_i32_0 = arith.constant 0 : i32
    %c0_i32_1 = arith.constant 0 : i32
    return %c0_i32, %c0_i32_0 : i32, i32
  }
  func.func @transform_12(%arg0: i32) -> (i32, i32) {
    %c0_i32 = arith.constant 0 : i32
    %c0_i32_0 = arith.constant 0 : i32
    %c0_i32_1 = arith.constant 0 : i32
    return %c0_i32, %c0_i32_0 : i32, i32
  }
  func.func @transform_13(%arg0: i32) -> (i32, i32) {
    %c0_i32 = arith.constant 0 : i32
    %c0_i32_0 = arith.constant 0 : i32
    %c0_i32_1 = arith.constant 0 : i32
    return %c0_i32, %c0_i32_0 : i32, i32
  }
  func.func @transform_14(%arg0: i32) -> (i32, i32) {
    %c0_i32 = arith.constant 0 : i32
    %c0_i32_0 = arith.constant 0 : i32
    %c0_i32_1 = arith.constant 0 : i32
    return %c0_i32, %c0_i32_0 : i32, i32
  }
  func.func @transform_15(%arg0: i32) -> (i32, i32) {
    %c0_i32 = arith.constant 0 : i32
    %c0_i32_0 = arith.constant 0 : i32
    %c0_i32_1 = arith.constant 0 : i32
    return %c0_i32, %c0_i32_0 : i32, i32
  }
  func.func @transform_16(%arg0: i32) -> (i32, i32) {
    %c0_i32 = arith.constant 0 : i32
    %c0_i32_0 = arith.constant 0 : i32
    %c0_i32_1 = arith.constant 0 : i32
    return %c0_i32, %c0_i32_0 : i32, i32
  }
  func.func @transform_17(%arg0: i32) -> (i32, i32) {
    %c0_i32 = arith.constant 0 : i32
    %c0_i32_0 = arith.constant 0 : i32
    %c0_i32_1 = arith.constant 0 : i32
    return %c0_i32, %c0_i32_0 : i32, i32
  }
  func.func @transform_18(%arg0: i32) -> (i32, i32) {
    %c0_i32 = arith.constant 0 : i32
    %c0_i32_0 = arith.constant 0 : i32
    %c0_i32_1 = arith.constant 0 : i32
    return %c0_i32, %c0_i32_0 : i32, i32
  }
  func.func @transform_19(%arg0: i32) -> (i32, i32) {
    %c0_i32 = arith.constant 0 : i32
    %c0_i32_0 = arith.constant 0 : i32
    %c0_i32_1 = arith.constant 0 : i32
    return %c0_i32, %c0_i32_0 : i32, i32
  }
  func.func @transform_20(%arg0: i32) -> (i32, i32) {
    %c0_i32 = arith.constant 0 : i32
    %c0_i32_0 = arith.constant 0 : i32
    %c0_i32_1 = arith.constant 0 : i32
    return %c0_i32, %c0_i32_0 : i32, i32
  }
  func.func @transform_21(%arg0: i32) -> (i32, i32) {
    %c0_i32 = arith.constant 0 : i32
    %c0_i32_0 = arith.constant 0 : i32
    %c0_i32_1 = arith.constant 0 : i32
    return %c0_i32, %c0_i32_0 : i32, i32
  }
  func.func @transform_22(%arg0: i32) -> (i32, i32) {
    %c0_i32 = arith.constant 0 : i32
    %c0_i32_0 = arith.constant 0 : i32
    %c0_i32_1 = arith.constant 0 : i32
    return %c0_i32, %c0_i32_0 : i32, i32
  }
  func.func @transform_23(%arg0: i32) -> (i32, i32) {
    %c0_i32 = arith.constant 0 : i32
    %c0_i32_0 = arith.constant 0 : i32
    %c0_i32_1 = arith.constant 0 : i32
    return %c0_i32, %c0_i32_0 : i32, i32
  }
  func.func @transform_24(%arg0: i32) -> (i32, i32) {
    %c0_i32 = arith.constant 0 : i32
    %c0_i32_0 = arith.constant 0 : i32
    %c0_i32_1 = arith.constant 0 : i32
    return %c0_i32, %c0_i32_0 : i32, i32
  }
  func.func @transform_25(%arg0: i32) -> (i32, i32) {
    %c0_i32 = arith.constant 0 : i32
    %c0_i32_0 = arith.constant 0 : i32
    return %arg0, %c0_i32 : i32, i32
  }
}

</mosaic_0001>

<bundles_post_ra>
// kernel: rmcl_forward.1
= control target key start
LH: loop header
LB: loop body
LE: loop exit
PB: predicated region body
PF: predicated region fallthrough
CT: control target
= control target key end

     0   :  { %vm7719_vm0 = vmmov 0   ;;  %vm2027_vm1 = vcmask 80896   ;;  %vm2114_vm2 = vcmask 1044480   ;;  %vm2052_vm3 = vcmask 162896   ;;  %s10077_s4 = inlined_call_operand.vmem [shape: bf16[768,512], index: 4, kind: input, shape index: {}]   ;;  %s10078_s0 = inlined_call_operand.vmem [shape: bf16[16,768], index: 0, kind: input, shape index: {}]   ;;  %s10079_s6 = inlined_call_operand.vmem [shape: bf16[512,128], index: 6, kind: input, shape index: {}]   ;;  %s10080_s5 = inlined_call_operand.vmem [shape: f32[1,512], index: 5, kind: input, shape index: {}]   ;;  %s10081_s8 = inlined_call_operand.vmem [shape: bf16[128,20], index: 8, kind: input, shape index: {}]   ;;  %s10082_s7 = inlined_call_operand.vmem [shape: f32[1,128], index: 7, kind: input, shape index: {}]   ;;  %s10083_s9 = inlined_call_operand.vmem [shape: f32[1,10], index: 9, kind: input, shape index: {}]   ;;  %s10084_s3 = inlined_call_operand.vmem [shape: bf16[10,128], index: 3, kind: input, shape index: {}]   ;;  %s10085_s10 = inlined_call_operand.vmem [shape: bf16[768,512], index: 10, kind: input, shape index: {}]   ;;  %s10086_s1 = inlined_call_operand.vmem [shape: bf16[16,768], index: 1, kind: input, shape index: {}]   ;;  %s10087_s12 = inlined_call_operand.vmem [shape: bf16[512,128], index: 12, kind: input, shape index: {}]   ;;  %s10088_s11 = inlined_call_operand.vmem [shape: f32[1,512], index: 11, kind: input, shape index: {}]   ;;  %s10089_s14 = inlined_call_operand.vmem [shape: bf16[128,20], index: 14, kind: input, shape index: {}]   ;;  %s10090_s13 = inlined_call_operand.vmem [shape: f32[1,128], index: 13, kind: input, shape index: {}]   ;;  %s10091_s15 = inlined_call_operand.vmem [shape: f32[1,10], index: 15, kind: input, shape index: {}]   ;;  %s10092_s17 = inlined_call_operand.vmem [shape: bf16[256,384], index: 17, kind: input, shape index: {}]   ;;  %s10093_s2 = inlined_call_operand.vmem [shape: bf16[16,256], index: 2, kind: input, shape index: {}]   ;;  %s10094_s16 = inlined_call_operand.vmem [shape: bf16[256,384], index: 16, kind: input, shape index: {}]   ;;  %s10095_s19 = inlined_call_operand.vmem [shape: bf16[384,256], index: 19, kind: input, shape index: {}]   ;;  %s10096_s18 = inlined_call_operand.vmem [shape: f32[1,384], index: 18, kind: input, shape index: {}]   ;;  %s10097_s21 = inlined_call_operand.vmem [shape: bf16[256,128], index: 21, kind: input, shape index: {}]   ;;  %s10098_s23 = inlined_call_operand.vmem [shape: bf16[128,1], index: 23, kind: input, shape index: {}]   ;;  %s10099_s20 = inlined_call_operand.vmem [shape: f32[1,256], index: 20, kind: input, shape index: {}]   ;;  %s10100_s24 = inlined_call_operand.<no memory space> [shape: f32[1,1], index: 24, kind: input, shape index: {}]   ;;  %s10101_s22 = inlined_call_operand.vmem [shape: f32[1,128], index: 22, kind: input, shape index: {}]   ;;  %s10102_s25 = inlined_call_operand.vmem [shape: f32[16,8], index: 25, kind: output, shape index: {}]  }
   0x1   :  { %10109 = sst [smem:[#allocation3_spill]] %s10077_s4  ;;  %vm5823_vm4 = vcmask 7168   ;;  %vm5826_vm5 = vcmask 15360   ;;  %vm5829_vm6 = vcmask 23552   ;;  %vm5832_vm7 = vcmask 31744  }
   0x2   :  { %10110 = sst [smem:[#allocation4_spill]] %s10078_s0  ;;  %vm5835_vm8 = vcmask 39936   ;;  %vm5838_vm9 = vcmask 48128   ;;  %vm5841_vm10 = vcmask 56320   ;;  %vm5844_vm11 = vcmask 64512  }
   0x3   :  { %10111 = sst [smem:[#allocation5_spill]] %s10079_s6 }
   0x4   :  { %10112 = sst [smem:[#allocation6_spill]] %s10080_s5 }
   0x5   :  { %10113 = sst [smem:[#allocation7_spill]] %s10081_s8 }
   0x6   :  { %10114 = sst [smem:[#allocation8_spill]] %s10082_s7 }
   0x7   :  { %10115 = sst [smem:[#allocation9_spill]] %s10083_s9 }
   0x8   :  { %10116 = sst [smem:[#allocation10_spill]] %s10084_s3 }
   0x9   :  { %10117 = sst [smem:[#allocation11_spill]] %s10085_s10  ;;  %s7720_s10 = smov 118  }
   0xa   :  { %10118 = sst [smem:[#allocation12_spill]] %s10086_s1 }
   0xb   :  { %s10119_s9 = sld [smem:[#allocation3_spill]] }
   0xc   :  { %s10120_s30 = sld [smem:[#allocation4_spill]] }
   0xd   :  { %s10121_s0 = sld [smem:[#allocation5_spill]] }
   0xe   :  { %s10123_s6 = sld [smem:[#allocation7_spill]] }
   0xf   :  { %s10124_s26 = sld [smem:[#allocation8_spill]] }
  0x10   :  { %s10125_s27 = sld [smem:[#allocation9_spill]] }
  0x11   :  { %v6768_v0 = vld [vmem:[%s10119_s9 + $0xe4] ss:$16 sps:$4 sm:$0xff]   ;;  %v6772_v2 = vld [vmem:[%s10119_s9 + $0xe0] ss:$16 sps:$4 sm:$0xff]   ;;  %s10127_s4 = sld [smem:[#allocation11_spill]] }
  0x12   :  { %v6770_v1 = vld [vmem:[%s10119_s9 + $0x2e4] ss:$16 sps:$4 sm:$0xff]   ;;  %1295 = vmatprep.subr.bf16.mxu0 %v6768_v0  ;;  %v6773_v3 = vld [vmem:[%s10119_s9 + $0x2e0] ss:$16 sps:$4 sm:$0xff]   ;;  %s10128_s8 = sld [smem:[#allocation12_spill]] }
  0x13   :  { %1338 = vmatprep.subr.bf16.mxu1 %v6770_v1  ;;  %v6774_v4 = vld [vmem:[%s10119_s9 + $0xc4] ss:$16 sps:$4 sm:$0xff]   ;;  %1296 = vmatpush1.bf16.msra.mxu0 %v6772_v2  ;;  %v6778_v6 = vld [vmem:[%s10119_s9 + $0xc0] ss:$16 sps:$4 sm:$0xff]  }
  0x14   :  { %1339 = vmatpush1.bf16.msra.mxu1 %v6773_v3  ;;  %v6776_v5 = vld [vmem:[%s10119_s9 + $0x2c4] ss:$16 sps:$4 sm:$0xff]   ;;  %1297 = vmatprep.subr.bf16.mxu0 %v6774_v4  ;;  %v6779_v7 = vld [vmem:[%s10119_s9 + $0x2c0] ss:$16 sps:$4 sm:$0xff]   ;;  %v6875_v3 = vld [vmem:[%s10119_s9 + $0xec] ss:$16 sps:$4 sm:$0xff]  }
  0x15   :  { %1340 = vmatprep.subr.bf16.mxu1 %v6776_v5  ;;  %v6780_v8 = vld [vmem:[%s10119_s9 + $0xa4] ss:$16 sps:$4 sm:$0xff]   ;;  %v6784_v10 = vld [vmem:[%s10119_s9 + $0xa0] ss:$16 sps:$4 sm:$0xff]  }
  0x16   :  { %v6782_v9 = vld [vmem:[%s10119_s9 + $0x2a4] ss:$16 sps:$4 sm:$0xff]   ;;  %v6785_v11 = vld [vmem:[%s10119_s9 + $0x2a0] ss:$16 sps:$4 sm:$0xff]  }
  0x17   :  { %1298 = vmatpush1.bf16.msra.mxu0 %v6778_v6  ;;  %v6786_v12 = vld [vmem:[%s10119_s9 + $0x84] ss:$16 sps:$4 sm:$0xff]   ;;  %v6790_v14 = vld [vmem:[%s10119_s9 + $0x80] ss:$16 sps:$4 sm:$0xff]  }
  0x18   :  { %1341 = vmatpush1.bf16.msra.mxu1 %v6779_v7  ;;  %1299 = vmatprep.subr.bf16.mxu0 %v6780_v8  ;;  %v6788_v13 = vld [vmem:[%s10119_s9 + $0x284] ss:$16 sps:$4 sm:$0xff]   ;;  %v6791_v15 = vld [vmem:[%s10119_s9 + $0x280] ss:$16 sps:$4 sm:$0xff]   ;;  %v6873_v7 = vld [vmem:[%s10119_s9 + $0xe8] ss:$16 sps:$4 sm:$0xff]  }
  0x19   :  { %1342 = vmatprep.subr.bf16.mxu1 %v6782_v9  ;;  %v6792_v16 = vld [vmem:[%s10119_s9 + $0x64] ss:$16 sps:$4 sm:$0xff]   ;;  %v6796_v18 = vld [vmem:[%s10119_s9 + $0x60] ss:$16 sps:$4 sm:$0xff]   ;;  %v6881_v9 = vld [vmem:[%s10119_s9 + $0xcc] ss:$16 sps:$4 sm:$0xff]  }
  0x1a   :  { %v6794_v17 = vld [vmem:[%s10119_s9 + $0x264] ss:$16 sps:$4 sm:$0xff]   ;;  %v6797_v19 = vld [vmem:[%s10119_s9 + $0x260] ss:$16 sps:$4 sm:$0xff]  }
  0x1b   :  { %1300 = vmatpush1.bf16.msra.mxu0 %v6784_v10  ;;  %v6798_v20 = vld [vmem:[%s10119_s9 + $0x44] ss:$16 sps:$4 sm:$0xff]   ;;  %v6802_v22 = vld [vmem:[%s10119_s9 + $0x40] ss:$16 sps:$4 sm:$0xff]  }
  0x1c   :  { %1343 = vmatpush1.bf16.msra.mxu1 %v6785_v11  ;;  %1301 = vmatprep.subr.bf16.mxu0 %v6786_v12  ;;  %v6800_v21 = vld [vmem:[%s10119_s9 + $0x244] ss:$16 sps:$4 sm:$0xff]   ;;  %v6803_v23 = vld [vmem:[%s10119_s9 + $0x240] ss:$16 sps:$4 sm:$0xff]   ;;  %v6879_v11 = vld [vmem:[%s10119_s9 + $0xc8] ss:$16 sps:$4 sm:$0xff]  }
  0x1d   :  { %1344 = vmatprep.subr.bf16.mxu1 %v6788_v13  ;;  %v6804_v24 = vld [vmem:[%s10119_s9 + $0x24] ss:$16 sps:$4 sm:$0xff]   ;;  %v6808_v26 = vld [vmem:[%s10119_s9 + $0x20] ss:$16 sps:$4 sm:$0xff]   ;;  %v6887_v13 = vld [vmem:[%s10119_s9 + $0xac] ss:$16 sps:$4 sm:$0xff]  }
  0x1e   :  { %v6806_v25 = vld [vmem:[%s10119_s9 + $0x224] ss:$16 sps:$4 sm:$0xff]   ;;  %v6809_v27 = vld [vmem:[%s10119_s9 + $0x220] ss:$16 sps:$4 sm:$0xff]  }
  0x1f   :  { %1302 = vmatpush1.bf16.msra.mxu0 %v6790_v14  ;;  %v6810_v28 = vld [vmem:[%s10119_s9 + $0x4] ss:$16 sps:$4 sm:$0xff]   ;;  %v6814_v30 = vld [vmem:[%s10119_s9] ss:$16 sps:$4 sm:$0xff]  }
  0x20   :  { %1345 = vmatpush1.bf16.msra.mxu1 %v6791_v15  ;;  %1303 = vmatprep.subr.bf16.mxu0 %v6792_v16  ;;  %v6812_v29 = vld [vmem:[%s10119_s9 + $0x204] ss:$16 sps:$4 sm:$0xff]   ;;  %v6815_v31 = vld [vmem:[%s10119_s9 + $0x200] ss:$16 sps:$4 sm:$0xff]   ;;  %v6885_v15 = vld [vmem:[%s10119_s9 + $0xa8] ss:$16 sps:$4 sm:$0xff]  }
  0x21   :  { %1346 = vmatprep.subr.bf16.mxu1 %v6794_v17  ;;  %v6816_v32 = vld [vmem:[%s10119_s9 + $0x1e4] ss:$16 sps:$4 sm:$0xff]   ;;  %v6820_v34 = vld [vmem:[%s10119_s9 + $0x1e0] ss:$16 sps:$4 sm:$0xff]   ;;  %v6893_v17 = vld [vmem:[%s10119_s9 + $0x8c] ss:$16 sps:$4 sm:$0xff]  }
  0x22   :  { %v6818_v33 = vld [vmem:[%s10119_s9 + $0x3e4] ss:$16 sps:$4 sm:$0xff]   ;;  %v6821_v35 = vld [vmem:[%s10119_s9 + $0x3e0] ss:$16 sps:$4 sm:$0xff]  }
  0x23   :  { %1304 = vmatpush1.bf16.msra.mxu0 %v6796_v18  ;;  %v6822_v36 = vld [vmem:[%s10119_s9 + $0x1c4] ss:$16 sps:$4 sm:$0xff]   ;;  %v6826_v38 = vld [vmem:[%s10119_s9 + $0x1c0] ss:$16 sps:$4 sm:$0xff]  }
  0x24   :  { %1347 = vmatpush1.bf16.msra.mxu1 %v6797_v19  ;;  %1305 = vmatprep.subr.bf16.mxu0 %v6798_v20  ;;  %v6824_v37 = vld [vmem:[%s10119_s9 + $0x3c4] ss:$16 sps:$4 sm:$0xff]   ;;  %v6827_v39 = vld [vmem:[%s10119_s9 + $0x3c0] ss:$16 sps:$4 sm:$0xff]   ;;  %v6891_v19 = vld [vmem:[%s10119_s9 + $0x88] ss:$16 sps:$4 sm:$0xff]  }
  0x25   :  { %1348 = vmatprep.subr.bf16.mxu1 %v6800_v21  ;;  %v6828_v40 = vld [vmem:[%s10119_s9 + $0x1a4] ss:$16 sps:$4 sm:$0xff]   ;;  %v6832_v42 = vld [vmem:[%s10119_s9 + $0x1a0] ss:$16 sps:$4 sm:$0xff]   ;;  %v6899_v21 = vld [vmem:[%s10119_s9 + $0x6c] ss:$16 sps:$4 sm:$0xff]  }
  0x26   :  { %v6830_v41 = vld [vmem:[%s10119_s9 + $0x3a4] ss:$16 sps:$4 sm:$0xff]   ;;  %v6833_v43 = vld [vmem:[%s10119_s9 + $0x3a0] ss:$16 sps:$4 sm:$0xff]  }
  0x27   :  { %1306 = vmatpush1.bf16.msra.mxu0 %v6802_v22  ;;  %v6834_v44 = vld [vmem:[%s10119_s9 + $0x184] ss:$16 sps:$4 sm:$0xff]   ;;  %v6838_v46 = vld [vmem:[%s10119_s9 + $0x180] ss:$16 sps:$4 sm:$0xff]  }
  0x28   :  { %1349 = vmatpush1.bf16.msra.mxu1 %v6803_v23  ;;  %1307 = vmatprep.subr.bf16.mxu0 %v6804_v24  ;;  %v6836_v45 = vld [vmem:[%s10119_s9 + $0x384] ss:$16 sps:$4 sm:$0xff]   ;;  %v6839_v47 = vld [vmem:[%s10119_s9 + $0x380] ss:$16 sps:$4 sm:$0xff]   ;;  %v6897_v23 = vld [vmem:[%s10119_s9 + $0x68] ss:$16 sps:$4 sm:$0xff]  }
  0x29   :  { %1350 = vmatprep.subr.bf16.mxu1 %v6806_v25  ;;  %v6840_v48 = vld [vmem:[%s10119_s9 + $0x164] ss:$16 sps:$4 sm:$0xff]   ;;  %v6844_v52 = vld [vmem:[%s10119_s9 + $0x160] ss:$16 sps:$4 sm:$0xff]   ;;  %v6905_v25 = vld [vmem:[%s10119_s9 + $0x4c] ss:$16 sps:$4 sm:$0xff]  }
  0x2a   :  { %v6866_v49 = vld [vmem:[%s10120_s30 + $0x4] ss:$24 sps:$4 sm:$0xff]   ;;  %v6845_v53 = vld [vmem:[%s10119_s9 + $0x360] ss:$16 sps:$4 sm:$0xff]  }
  0x2b   :  { %1308 = vmatpush1.bf16.msra.mxu0 %v6808_v26  ;;  %v6842_v50 = vld [vmem:[%s10119_s9 + $0x364] ss:$16 sps:$4 sm:$0xff]   ;;  %1327 = vmatprep.mubr.bf16.mxu0 %v6866_v49  ;;  %v6850_v56 = vld [vmem:[%s10119_s9 + $0x140] ss:$16 sps:$4 sm:$0xff]  }
  0x2c   :  { %1351 = vmatpush1.bf16.msra.mxu1 %v6809_v27  ;;  %1309 = vmatprep.subr.bf16.mxu0 %v6810_v28  ;;  %v8009_v51 = vld [vmem:[%s10120_s30 + $0xc] ss:$24 sps:$4 sm:$0xff]   ;;  %v6851_v57 = vld [vmem:[%s10119_s9 + $0x340] ss:$16 sps:$4 sm:$0xff]   ;;  %v6903_v27 = vld [vmem:[%s10119_s9 + $0x48] ss:$16 sps:$4 sm:$0xff]  }
  0x2d   :  { %1352 = vmatprep.subr.bf16.mxu1 %v6812_v29  ;;  %1370 = vmatprep.mubr.bf16.mxu1 %v8009_v51  ;;  %v6846_v54 = vld [vmem:[%s10119_s9 + $0x144] ss:$16 sps:$4 sm:$0xff]   ;;  %v6856_v60 = vld [vmem:[%s10119_s9 + $0x120] ss:$16 sps:$4 sm:$0xff]   ;;  %v6911_v29 = vld [vmem:[%s10119_s9 + $0x2c] ss:$16 sps:$4 sm:$0xff]  }
  0x2e   :  { %v6848_v55 = vld [vmem:[%s10119_s9 + $0x344] ss:$16 sps:$4 sm:$0xff]   ;;  %v6857_v61 = vld [vmem:[%s10119_s9 + $0x320] ss:$16 sps:$4 sm:$0xff]  }
  0x2f   :  { %1310 = vmatpush1.bf16.msra.mxu0 %v6814_v30  ;;  %v6852_v58 = vld [vmem:[%s10119_s9 + $0x124] ss:$16 sps:$4 sm:$0xff]   ;;  %v6862_v0 = vld [vmem:[%s10119_s9 + $0x100] ss:$16 sps:$4 sm:$0xff]  }
  0x30   :  { %1353 = vmatpush1.bf16.msra.mxu1 %v6815_v31  ;;  %1311 = vmatprep.subr.bf16.mxu0 %v6816_v32  ;;  %v6854_v59 = vld [vmem:[%s10119_s9 + $0x324] ss:$16 sps:$4 sm:$0xff]   ;;  %v6863_v1 = vld [vmem:[%s10119_s9 + $0x300] ss:$16 sps:$4 sm:$0xff]   ;;  %v6909_v31 = vld [vmem:[%s10119_s9 + $0x28] ss:$16 sps:$4 sm:$0xff]  }
  0x31   :  { %1354 = vmatprep.subr.bf16.mxu1 %v6818_v33  ;;  %v6858_v62 = vld [vmem:[%s10119_s9 + $0x104] ss:$16 sps:$4 sm:$0xff]   ;;  %v8063_v4 = vld [vmem:[%s10120_s30] ss:$24 sps:$4 sm:$0xff]   ;;  %v6917_v33 = vld [vmem:[%s10119_s9 + $0xc] ss:$16 sps:$4 sm:$0xff]  }
  0x32   :  { %v6860_v63 = vld [vmem:[%s10119_s9 + $0x304] ss:$16 sps:$4 sm:$0xff]   ;;  %v8068_v5 = vld [vmem:[%s10120_s30 + $0x8] ss:$24 sps:$4 sm:$0xff]  }
  0x33   :  { %1312 = vmatpush2.bf16.msra.mxu0 %v6820_v34  ;;  %v6872_v2 = vld [vmem:[%s10119_s9 + $0x4e4] ss:$16 sps:$4 sm:$0xff]   ;;  %v6870_v6 = vld [vmem:[%s10119_s9 + $0x4e0] ss:$16 sps:$4 sm:$0xff]  }
  0x34   :  { %1355 = vmatpush2.bf16.msra.mxu1 %v6821_v35  ;;  %1313 = vmatprep.subr.bf16.mxu0 %v6822_v36  ;;  %v6878_v8 = vld [vmem:[%s10119_s9 + $0x4c4] ss:$16 sps:$4 sm:$0xff]   ;;  %v6876_v10 = vld [vmem:[%s10119_s9 + $0x4c0] ss:$16 sps:$4 sm:$0xff]   ;;  %v6915_v36 = vld [vmem:[%s10119_s9 + $0x8] ss:$16 sps:$4 sm:$0xff]  }
  0x35   :  { %1356 = vmatprep.subr.bf16.mxu1 %v6824_v37  ;;  %v6884_v12 = vld [vmem:[%s10119_s9 + $0x4a4] ss:$16 sps:$4 sm:$0xff]   ;;  %v6882_v14 = vld [vmem:[%s10119_s9 + $0x4a0] ss:$16 sps:$4 sm:$0xff]  }
  0x36   :  { %v6890_v16 = vld [vmem:[%s10119_s9 + $0x484] ss:$16 sps:$4 sm:$0xff]   ;;  %v6888_v18 = vld [vmem:[%s10119_s9 + $0x480] ss:$16 sps:$4 sm:$0xff]  }
  0x37   :  { %1314 = vmatpush2.bf16.msra.mxu0 %v6826_v38  ;;  %v6896_v20 = vld [vmem:[%s10119_s9 + $0x464] ss:$16 sps:$4 sm:$0xff]   ;;  %v6894_v22 = vld [vmem:[%s10119_s9 + $0x460] ss:$16 sps:$4 sm:$0xff]   ;;  %v6923_v38 = vld [vmem:[%s10119_s9 + $0x1ec] ss:$16 sps:$4 sm:$0xff]  }
  0x38   :  { %1357 = vmatpush2.bf16.msra.mxu1 %v6827_v39  ;;  %1315 = vmatprep.subr.bf16.mxu0 %v6828_v40  ;;  %v6902_v24 = vld [vmem:[%s10119_s9 + $0x444] ss:$16 sps:$4 sm:$0xff]   ;;  %v6900_v26 = vld [vmem:[%s10119_s9 + $0x440] ss:$16 sps:$4 sm:$0xff]   ;;  %v6921_v40 = vld [vmem:[%s10119_s9 + $0x1e8] ss:$16 sps:$4 sm:$0xff]  }
  0x39   :  { %1358 = vmatprep.subr.bf16.mxu1 %v6830_v41  ;;  %v6908_v28 = vld [vmem:[%s10119_s9 + $0x424] ss:$16 sps:$4 sm:$0xff]   ;;  %v6906_v30 = vld [vmem:[%s10119_s9 + $0x420] ss:$16 sps:$4 sm:$0xff]  }
  0x3a   :  { %v6914_v32 = vld [vmem:[%s10119_s9 + $0x404] ss:$16 sps:$4 sm:$0xff]   ;;  %v6912_v35 = vld [vmem:[%s10119_s9 + $0x400] ss:$16 sps:$4 sm:$0xff]  }
  0x3b   :  { %1316 = vmatpush2.bf16.msra.mxu0 %v6832_v42  ;;  %v8159_v34 = vld [vmem:[%s10120_s30 + $0x14] ss:$24 sps:$4 sm:$0xff]   ;;  %v6918_v39 = vld [vmem:[%s10119_s9 + $0x5e0] ss:$16 sps:$4 sm:$0xff]  }
  0x3c   :  { %1359 = vmatpush2.bf16.msra.mxu1 %v6833_v43  ;;  %1317 = vmatprep.subr.bf16.mxu0 %v6834_v44  ;;  %v6920_v37 = vld [vmem:[%s10119_s9 + $0x5e4] ss:$16 sps:$4 sm:$0xff]   ;;  %v6929_v42 = vld [vmem:[%s10119_s9 + $0x1cc] ss:$16 sps:$4 sm:$0xff]   ;;  %v6924_v43 = vld [vmem:[%s10119_s9 + $0x5c0] ss:$16 sps:$4 sm:$0xff]  }
  0x3d   :  { %1360 = vmatprep.subr.bf16.mxu1 %v6836_v45  ;;  %v6926_v41 = vld [vmem:[%s10119_s9 + $0x5c4] ss:$16 sps:$4 sm:$0xff]   ;;  %v6927_v44 = vld [vmem:[%s10119_s9 + $0x1c8] ss:$16 sps:$4 sm:$0xff]  }
  0x3e   :  { %v6932_v45 = vld [vmem:[%s10119_s9 + $0x5a4] ss:$16 sps:$4 sm:$0xff]  }
  0x3f   :  { %1318 = vmatpush2.bf16.msra.mxu0 %v6838_v46  ;;  %v6935_v46 = vld [vmem:[%s10119_s9 + $0x1ac] ss:$16 sps:$4 sm:$0xff]  }
  0x40   :  { %1361 = vmatpush2.bf16.msra.mxu1 %v6839_v47  ;;  %1319 = vmatprep.subr.bf16.mxu0 %v6840_v48  ;;  %v6930_v47 = vld [vmem:[%s10119_s9 + $0x5a0] ss:$16 sps:$4 sm:$0xff]   ;;  %v6933_v48 = vld [vmem:[%s10119_s9 + $0x1a8] ss:$16 sps:$4 sm:$0xff]  }
  0x41   :  { %1362 = vmatprep.subr.bf16.mxu1 %v6842_v50  ;;  %v6941_v50 = vld [vmem:[%s10119_s9 + $0x18c] ss:$16 sps:$4 sm:$0xff]  }
  0x43   :  { %1320 = vmatpush2.bf16.msra.mxu0 %v6844_v52  ;;  %v6936_v52 = vld [vmem:[%s10119_s9 + $0x580] ss:$16 sps:$4 sm:$0xff]  }
  0x44   :  { %1363 = vmatpush2.bf16.msra.mxu1 %v6845_v53  ;;  %1321 = vmatprep.subr.bf16.mxu0 %v6846_v54  ;;  %v6939_v53 = vld [vmem:[%s10119_s9 + $0x188] ss:$16 sps:$4 sm:$0xff]   ;;  %v6944_v54 = vld [vmem:[%s10119_s9 + $0x564] ss:$16 sps:$4 sm:$0xff]  }
  0x45   :  { %1364 = vmatprep.subr.bf16.mxu1 %v6848_v55  ;;  %v6947_v55 = vld [vmem:[%s10119_s9 + $0x16c] ss:$16 sps:$4 sm:$0xff]  }
  0x47   :  { %1322 = vmatpush2.bf16.msra.mxu0 %v6850_v56  ;;  %v6942_v56 = vld [vmem:[%s10119_s9 + $0x560] ss:$16 sps:$4 sm:$0xff]  }
  0x48   :  { %1365 = vmatpush2.bf16.msra.mxu1 %v6851_v57  ;;  %1323 = vmatprep.subr.bf16.mxu0 %v6852_v58  ;;  %v6945_v57 = vld [vmem:[%s10119_s9 + $0x168] ss:$16 sps:$4 sm:$0xff]   ;;  %v6950_v58 = vld [vmem:[%s10119_s9 + $0x544] ss:$16 sps:$4 sm:$0xff]  }
  0x49   :  { %1366 = vmatprep.subr.bf16.mxu1 %v6854_v59  ;;  %v6953_v59 = vld [vmem:[%s10119_s9 + $0x14c] ss:$16 sps:$4 sm:$0xff]  }
  0x4b   :  { %1324 = vmatpush2.bf16.msra.mxu0 %v6856_v60  ;;  %v6948_v60 = vld [vmem:[%s10119_s9 + $0x540] ss:$16 sps:$4 sm:$0xff]  }
  0x4c   :  { %1367 = vmatpush2.bf16.msra.mxu1 %v6857_v61  ;;  %1325 = vmatprep.subr.bf16.mxu0 %v6858_v62  ;;  %v6951_v61 = vld [vmem:[%s10119_s9 + $0x148] ss:$16 sps:$4 sm:$0xff]   ;;  %v6956_v62 = vld [vmem:[%s10119_s9 + $0x524] ss:$16 sps:$4 sm:$0xff]  }
  0x4d   :  { %1368 = vmatprep.subr.bf16.mxu1 %v6860_v63  ;;  %v6959_v63 = vld [vmem:[%s10119_s9 + $0x12c] ss:$16 sps:$4 sm:$0xff]  }
  0x4f   :  { %1326 = vmatpush2.bf16.msra.mxu0 %v6862_v0  ;;  %v6954_v0 = vld [vmem:[%s10119_s9 + $0x520] ss:$16 sps:$4 sm:$0xff]  }
  0x50   :  { %1369 = vmatpush2.bf16.msra.mxu1 %v6863_v1  ;;  %1381 = vmatprep.subr.bf16.mxu0 %v6872_v2  ;;  %v6957_v1 = vld [vmem:[%s10119_s9 + $0x128] ss:$16 sps:$4 sm:$0xff]   ;;  %v6962_v2 = vld [vmem:[%s10119_s9 + $0x504] ss:$16 sps:$4 sm:$0xff]  }
  0x51   :  { %1424 = vmatprep.subr.bf16.mxu1 %v6875_v3  ;;  %v6965_v3 = vld [vmem:[%s10119_s9 + $0x10c] ss:$16 sps:$4 sm:$0xff]  }
  0x52   :  { %1328 = vmatmul.mubr.bf16.vlgmr.msra.gmra.mxu0 %v8063_v4 }
  0x53   :  { %1371 = vmatmul.mubr.bf16.vlgmr.msra.gmra.mxu1 %v8068_v5  ;;  %1382 = vmatpush1.bf16.msra.mxu0 %v6870_v6  ;;  %v6960_v6 = vld [vmem:[%s10119_s9 + $0x500] ss:$16 sps:$4 sm:$0xff]  }
  0x54   :  { %1425 = vmatpush1.bf16.msra.mxu1 %v6873_v7  ;;  %1383 = vmatprep.subr.bf16.mxu0 %v6878_v8  ;;  %v6963_v7 = vld [vmem:[%s10119_s9 + $0x108] ss:$16 sps:$4 sm:$0xff]   ;;  %v6971_v8 = vld [vmem:[%s10119_s9 + $0x2ec] ss:$16 sps:$4 sm:$0xff]  }
  0x55   :  { %1426 = vmatprep.subr.bf16.mxu1 %v6881_v9  ;;  %1456 = vmatprep.mubr.bf16.mxu1 %v6866_v49  ;;  %v6938_v49 = vld [vmem:[%s10119_s9 + $0x584] ss:$16 sps:$4 sm:$0xff]   ;;  %v6974_v9 = vld [vmem:[%s10119_s9 + $0x4ec] ss:$16 sps:$4 sm:$0xff]  }
  0x56   :  { %1413 = vmatprep.mubr.bf16.mxu0 %v8159_v34 }
  0x57   :  { %1384 = vmatpush1.bf16.msra.mxu0 %v6876_v10  ;;  %v8273_v10 = vld [vmem:[%s10120_s30 + $0x10] ss:$24 sps:$4 sm:$0xff]   ;;  %s10122_s30 = sld [smem:[#allocation6_spill]] }
  0x58   :  { %1427 = vmatpush1.bf16.msra.mxu1 %v6879_v11  ;;  %1385 = vmatprep.subr.bf16.mxu0 %v6884_v12  ;;  %v6969_v11 = vld [vmem:[%s10119_s9 + $0x2e8] ss:$16 sps:$4 sm:$0xff]  }
  0x59   :  { %1428 = vmatprep.subr.bf16.mxu1 %v6887_v13  ;;  %v6972_v12 = vld [vmem:[%s10119_s9 + $0x4e8] ss:$16 sps:$4 sm:$0xff]   ;;  %v6977_v13 = vld [vmem:[%s10119_s9 + $0x2cc] ss:$16 sps:$4 sm:$0xff]  }
  0x5b   :  { %1386 = vmatpush1.bf16.msra.mxu0 %v6882_v14  ;;  %v6980_v14 = vld [vmem:[%s10119_s9 + $0x4cc] ss:$16 sps:$4 sm:$0xff]  }
  0x5c   :  { %1429 = vmatpush1.bf16.msra.mxu1 %v6885_v15  ;;  %1387 = vmatprep.subr.bf16.mxu0 %v6890_v16  ;;  %v6975_v15 = vld [vmem:[%s10119_s9 + $0x2c8] ss:$16 sps:$4 sm:$0xff]  }
  0x5d   :  { %1430 = vmatprep.subr.bf16.mxu1 %v6893_v17  ;;  %v6978_v16 = vld [vmem:[%s10119_s9 + $0x4c8] ss:$16 sps:$4 sm:$0xff]   ;;  %v6983_v17 = vld [vmem:[%s10119_s9 + $0x2ac] ss:$16 sps:$4 sm:$0xff]  }
  0x5f   :  { %1388 = vmatpush1.bf16.msra.mxu0 %v6888_v18  ;;  %v6981_v18 = vld [vmem:[%s10119_s9 + $0x2a8] ss:$16 sps:$4 sm:$0xff]  }
  0x60   :  { %1431 = vmatpush1.bf16.msra.mxu1 %v6891_v19  ;;  %1389 = vmatprep.subr.bf16.mxu0 %v6896_v20  ;;  %v6984_v19 = vld [vmem:[%s10119_s9 + $0x4a8] ss:$16 sps:$4 sm:$0xff]   ;;  %v6989_v20 = vld [vmem:[%s10119_s9 + $0x28c] ss:$16 sps:$4 sm:$0xff]  }
  0x61   :  { %1432 = vmatprep.subr.bf16.mxu1 %v6899_v21  ;;  %v6987_v21 = vld [vmem:[%s10119_s9 + $0x288] ss:$16 sps:$4 sm:$0xff]  }
  0x63   :  { %1390 = vmatpush1.bf16.msra.mxu0 %v6894_v22  ;;  %v6990_v22 = vld [vmem:[%s10119_s9 + $0x488] ss:$16 sps:$4 sm:$0xff]  }
  0x64   :  { %1433 = vmatpush1.bf16.msra.mxu1 %v6897_v23  ;;  %1391 = vmatprep.subr.bf16.mxu0 %v6902_v24  ;;  %v6995_v23 = vld [vmem:[%s10119_s9 + $0x26c] ss:$16 sps:$4 sm:$0xff]  }
  0x65   :  { %1434 = vmatprep.subr.bf16.mxu1 %v6905_v25  ;;  %v6998_v24 = vld [vmem:[%s10119_s9 + $0x46c] ss:$16 sps:$4 sm:$0xff]   ;;  %v6993_v25 = vld [vmem:[%s10119_s9 + $0x268] ss:$16 sps:$4 sm:$0xff]  }
  0x67   :  { %1392 = vmatpush1.bf16.msra.mxu0 %v6900_v26  ;;  %v6996_v26 = vld [vmem:[%s10119_s9 + $0x468] ss:$16 sps:$4 sm:$0xff]  }
  0x68   :  { %1435 = vmatpush1.bf16.msra.mxu1 %v6903_v27  ;;  %1393 = vmatprep.subr.bf16.mxu0 %v6908_v28  ;;  %v7001_v27 = vld [vmem:[%s10119_s9 + $0x24c] ss:$16 sps:$4 sm:$0xff]  }
  0x69   :  { %1436 = vmatprep.subr.bf16.mxu1 %v6911_v29  ;;  %v7004_v28 = vld [vmem:[%s10119_s9 + $0x44c] ss:$16 sps:$4 sm:$0xff]   ;;  %v6999_v29 = vld [vmem:[%s10119_s9 + $0x248] ss:$16 sps:$4 sm:$0xff]  }
  0x6b   :  { %1394 = vmatpush1.bf16.msra.mxu0 %v6906_v30  ;;  %v7002_v30 = vld [vmem:[%s10119_s9 + $0x448] ss:$16 sps:$4 sm:$0xff]  }
  0x6c   :  { %1437 = vmatpush1.bf16.msra.mxu1 %v6909_v31  ;;  %1395 = vmatprep.subr.bf16.mxu0 %v6914_v32  ;;  %v7007_v31 = vld [vmem:[%s10119_s9 + $0x22c] ss:$16 sps:$4 sm:$0xff]  }
  0x6d   :  { %1438 = vmatprep.subr.bf16.mxu1 %v6917_v33  ;;  %v7010_v32 = vld [vmem:[%s10119_s9 + $0x42c] ss:$16 sps:$4 sm:$0xff]   ;;  %v7005_v33 = vld [vmem:[%s10119_s9 + $0x228] ss:$16 sps:$4 sm:$0xff]  }
  0x6f   :  { %1396 = vmatpush1.bf16.msra.mxu0 %v6912_v35  ;;  %v7013_v35 = vld [vmem:[%s10119_s9 + $0x20c] ss:$16 sps:$4 sm:$0xff]  }
  0x70   :  { %1439 = vmatpush1.bf16.msra.mxu1 %v6915_v36  ;;  %1397 = vmatprep.subr.bf16.mxu0 %v6920_v37  ;;  %v7016_v36 = vld [vmem:[%s10119_s9 + $0x40c] ss:$16 sps:$4 sm:$0xff]   ;;  %v7011_v37 = vld [vmem:[%s10119_s9 + $0x208] ss:$16 sps:$4 sm:$0xff]  }
  0x71   :  { %1440 = vmatprep.subr.bf16.mxu1 %v6923_v38  ;;  %v7014_v38 = vld [vmem:[%s10119_s9 + $0x408] ss:$16 sps:$4 sm:$0xff]  }
  0x73   :  { %1398 = vmatpush2.bf16.msra.mxu0 %v6918_v39  ;;  %v7019_v39 = vld [vmem:[%s10119_s9 + $0x3ec] ss:$16 sps:$4 sm:$0xff]  }
  0x74   :  { %1441 = vmatpush2.bf16.msra.mxu1 %v6921_v40  ;;  %1399 = vmatprep.subr.bf16.mxu0 %v6926_v41  ;;  %v7022_v40 = vld [vmem:[%s10119_s9 + $0x5ec] ss:$16 sps:$4 sm:$0xff]   ;;  %v7017_v41 = vld [vmem:[%s10119_s9 + $0x3e8] ss:$16 sps:$4 sm:$0xff]  }
  0x75   :  { %1442 = vmatprep.subr.bf16.mxu1 %v6929_v42  ;;  %v7020_v42 = vld [vmem:[%s10119_s9 + $0x5e8] ss:$16 sps:$4 sm:$0xff]  }
  0x77   :  { %1400 = vmatpush2.bf16.msra.mxu0 %v6924_v43  ;;  %v7025_v43 = vld [vmem:[%s10119_s9 + $0x3cc] ss:$16 sps:$4 sm:$0xff]  }
  0x78   :  { %1443 = vmatpush2.bf16.msra.mxu1 %v6927_v44  ;;  %1401 = vmatprep.subr.bf16.mxu0 %v6932_v45  ;;  %v7028_v44 = vld [vmem:[%s10119_s9 + $0x5cc] ss:$16 sps:$4 sm:$0xff]   ;;  %v7023_v45 = vld [vmem:[%s10119_s9 + $0x3c8] ss:$16 sps:$4 sm:$0xff]  }
  0x79   :  { %1444 = vmatprep.subr.bf16.mxu1 %v6935_v46  ;;  %v7026_v46 = vld [vmem:[%s10119_s9 + $0x5c8] ss:$16 sps:$4 sm:$0xff]  }
  0x7b   :  { %1402 = vmatpush2.bf16.msra.mxu0 %v6930_v47  ;;  %v7031_v47 = vld [vmem:[%s10119_s9 + $0x3ac] ss:$16 sps:$4 sm:$0xff]  }
  0x7c   :  { %1445 = vmatpush2.bf16.msra.mxu1 %v6933_v48  ;;  %1403 = vmatprep.subr.bf16.mxu0 %v6938_v49  ;;  %v7034_v48 = vld [vmem:[%s10119_s9 + $0x5ac] ss:$16 sps:$4 sm:$0xff]   ;;  %v7029_v49 = vld [vmem:[%s10119_s9 + $0x3a8] ss:$16 sps:$4 sm:$0xff]  }
  0x7d   :  { %1446 = vmatprep.subr.bf16.mxu1 %v6941_v50  ;;  %v7032_v50 = vld [vmem:[%s10119_s9 + $0x5a8] ss:$16 sps:$4 sm:$0xff]  }
  0x7f   :  { %1404 = vmatpush2.bf16.msra.mxu0 %v6936_v52  ;;  %v7037_v52 = vld [vmem:[%s10119_s9 + $0x38c] ss:$16 sps:$4 sm:$0xff]  }
  0x80   :  { %1447 = vmatpush2.bf16.msra.mxu1 %v6939_v53  ;;  %1405 = vmatprep.subr.bf16.mxu0 %v6944_v54  ;;  %v7040_v53 = vld [vmem:[%s10119_s9 + $0x58c] ss:$16 sps:$4 sm:$0xff]   ;;  %v7035_v54 = vld [vmem:[%s10119_s9 + $0x388] ss:$16 sps:$4 sm:$0xff]  }
  0x81   :  { %1448 = vmatprep.subr.bf16.mxu1 %v6947_v55  ;;  %v7038_v55 = vld [vmem:[%s10119_s9 + $0x588] ss:$16 sps:$4 sm:$0xff]  }
  0x83   :  { %1406 = vmatpush2.bf16.msra.mxu0 %v6942_v56  ;;  %v7043_v56 = vld [vmem:[%s10119_s9 + $0x36c] ss:$16 sps:$4 sm:$0xff]  }
  0x84   :  { %1449 = vmatpush2.bf16.msra.mxu1 %v6945_v57  ;;  %1407 = vmatprep.subr.bf16.mxu0 %v6950_v58  ;;  %v7046_v57 = vld [vmem:[%s10119_s9 + $0x56c] ss:$16 sps:$4 sm:$0xff]   ;;  %v7041_v58 = vld [vmem:[%s10119_s9 + $0x368] ss:$16 sps:$4 sm:$0xff]  }
  0x85   :  { %1450 = vmatprep.subr.bf16.mxu1 %v6953_v59  ;;  %v7044_v59 = vld [vmem:[%s10119_s9 + $0x568] ss:$16 sps:$4 sm:$0xff]  }
  0x87   :  { %1408 = vmatpush2.bf16.msra.mxu0 %v6948_v60  ;;  %v7049_v60 = vld [vmem:[%s10119_s9 + $0x34c] ss:$16 sps:$4 sm:$0xff]  }
  0x88   :  { %1451 = vmatpush2.bf16.msra.mxu1 %v6951_v61  ;;  %1409 = vmatprep.subr.bf16.mxu0 %v6956_v62  ;;  %v7052_v61 = vld [vmem:[%s10119_s9 + $0x54c] ss:$16 sps:$4 sm:$0xff]   ;;  %v7047_v62 = vld [vmem:[%s10119_s9 + $0x348] ss:$16 sps:$4 sm:$0xff]  }
  0x89   :  { %1452 = vmatprep.subr.bf16.mxu1 %v6959_v63  ;;  %v7050_v63 = vld [vmem:[%s10119_s9 + $0x548] ss:$16 sps:$4 sm:$0xff]  }
  0x8b   :  { %1410 = vmatpush2.bf16.msra.mxu0 %v6954_v0  ;;  %v7055_v0 = vld [vmem:[%s10119_s9 + $0x32c] ss:$16 sps:$4 sm:$0xff]  }
  0x8c   :  { %1453 = vmatpush2.bf16.msra.mxu1 %v6957_v1  ;;  %1411 = vmatprep.subr.bf16.mxu0 %v6962_v2  ;;  %v7058_v1 = vld [vmem:[%s10119_s9 + $0x52c] ss:$16 sps:$4 sm:$0xff]   ;;  %v7053_v2 = vld [vmem:[%s10119_s9 + $0x328] ss:$16 sps:$4 sm:$0xff]  }
  0x8d   :  { %1454 = vmatprep.subr.bf16.mxu1 %v6965_v3  ;;  %v7056_v3 = vld [vmem:[%s10119_s9 + $0x528] ss:$16 sps:$4 sm:$0xff]  }
  0x8f   :  { %1412 = vmatpush2.bf16.msra.mxu0 %v6960_v6  ;;  %v7061_v6 = vld [vmem:[%s10119_s9 + $0x30c] ss:$16 sps:$4 sm:$0xff]  }
  0x90   :  { %1455 = vmatpush2.bf16.msra.mxu1 %v6963_v7  ;;  %1467 = vmatprep.subr.bf16.mxu0 %v6971_v8  ;;  %v7064_v7 = vld [vmem:[%s10119_s9 + $0x50c] ss:$16 sps:$4 sm:$0xff]   ;;  %v7059_v8 = vld [vmem:[%s10119_s9 + $0x308] ss:$16 sps:$4 sm:$0xff]  }
  0x91   :  { %1510 = vmatprep.subr.bf16.mxu1 %v6974_v9  ;;  %v7062_v9 = vld [vmem:[%s10119_s9 + $0x508] ss:$16 sps:$4 sm:$0xff]  }
  0x92   :  { %1414 = vmatmul.mubr.bf16.vlgmr.msra.gmra.mxu0 %v8273_v10 }
  0x93   :  { %1457 = vmatmul.mubr.bf16.vlgmr.msra.gmra.mxu1 %v8063_v4  ;;  %1468 = vmatpush1.bf16.msra.mxu0 %v6969_v11  ;;  %v6986_v4 = vld [vmem:[%s10119_s9 + $0x4ac] ss:$16 sps:$4 sm:$0xff]  }
  0x94   :  { %1511 = vmatpush1.bf16.msra.mxu1 %v6972_v12  ;;  %1469 = vmatprep.subr.bf16.mxu0 %v6977_v13  ;;  %v7065_v11 = vld [vmem:[%s10121_s0 + $0x78] sm:$0xff]   ;;  %v7067_v13 = vld [vmem:[%s10121_s0 + $0x70] sm:$0xff]  }
  0x95   :  { %1512 = vmatprep.subr.bf16.mxu1 %v6980_v14  ;;  %1499 = vmatprep.mubr.bf16.mxu0 %v8009_v51  ;;  %v6992_v51 = vld [vmem:[%s10119_s9 + $0x48c] ss:$16 sps:$4 sm:$0xff]   ;;  %v7068_v14 = vld [vmem:[%s10121_s0 + $0x30] sm:$0xff]  }
  0x96   :  { %1542 = vmatprep.mubr.bf16.mxu1 %v8159_v34  ;;  %v7008_v34 = vld [vmem:[%s10119_s9 + $0x428] ss:$16 sps:$4 sm:$0xff]   ;;  %s10126_s9 = sld [smem:[#allocation10_spill]] }
  0x97   :  { %1470 = vmatpush1.bf16.msra.mxu0 %v6975_v15  ;;  %v7066_v12 = vld [vmem:[%s10121_s0 + $0x38] sm:$0xff]   ;;  %v7069_v15 = vld [vmem:[%s10121_s0 + $0x68] sm:$0xff]  }
  0x98   :  { %1513 = vmatpush1.bf16.msra.mxu1 %v6978_v16  ;;  %1471 = vmatprep.subr.bf16.mxu0 %v6983_v17  ;;  %v7070_v16 = vld [vmem:[%s10121_s0 + $0x28] sm:$0xff]   ;;  %v7073_v17 = vld [vmem:[%s10121_s0 + $0x58] sm:$0xff]  }
  0x99   :  { %1514 = vmatprep.subr.bf16.mxu1 %v6986_v4  ;;  %v7074_v4 = vld [vmem:[%s10121_s0 + $0x18] sm:$0xff]  }
  0x9b   :  { %1472 = vmatpush1.bf16.msra.mxu0 %v6981_v18  ;;  %v7075_v18 = vld [vmem:[%s10121_s0 + $0x50] sm:$0xff]  }
  0x9c   :  { %1515 = vmatpush1.bf16.msra.mxu1 %v6984_v19  ;;  %1473 = vmatprep.subr.bf16.mxu0 %v6989_v20  ;;  %v7081_v19 = vld [vmem:[%s10121_s0 + $0xf8] sm:$0xff]  }
  0x9d   :  { %1516 = vmatprep.subr.bf16.mxu1 %v6992_v51  ;;  %v7082_v20 = vld [vmem:[%s10121_s0 + $0xb8] sm:$0xff]   ;;  %v7083_v51 = vld [vmem:[%s10121_s0 + $0xf0] sm:$0xff]  }
  0x9f   :  { %1474 = vmatpush1.bf16.msra.mxu0 %v6987_v21  ;;  %v7076_v21 = vld [vmem:[%s10121_s0 + $0x10] sm:$0xff]  }
  0xa0   :  { %1517 = vmatpush1.bf16.msra.mxu1 %v6990_v22  ;;  %1475 = vmatprep.subr.bf16.mxu0 %v6995_v23  ;;  %v7084_v22 = vld [vmem:[%s10121_s0 + $0xb0] sm:$0xff]   ;;  %v7077_v23 = vld [vmem:[%s10121_s0 + $0x48] sm:$0xff]  }
  0xa1   :  { %1518 = vmatprep.subr.bf16.mxu1 %v6998_v24  ;;  %v7085_v24 = vld [vmem:[%s10121_s0 + $0xe8] sm:$0xff]  }
  0xa3   :  { %1476 = vmatpush1.bf16.msra.mxu0 %v6993_v25  ;;  %v7078_v25 = vld [vmem:[%s10121_s0 + $0x8] sm:$0xff]  }
  0xa4   :  { %1519 = vmatpush1.bf16.msra.mxu1 %v6996_v26  ;;  %1477 = vmatprep.subr.bf16.mxu0 %v7001_v27  ;;  %v7086_v26 = vld [vmem:[%s10121_s0 + $0xa8] sm:$0xff]   ;;  %v7079_v27 = vld [vmem:[%s10121_s0 + $0x40] sm:$0xff]  }
  0xa5   :  { %1520 = vmatprep.subr.bf16.mxu1 %v7004_v28  ;;  %v7087_v28 = vld [vmem:[%s10121_s0 + $0xe0] sm:$0xff]  }
  0xa7   :  { %1478 = vmatpush1.bf16.msra.mxu0 %v6999_v29  ;;  %v7080_v29 = vld [vmem:[%s10121_s0] sm:$0xff]  }
  0xa8   :  { %1521 = vmatpush1.bf16.msra.mxu1 %v7002_v30  ;;  %1479 = vmatprep.subr.bf16.mxu0 %v7007_v31  ;;  %v7088_v30 = vld [vmem:[%s10121_s0 + $0xa0] sm:$0xff]   ;;  %v7089_v31 = vld [vmem:[%s10121_s0 + $0xd8] sm:$0xff]  }
  0xa9   :  { %1522 = vmatprep.subr.bf16.mxu1 %v7010_v32  ;;  %v7090_v32 = vld [vmem:[%s10121_s0 + $0x98] sm:$0xff]  }
  0xab   :  { %1480 = vmatpush1.bf16.msra.mxu0 %v7005_v33  ;;  %v7091_v33 = vld [vmem:[%s10121_s0 + $0xd0] sm:$0xff]  }
  0xac   :  { %1523 = vmatpush1.bf16.msra.mxu1 %v7008_v34  ;;  %1481 = vmatprep.subr.bf16.mxu0 %v7013_v35  ;;  %v7092_v34 = vld [vmem:[%s10121_s0 + $0x90] sm:$0xff]   ;;  %v7093_v35 = vld [vmem:[%s10121_s0 + $0xc8] sm:$0xff]  }
  0xad   :  { %1524 = vmatprep.subr.bf16.mxu1 %v7016_v36  ;;  %v7094_v36 = vld [vmem:[%s10121_s0 + $0x88] sm:$0xff]  }
  0xaf   :  { %1482 = vmatpush1.bf16.msra.mxu0 %v7011_v37  ;;  %v7095_v37 = vld [vmem:[%s10121_s0 + $0xc0] sm:$0xff]  }
  0xb0   :  { %1525 = vmatpush1.bf16.msra.mxu1 %v7014_v38  ;;  %1483 = vmatprep.subr.bf16.mxu0 %v7019_v39  ;;  %v7096_v38 = vld [vmem:[%s10121_s0 + $0x80] sm:$0xff]   ;;  %v285_v39 = vlaneseq }
  0xb1   :  { %1526 = vmatprep.subr.bf16.mxu1 %v7022_v40 }
  0xb3   :  { %1484 = vmatpush2.bf16.msra.mxu0 %v7017_v41  ;;  %v8563_v41 = vshrl.u32 %v285_v39, 7 }
  0xb4   :  { %1527 = vmatpush2.bf16.msra.mxu1 %v7020_v42  ;;  %1485 = vmatprep.subr.bf16.mxu0 %v7025_v43 }
  0xb5   :  { %1528 = vmatprep.subr.bf16.mxu1 %v7028_v44  ;;  %v8566_v43 = vsub.s32 1, %v8563_v41  ;;  %v283_v44 = vld [vmem:[%s10122_s30] sm:$0xf] }
  0xb7   :  { %1486 = vmatpush2.bf16.msra.mxu0 %v7023_v45  ;;  %v8572_v45 = vsub.s32 0, %v8563_v41 }
  0xb8   :  { %1529 = vmatpush2.bf16.msra.mxu1 %v7026_v46  ;;  %1487 = vmatprep.subr.bf16.mxu0 %v7031_v47 }
  0xb9   :  { %1530 = vmatprep.subr.bf16.mxu1 %v7034_v48  ;;  %v292_v48 = vrot.slane %v283_v44, %v8566_v43 }
  0xbb   :  { %1488 = vmatpush2.bf16.msra.mxu0 %v7029_v49  ;;  %v288_v49 = vrot.slane %v283_v44, %v8572_v45 }
  0xbc   :  { %1531 = vmatpush2.bf16.msra.mxu1 %v7032_v50  ;;  %1489 = vmatprep.subr.bf16.mxu0 %v7037_v52 }
  0xbd   :  { %1532 = vmatprep.subr.bf16.mxu1 %v7040_v53 }
  0xbf   :  { %1490 = vmatpush2.bf16.msra.mxu0 %v7035_v54 }
  0xc0   :  { %1533 = vmatpush2.bf16.msra.mxu1 %v7038_v55  ;;  %1491 = vmatprep.subr.bf16.mxu0 %v7043_v56 }
  0xc1   :  { %1534 = vmatprep.subr.bf16.mxu1 %v7046_v57 }
  0xc3   :  { %1492 = vmatpush2.bf16.msra.mxu0 %v7041_v58 }
  0xc4   :  { %1535 = vmatpush2.bf16.msra.mxu1 %v7044_v59  ;;  %1493 = vmatprep.subr.bf16.mxu0 %v7049_v60 }
  0xc5   :  { %1536 = vmatprep.subr.bf16.mxu1 %v7052_v61 }
  0xc7   :  { %1494 = vmatpush2.bf16.msra.mxu0 %v7047_v62 }
  0xc8   :  { %1537 = vmatpush2.bf16.msra.mxu1 %v7050_v63  ;;  %1495 = vmatprep.subr.bf16.mxu0 %v7055_v0 }
  0xc9   :  { %1538 = vmatprep.subr.bf16.mxu1 %v7058_v1 }
  0xcb   :  { %1496 = vmatpush2.bf16.msra.mxu0 %v7053_v2 }
  0xcc   :  { %1539 = vmatpush2.bf16.msra.mxu1 %v7056_v3  ;;  %1497 = vmatprep.subr.bf16.mxu0 %v7061_v6 }
  0xcd   :  { %1540 = vmatprep.subr.bf16.mxu1 %v7064_v7 }
  0xcf   :  { %1498 = vmatpush2.bf16.msra.mxu0 %v7059_v8 }
  0xd0   :  { %1541 = vmatpush2.bf16.msra.mxu1 %v7062_v9  ;;  %6506 = vmatprep.subr.bf16.mxu0 %v7065_v11 }
  0xd1   :  { %6528 = vmatprep.subr.bf16.mxu1 %v7081_v19 }
  0xd2   :  { %1500 = vmatmul.mubr.bf16.vlgmr.msra.gmra.mxu0 %v8068_v5  ;;  %v7071_v5 = vld [vmem:[%s10121_s0 + $0x60] sm:$0xff]  }
  0xd3   :  { %1543 = vmatmul.mubr.bf16.vlgmr.msra.gmra.mxu1 %v8273_v10  ;;  %6507 = vmatpush3.bf16.msra.mxu0 %v7066_v12  ;;  %v7072_v10 = vld [vmem:[%s10121_s0 + $0x20] sm:$0xff]  }
  0xd4   :  { %6508 = vmatprep.subr.bf16.mxu0 %v7067_v13  ;;  %6529 = vmatpush3.bf16.msra.mxu1 %v7082_v20 }
  0xd5   :  { %6530 = vmatprep.subr.bf16.mxu1 %v7083_v51 }
  0xd7   :  { %6509 = vmatpush3.bf16.msra.mxu0 %v7068_v14 }
  0xd8   :  { %6510 = vmatprep.subr.bf16.mxu0 %v7069_v15  ;;  %6531 = vmatpush3.bf16.msra.mxu1 %v7084_v22 }
  0xd9   :  { %6532 = vmatprep.subr.bf16.mxu1 %v7085_v24 }
  0xdb   :  { %6511 = vmatpush3.bf16.msra.mxu0 %v7070_v16 }
  0xdc   :  { %6512 = vmatprep.subr.bf16.mxu0 %v7071_v5  ;;  %6533 = vmatpush3.bf16.msra.mxu1 %v7086_v26 }
  0xdd   :  { %6534 = vmatprep.subr.bf16.mxu1 %v7087_v28 }
  0xdf   :  { %6513 = vmatpush3.bf16.msra.mxu0 %v7072_v10  ;;  %v299_v10 = vsub.s32 3, %v8563_v41 }
  0xe0   :  { %6514 = vmatprep.subr.bf16.mxu0 %v7073_v17  ;;  %6535 = vmatpush3.bf16.msra.mxu1 %v7088_v30  ;;  %v8578_v17 = vsub.s32 2, %v8563_v41 }
  0xe1   :  { %6536 = vmatprep.subr.bf16.mxu1 %v7089_v31 }
  0xe2   :  { %v296_v19 = vrot.slane %v283_v44, %v8578_v17 }
  0xe3   :  { %6515 = vmatpush3.bf16.msra.mxu0 %v7074_v4 }
  0xe4   :  { %6516 = vmatprep.subr.bf16.mxu0 %v7075_v18  ;;  %6537 = vmatpush3.bf16.msra.mxu1 %v7090_v32  ;;  %v300_v18 = vrot.slane %v283_v44, %v299_v10 }
  0xe5   :  { %6538 = vmatprep.subr.bf16.mxu1 %v7091_v33 }
  0xe7   :  { %6517 = vmatpush3.bf16.msra.mxu0 %v7076_v21 }
  0xe8   :  { %6518 = vmatprep.subr.bf16.mxu0 %v7077_v23  ;;  %6539 = vmatpush3.bf16.msra.mxu1 %v7092_v34 }
  0xe9   :  { %6540 = vmatprep.subr.bf16.mxu1 %v7093_v35 }
  0xeb   :  { %6519 = vmatpush3.bf16.msra.mxu0 %v7078_v25 }
  0xec   :  { %6520 = vmatprep.subr.bf16.mxu0 %v7079_v27  ;;  %6541 = vmatpush3.bf16.msra.mxu1 %v7094_v36 }
  0xed   :  { %6542 = vmatprep.subr.bf16.mxu1 %v7095_v37 }
  0xef   :  { %6521 = vmatpush3.bf16.msra.mxu0 %v7080_v29 }
  0xf0   :  { %6543 = vmatpush3.bf16.msra.mxu1 %v7096_v38 }
 0x112   :  { %v1329_v40 = vpop.f32.mrf.mxu0 }
 0x113   :  { %v1372_v46 = vpop.f32.mrf.mxu1  ;;  %v1330_v55 = vadd.f32 %v1329_v40, %v288_v49 }
 0x114   :  { %v1331_v42 = vpop.f32.mrf.mxu0 }
 0x115   :  { %v1374_v50 = vpop.f32.mrf.mxu1  ;;  %v1332_v53 = vadd.f32 %v1331_v42, %v292_v48  ;;  %v1373_v62 = vadd.f32 %v1372_v46, %v1330_v55  ;;  %v7101_v55 = vld [vmem:[%s10123_s6 + $0x18] sm:$0xff]  }
 0x116   :  { %v1333_v47 = vpop.f32.mrf.mxu0 }
 0x117   :  { %v1334_v54 = vadd.f32 %v1333_v47, %v288_v49  ;;  %v1376_v56 = vpop.f32.mrf.mxu1  ;;  %v1375_v60 = vadd.f32 %v1374_v50, %v1332_v53  ;;  %v7718_v49 = vmov 0.0   ;;  %v7097_v50 = vld [vmem:[%s10123_s6 + $0x38] sm:$0xff]   ;;  %v7099_v53 = vld [vmem:[%s10123_s6 + $0x28] sm:$0xff]  }
 0x118   :  { %v1335_v52 = vpop.f32.mrf.mxu0  ;;  %6691 = vmatprep.subr.bf16.mxu0 %v7718_v49  ;;  %6711 = vmatprep.subr.bf16.mxu1 %v7718_v49 }
 0x119   :  { %v1336_v58 = vadd.f32 %v1335_v52, %v292_v48  ;;  %v1377_v61 = vadd.f32 %v1376_v56, %v1334_v54  ;;  %v1378_v63 = vpop.f32.mrf.mxu1  ;;  %v7098_v52 = vld [vmem:[%s10123_s6 + $0x30] sm:$0xff]   ;;  %v7100_v54 = vld [vmem:[%s10123_s6 + $0x20] sm:$0xff]  }
 0x11a   :  { %v7102_v56 = vld [vmem:[%s10123_s6 + $0x10] sm:$0xff]  }
 0x11b   :  { %v1379_v1 = vadd.f32 %v1378_v63, %v1336_v58  ;;  %v7104_v58 = vld [vmem:[%s10123_s6] sm:$0xff]  }
 0x152   :  { %v1415_v57 = vpop.f32.mrf.mxu0 }
 0x153   :  { %v1416_v6 = vadd.f32 %v1415_v57, %v1373_v62  ;;  %v1458_v16 = vpop.f32.mrf.mxu1  ;;  %v7103_v57 = vld [vmem:[%s10123_s6 + $0x8] sm:$0xff]  }
 0x154   :  { %v1417_v59 = vpop.f32.mrf.mxu0  ;;  %v1459_v23 = vadd.f32 %v1458_v16, %v296_v19 }
 0x155   :  { %v1418_v2 = vadd.f32 %v1417_v59, %v1375_v60  ;;  %v1553_v13 = vmax.f32 %v1416_v6, 0.0  ;;  %v1460_v5 = vpop.f32.mrf.mxu1 }
 0x156   :  { %v1419_v0 = vpop.f32.mrf.mxu0  ;;  %v1461_v22 = vadd.f32 %v1460_v5, %v300_v18 }
 0x157   :  { %v1420_v3 = vadd.f32 %v1419_v0, %v1377_v61  ;;  %v1554_v11 = vmax.f32 %v1418_v2, 0.0  ;;  %v1462_v4 = vpop.f32.mrf.mxu1 }
 0x158   :  { %v1421_v7 = vpop.f32.mrf.mxu0  ;;  %v1463_v26 = vadd.f32 %v1462_v4, %v296_v19  ;;  %v6090_v4 = vld [vmem:[%s10125_s27] ss:$0 sm:$0xff] }
 0x159   :  { %v1422_v8 = vadd.f32 %v1421_v7, %v1379_v1  ;;  %v1557_v9 = vmax.f32 %v1420_v3, 0.0  ;;  %v1464_v20 = vpop.f32.mrf.mxu1  ;;  %v6049_v1 = vld [vmem:[%s10124_s26] ss:$0 sm:$0xff] }
 0x15a   :  { %v1465_v31 = vadd.f32 %v1464_v20, %v300_v18 }
 0x15b   :  { %v1558_v12 = vmax.f32 %v1422_v8, 0.0  ;;  %v1561_v15 = vpack.c.bf16 %v1557_v9, %v1553_v13 }
 0x15d   :  { %v1562_v14 = vpack.c.bf16 %v1558_v12, %v1554_v11 }
 0x15f   :  { %1860 = vmatprep.mubr.bf16.mxu0 %v1562_v14 }
 0x160   :  { %1861 = vmatmul.mubr.bf16.vlgmr.msra.gmra.mxu0 %v1561_v15 }
 0x161   :  { %6692 = vmatpush3.bf16.msra.mxu0 %v7097_v50  ;;  %6707 = vmatprep.mubr.msk.bf16.mxu0 %vm7719_vm0, %v7718_v49  ;;  %v7130_v50 = vld [vmem:[%s10127_s4 + $0x260] ss:$16 sps:$4 sm:$0xff]  }
 0x162   :  { %6693 = vmatprep.subr.bf16.mxu0 %v7718_v49 }
 0x165   :  { %6694 = vmatpush3.bf16.msra.mxu0 %v7098_v52  ;;  %v7132_v52 = vld [vmem:[%s10127_s4 + $0x264] ss:$16 sps:$4 sm:$0xff]  }
 0x166   :  { %6695 = vmatprep.subr.bf16.mxu0 %v7718_v49 }
 0x169   :  { %6696 = vmatpush3.bf16.msra.mxu0 %v7099_v53  ;;  %v7136_v53 = vld [vmem:[%s10127_s4 + $0x240] ss:$16 sps:$4 sm:$0xff]  }
 0x16a   :  { %6697 = vmatprep.subr.bf16.mxu0 %v7718_v49 }
 0x16d   :  { %6698 = vmatpush3.bf16.msra.mxu0 %v7100_v54  ;;  %v7138_v54 = vld [vmem:[%s10127_s4 + $0x244] ss:$16 sps:$4 sm:$0xff]  }
 0x16e   :  { %6699 = vmatprep.subr.bf16.mxu0 %v7718_v49 }
 0x171   :  { %6700 = vmatpush3.bf16.msra.mxu0 %v7101_v55  ;;  %v7142_v55 = vld [vmem:[%s10127_s4 + $0x220] ss:$16 sps:$4 sm:$0xff]  }
 0x172   :  { %6701 = vmatprep.subr.bf16.mxu0 %v7718_v49 }
 0x175   :  { %6702 = vmatpush3.bf16.msra.mxu0 %v7102_v56  ;;  %v7144_v56 = vld [vmem:[%s10127_s4 + $0x224] ss:$16 sps:$4 sm:$0xff]  }
 0x176   :  { %6703 = vmatprep.subr.bf16.mxu0 %v7718_v49 }
 0x179   :  { %6704 = vmatpush3.bf16.msra.mxu0 %v7103_v57  ;;  %v7148_v57 = vld [vmem:[%s10127_s4 + $0x200] ss:$16 sps:$4 sm:$0xff]  }
 0x17a   :  { %6705 = vmatprep.subr.bf16.mxu0 %v7718_v49 }
 0x17d   :  { %6706 = vmatpush3.bf16.msra.mxu0 %v7104_v58  ;;  %v7150_v58 = vld [vmem:[%s10127_s4 + $0x204] ss:$16 sps:$4 sm:$0xff]  }
 0x192   :  { %v1501_v51 = vpop.f32.mrf.mxu0 }
 0x193   :  { %v1544_v21 = vpop.f32.mrf.mxu1  ;;  %v1502_v28 = vadd.f32 %v1501_v51, %v1459_v23 }
 0x194   :  { %v1503_v24 = vpop.f32.mrf.mxu0 }
 0x195   :  { %v1546_v25 = vpop.f32.mrf.mxu1  ;;  %v1504_v27 = vadd.f32 %v1503_v24, %v1461_v22  ;;  %v1545_v37 = vadd.f32 %v1544_v21, %v1502_v28 }
 0x196   :  { %v1505_v29 = vpop.f32.mrf.mxu0 }
 0x197   :  { %v1548_v30 = vpop.f32.mrf.mxu1  ;;  %v1506_v32 = vadd.f32 %v1505_v29, %v1463_v26  ;;  %v1547_v34 = vadd.f32 %v1546_v25, %v1504_v27  ;;  %v1555_v46 = vmax.f32 %v1545_v37, 0.0 }
 0x198   :  { %v1507_v33 = vpop.f32.mrf.mxu0 }
 0x199   :  { %v1549_v35 = vadd.f32 %v1548_v30, %v1506_v32  ;;  %v1508_v36 = vadd.f32 %v1507_v33, %v1465_v31  ;;  %v1550_v38 = vpop.f32.mrf.mxu1  ;;  %v1556_v42 = vmax.f32 %v1547_v34, 0.0 }
 0x19b   :  { %v1551_v39 = vadd.f32 %v1550_v38, %v1508_v36  ;;  %v1559_v40 = vmax.f32 %v1549_v35, 0.0  ;;  %v7105_v35 = vld [vmem:[%s10126_s9] sm:$0x1f]  }
 0x19c   :  { %v7106_v36 = vld [vmem:[%s10127_s4 + $0x2e0] ss:$16 sps:$4 sm:$0xff]   ;;  %v8654_v37 = vsel %vm2114_vm2, %v7105_v35, 0  ;;  %v7108_v38 = vld [vmem:[%s10127_s4 + $0x2e4] ss:$16 sps:$4 sm:$0xff]  }
 0x19d   :  { %v1560_v44 = vmax.f32 %v1551_v39, 0.0  ;;  %v1563_v48 = vpack.c.bf16 %v1559_v40, %v1555_v46  ;;  %v7111_v39 = vld [vmem:[%s10127_s4 + $0xe4] ss:$16 sps:$4 sm:$0xff]   ;;  %3438 = vmatprep.subr.bf16.mxu0 %v7108_v38  ;;  %v7112_v40 = vld [vmem:[%s10127_s4 + $0x2c0] ss:$16 sps:$4 sm:$0xff]  }
 0x19e   :  { %v7120_v46 = vld [vmem:[%s10127_s4 + $0x2a4] ss:$16 sps:$4 sm:$0xff]   ;;  %v7252_v35 = vld [vmem:[%s10127_s4 + $0xc] ss:$16 sps:$4 sm:$0xff]  }
 0x19f   :  { %v1564_v47 = vpack.c.bf16 %v1560_v44, %v1556_v42  ;;  %v7114_v42 = vld [vmem:[%s10127_s4 + $0x2c4] ss:$16 sps:$4 sm:$0xff]   ;;  %v7118_v44 = vld [vmem:[%s10127_s4 + $0x2a0] ss:$16 sps:$4 sm:$0xff]   ;;  %v7258_v38 = vld [vmem:[%s10127_s4 + $0x1ec] ss:$16 sps:$4 sm:$0xff]  }
 0x1a1   :  { %1901 = vmatprep.mubr.bf16.mxu1 %v1564_v47  ;;  %v7124_v47 = vld [vmem:[%s10127_s4 + $0x280] ss:$16 sps:$4 sm:$0xff]  }
 0x1a2   :  { %1902 = vmatmul.mubr.bf16.vlgmr.msra.gmra.mxu1 %v1563_v48  ;;  %v7126_v48 = vld [vmem:[%s10127_s4 + $0x284] ss:$16 sps:$4 sm:$0xff]  }
 0x1a3   :  { %6713 = vmatprep.mubr.msk.bf16.mxu1 %vm7719_vm0, %v7718_v49  ;;  %6712 = vmatpush3.bf16.msra.mxu1 %v8654_v37 }
 0x1a4   :  { %3395 = vmatprep.subr.bf16.mxu1 %v7111_v39  ;;  %v7256_v39 = vld [vmem:[%s10127_s4 + $0x1e8] ss:$16 sps:$4 sm:$0xff]  }
 0x220   :  { %v6522_v59 = vpop.f32.mrf.mxu0 }
 0x222   :  { %v6523_v60 = vpop.f32.mrf.mxu0 }
 0x223   :  { %v6524_v0 = vadd.f32 %v6523_v60, %v6522_v59  ;;  %v7154_v59 = vld [vmem:[%s10127_s4 + $0x3e0] ss:$16 sps:$4 sm:$0xff]   ;;  %v7156_v60 = vld [vmem:[%s10127_s4 + $0x3e4] ss:$16 sps:$4 sm:$0xff]  }
 0x224   :  { %v6525_v61 = vpop.f32.mrf.mxu0 }
 0x225   :  { %v1863_v8 = vadd.f32 %v6524_v0, %v6049_v1  ;;  %v7168_v0 = vld [vmem:[%s10127_s4 + $0x3a4] ss:$16 sps:$4 sm:$0xff]  }
 0x226   :  { %v6526_v62 = vpop.f32.mrf.mxu0 }
 0x227   :  { %v6527_v3 = vadd.f32 %v6526_v62, %v6525_v61  ;;  %v7160_v61 = vld [vmem:[%s10127_s4 + $0x3c0] ss:$16 sps:$4 sm:$0xff]   ;;  %v7162_v62 = vld [vmem:[%s10127_s4 + $0x3c4] ss:$16 sps:$4 sm:$0xff]  }
 0x229   :  { %v1866_v11 = vadd.f32 %v6527_v3, %v6049_v1  ;;  %v7172_v1 = vld [vmem:[%s10127_s4 + $0x380] ss:$16 sps:$4 sm:$0xff]  }
 0x22a   :  { %v7178_v3 = vld [vmem:[%s10127_s4 + $0x360] ss:$16 sps:$4 sm:$0xff]  }
 0x262   :  { %v6544_v63 = vpop.f32.mrf.mxu1 }
 0x264   :  { %v6545_v2 = vpop.f32.mrf.mxu1 }
 0x265   :  { %v6546_v6 = vadd.f32 %v6545_v2, %v6544_v63  ;;  %v7166_v63 = vld [vmem:[%s10127_s4 + $0x3a0] ss:$16 sps:$4 sm:$0xff]   ;;  %v7174_v2 = vld [vmem:[%s10127_s4 + $0x384] ss:$16 sps:$4 sm:$0xff]  }
 0x266   :  { %v6547_v7 = vpop.f32.mrf.mxu1 }
 0x267   :  { %v1904_v12 = vadd.f32 %v6546_v6, %v1863_v8  ;;  %v7180_v6 = vld [vmem:[%s10127_s4 + $0x364] ss:$16 sps:$4 sm:$0xff]  }
 0x268   :  { %v6548_v9 = vpop.f32.mrf.mxu1  ;;  %v7186_v8 = vld [vmem:[%s10127_s4 + $0x344] ss:$16 sps:$4 sm:$0xff]  }
 0x269   :  { %v6549_v13 = vadd.f32 %v6548_v9, %v6547_v7  ;;  %v8623_v15 = vmax.f32 %v1904_v12, 0.0  ;;  %v7184_v7 = vld [vmem:[%s10127_s4 + $0x340] ss:$16 sps:$4 sm:$0xff]  }
 0x26a   :  { %v7190_v9 = vld [vmem:[%s10127_s4 + $0x320] ss:$16 sps:$4 sm:$0xff]  }
 0x26b   :  { %v1907_v14 = vadd.f32 %v6549_v13, %v1866_v11  ;;  %v7192_v11 = vld [vmem:[%s10127_s4 + $0x324] ss:$16 sps:$4 sm:$0xff]   ;;  %v7196_v12 = vld [vmem:[%s10127_s4 + $0x300] ss:$16 sps:$4 sm:$0xff]  }
 0x26c   :  { %v7198_v13 = vld [vmem:[%s10127_s4 + $0x304] ss:$16 sps:$4 sm:$0xff]  }
 0x26d   :  { %v8625_v16 = vmax.f32 %v1907_v14, 0.0  ;;  %v8756_v14 = vld [vmem:[%s10128_s8 + $0x8] ss:$24 sps:$4 sm:$0xff]  }
 0x26f   :  { %v1912_v5 = vpack.c.bf16 %v8625_v16, %v8623_v15 }
 0x271   :  { %6708 = vmatmul.mubr.bf16.vlgmr.msra.gmra.mxu0 %v1912_v5  ;;  %v8761_v5 = vld [vmem:[%s10128_s8 + $0xc] ss:$24 sps:$4 sm:$0xff]  }
 0x272   :  { %3439 = vmatpush1.bf16.msra.mxu0 %v7106_v36  ;;  %3470 = vmatprep.mubr.bf16.mxu0 %v8761_v5  ;;  %v7250_v36 = vld [vmem:[%s10127_s4 + $0x8] ss:$16 sps:$4 sm:$0xff]  }
 0x273   :  { %3440 = vmatprep.subr.bf16.mxu0 %v7114_v42  ;;  %v7262_v42 = vld [vmem:[%s10127_s4 + $0x1c8] ss:$16 sps:$4 sm:$0xff]  }
 0x276   :  { %3441 = vmatpush1.bf16.msra.mxu0 %v7112_v40  ;;  %v7264_v40 = vld [vmem:[%s10127_s4 + $0x1cc] ss:$16 sps:$4 sm:$0xff]  }
 0x277   :  { %3442 = vmatprep.subr.bf16.mxu0 %v7120_v46  ;;  %v7268_v46 = vld [vmem:[%s10127_s4 + $0x1a8] ss:$16 sps:$4 sm:$0xff]  }
 0x27a   :  { %3443 = vmatpush1.bf16.msra.mxu0 %v7118_v44  ;;  %v7270_v44 = vld [vmem:[%s10127_s4 + $0x1ac] ss:$16 sps:$4 sm:$0xff]  }
 0x27b   :  { %3444 = vmatprep.subr.bf16.mxu0 %v7126_v48  ;;  %v7274_v48 = vld [vmem:[%s10127_s4 + $0x188] ss:$16 sps:$4 sm:$0xff]  }
 0x27e   :  { %3445 = vmatpush1.bf16.msra.mxu0 %v7124_v47  ;;  %v7276_v47 = vld [vmem:[%s10127_s4 + $0x18c] ss:$16 sps:$4 sm:$0xff]  }
 0x27f   :  { %3446 = vmatprep.subr.bf16.mxu0 %v7132_v52  ;;  %v7282_v52 = vld [vmem:[%s10127_s4 + $0x16c] ss:$16 sps:$4 sm:$0xff]  }
 0x282   :  { %3447 = vmatpush1.bf16.msra.mxu0 %v7130_v50 }
 0x283   :  { %3448 = vmatprep.subr.bf16.mxu0 %v7138_v54 }
 0x286   :  { %3449 = vmatpush1.bf16.msra.mxu0 %v7136_v53  ;;  %v7280_v53 = vld [vmem:[%s10127_s4 + $0x168] ss:$16 sps:$4 sm:$0xff]  }
 0x287   :  { %3450 = vmatprep.subr.bf16.mxu0 %v7144_v56  ;;  %v7286_v56 = vld [vmem:[%s10127_s4 + $0x148] ss:$16 sps:$4 sm:$0xff]  }
 0x28a   :  { %3451 = vmatpush1.bf16.msra.mxu0 %v7142_v55  ;;  %v7288_v55 = vld [vmem:[%s10127_s4 + $0x14c] ss:$16 sps:$4 sm:$0xff]  }
 0x28b   :  { %3452 = vmatprep.subr.bf16.mxu0 %v7150_v58  ;;  %v7292_v58 = vld [vmem:[%s10127_s4 + $0x128] ss:$16 sps:$4 sm:$0xff]  }
 0x28e   :  { %3453 = vmatpush1.bf16.msra.mxu0 %v7148_v57  ;;  %v7294_v57 = vld [vmem:[%s10127_s4 + $0x12c] ss:$16 sps:$4 sm:$0xff]  }
 0x28f   :  { %3454 = vmatprep.subr.bf16.mxu0 %v7156_v60  ;;  %v7298_v60 = vld [vmem:[%s10127_s4 + $0x108] ss:$16 sps:$4 sm:$0xff]  }
 0x292   :  { %3455 = vmatpush2.bf16.msra.mxu0 %v7154_v59  ;;  %v7300_v59 = vld [vmem:[%s10127_s4 + $0x10c] ss:$16 sps:$4 sm:$0xff]  }
 0x293   :  { %3456 = vmatprep.subr.bf16.mxu0 %v7162_v62  ;;  %v7306_v62 = vld [vmem:[%s10127_s4 + $0x4ec] ss:$16 sps:$4 sm:$0xff]  }
 0x296   :  { %3457 = vmatpush2.bf16.msra.mxu0 %v7160_v61 }
 0x297   :  { %3458 = vmatprep.subr.bf16.mxu0 %v7168_v0  ;;  %v7304_v0 = vld [vmem:[%s10127_s4 + $0x4e8] ss:$16 sps:$4 sm:$0xff]  }
 0x29a   :  { %3459 = vmatpush2.bf16.msra.mxu0 %v7166_v63 }
 0x29b   :  { %3460 = vmatprep.subr.bf16.mxu0 %v7174_v2 }
 0x29e   :  { %3461 = vmatpush2.bf16.msra.mxu0 %v7172_v1 }
 0x29f   :  { %3462 = vmatprep.subr.bf16.mxu0 %v7180_v6  ;;  %v7109_v6 = vld [vmem:[%s10127_s4 + $0xe0] ss:$16 sps:$4 sm:$0xff]  }
 0x2a2   :  { %3463 = vmatpush2.bf16.msra.mxu0 %v7178_v3  ;;  %v8882_v3 = vld [vmem:[%s10128_s8] ss:$24 sps:$4 sm:$0xff]  }
 0x2a3   :  { %3464 = vmatprep.subr.bf16.mxu0 %v7186_v8  ;;  %v7315_v8 = vld [vmem:[%s10127_s4 + $0x4cc] ss:$16 sps:$4 sm:$0xff]  }
 0x2a6   :  { %3465 = vmatpush2.bf16.msra.mxu0 %v7184_v7  ;;  %v8890_v7 = vld [vmem:[%s10128_s8 + $0x14] ss:$24 sps:$4 sm:$0xff]  }
 0x2a7   :  { %3466 = vmatprep.subr.bf16.mxu0 %v7192_v11  ;;  %v7115_v11 = vld [vmem:[%s10127_s4 + $0xc0] ss:$16 sps:$4 sm:$0xff]  }
 0x2aa   :  { %3467 = vmatpush2.bf16.msra.mxu0 %v7190_v9  ;;  %v7313_v9 = vld [vmem:[%s10127_s4 + $0x4c8] ss:$16 sps:$4 sm:$0xff]  }
 0x2ab   :  { %3468 = vmatprep.subr.bf16.mxu0 %v7198_v13  ;;  %v7321_v13 = vld [vmem:[%s10127_s4 + $0x4ac] ss:$16 sps:$4 sm:$0xff]  }
 0x2ae   :  { %3469 = vmatpush2.bf16.msra.mxu0 %v7196_v12  ;;  %v7123_v12 = vld [vmem:[%s10127_s4 + $0xa4] ss:$16 sps:$4 sm:$0xff]  }
 0x2b1   :  { %3471 = vmatmul.mubr.bf16.vlgmr.msra.gmra.mxu0 %v8756_v14 }
 0x331   :  { %v8632_v18 = vpop.f32.mrf.mxu0 }
 0x332   :  { %v2025_v19 = vadd.f32 %v6090_v4, %v8632_v18 }
 0x333   :  { %v6709_v20 = vpop.f32.mrf.mxu0 }
 0x334   :  { %v2028_v51 = vsel %vm2027_vm1, %v2025_v19, -inf  ;;  %v8773_v20 = vld [vmem:[%s10128_s8 + $0x4] ss:$24 sps:$4 sm:$0xff]  }
 0x335   :  { %2029 = vmax.xlane.f32.xlu0 %v2028_v51  ;;  %v8636_v21 = vpop.f32.mrf.mxu0  ;;  %v7216_v51 = vld [vmem:[%s10127_s4 + $0xcc] ss:$16 sps:$4 sm:$0xff]   ;;  %3556 = vmatprep.mubr.bf16.mxu0 %v8773_v20 }
 0x336   :  { %v2026_v22 = vadd.f32 %v6090_v4, %v8636_v21  ;;  %v7205_v4 = vld [vmem:[%s10127_s4 + $0xe8] ss:$16 sps:$4 sm:$0xff]  }
 0x337   :  { %v6710_v23 = vpop.f32.mrf.mxu0 }
 0x338   :  { %v2031_v24 = vsel %vm2027_vm1, %v2026_v22, -inf  ;;  %v7220_v23 = vld [vmem:[%s10127_s4 + $0xa8] ss:$16 sps:$4 sm:$0xff]  }
 0x339   :  { %2032 = vmax.xlane.f32.xlu0 %v2031_v24  ;;  %v7222_v24 = vld [vmem:[%s10127_s4 + $0xac] ss:$16 sps:$4 sm:$0xff]  }
 0x3be   :  { %v2030_v25 = vpop.xlane.xlu0 %2029 }
 0x3bf   :  { %v2034_v26 = vsub.f32 %v2025_v19, %v2030_v25  ;;  %v7207_v19 = vld [vmem:[%s10127_s4 + $0xec] ss:$16 sps:$4 sm:$0xff]   ;;  %v7226_v25 = vld [vmem:[%s10127_s4 + $0x88] ss:$16 sps:$4 sm:$0xff]  }
 0x3c0   :  { %3524 = vmatprep.subr.bf16.mxu0 %v7207_v19  ;;  %v7121_v19 = vld [vmem:[%s10127_s4 + $0xa0] ss:$16 sps:$4 sm:$0xff]  }
 0x3c1   :  { %v2036_v27 = vmul.f32 1.442695, %v2034_v26  ;;  %3525 = vmatpush1.bf16.msra.mxu0 %v7205_v4  ;;  %v7228_v26 = vld [vmem:[%s10127_s4 + $0x8c] ss:$16 sps:$4 sm:$0xff]   ;;  %v7319_v4 = vld [vmem:[%s10127_s4 + $0x4a8] ss:$16 sps:$4 sm:$0xff]  }
 0x3c2   :  { %v2033_v28 = vpop.xlane.xlu0 %2032  ;;  %3526 = vmatprep.subr.bf16.mxu0 %v7216_v51  ;;  %v7327_v51 = vld [vmem:[%s10127_s4 + $0x48c] ss:$16 sps:$4 sm:$0xff]  }
 0x3c3   :  { %7670 = vpow2.f32 %v2036_v27  ;;  %v2035_v29 = vsub.f32 %v2026_v22, %v2033_v28  ;;  %v7214_v22 = vld [vmem:[%s10127_s4 + $0xc8] ss:$16 sps:$4 sm:$0xff]   ;;  %v7234_v28 = vld [vmem:[%s10127_s4 + $0x6c] ss:$16 sps:$4 sm:$0xff]  }
 0x3c4   :  { %v7232_v27 = vld [vmem:[%s10127_s4 + $0x68] ss:$16 sps:$4 sm:$0xff]  }
 0x3c5   :  { %v2038_v30 = vmul.f32 1.442695, %v2035_v29  ;;  %3527 = vmatpush1.bf16.msra.mxu0 %v7214_v22  ;;  %v7238_v29 = vld [vmem:[%s10127_s4 + $0x48] ss:$16 sps:$4 sm:$0xff]  }
 0x3c6   :  { %3528 = vmatprep.subr.bf16.mxu0 %v7222_v24  ;;  %v7325_v22 = vld [vmem:[%s10127_s4 + $0x488] ss:$16 sps:$4 sm:$0xff]   ;;  %v7135_v24 = vld [vmem:[%s10127_s4 + $0x64] ss:$16 sps:$4 sm:$0xff]  }
 0x3c7   :  { %7672 = vpow2.f32 %v2038_v30  ;;  %v7240_v30 = vld [vmem:[%s10127_s4 + $0x4c] ss:$16 sps:$4 sm:$0xff]  }
 0x3c9   :  { %3529 = vmatpush1.bf16.msra.mxu0 %v7220_v23  ;;  %v7127_v23 = vld [vmem:[%s10127_s4 + $0x80] ss:$16 sps:$4 sm:$0xff]  }
 0x3ca   :  { %3530 = vmatprep.subr.bf16.mxu0 %v7228_v26  ;;  %v7331_v26 = vld [vmem:[%s10127_s4 + $0x468] ss:$16 sps:$4 sm:$0xff]  }
 0x3cd   :  { %3531 = vmatpush1.bf16.msra.mxu0 %v7226_v25  ;;  %v7333_v25 = vld [vmem:[%s10127_s4 + $0x46c] ss:$16 sps:$4 sm:$0xff]  }
 0x3ce   :  { %3532 = vmatprep.subr.bf16.mxu0 %v7234_v28  ;;  %v7141_v28 = vld [vmem:[%s10127_s4 + $0x44] ss:$16 sps:$4 sm:$0xff]  }
 0x3d0   :  { %v8640_v31 = vpop.eup %7670 }
 0x3d1   :  { %v2040_v32 = vsel %vm2027_vm1, %v8640_v31, 0.0  ;;  %3533 = vmatpush1.bf16.msra.mxu0 %v7232_v27  ;;  %v7133_v27 = vld [vmem:[%s10127_s4 + $0x60] ss:$16 sps:$4 sm:$0xff]  }
 0x3d2   :  { %2041 = vadd.xlane.f32.xlu1 %v2040_v32  ;;  %3534 = vmatprep.subr.bf16.mxu0 %v7240_v30  ;;  %v7246_v32 = vld [vmem:[%s10127_s4 + $0x2c] ss:$16 sps:$4 sm:$0xff]   ;;  %v7337_v30 = vld [vmem:[%s10127_s4 + $0x448] ss:$16 sps:$4 sm:$0xff]  }
 0x3d4   :  { %v8644_v33 = vpop.eup %7672 }
 0x3d5   :  { %v2043_v34 = vsel %vm2027_vm1, %v8644_v33, 0.0  ;;  %3535 = vmatpush1.bf16.msra.mxu0 %v7238_v29  ;;  %v7339_v29 = vld [vmem:[%s10127_s4 + $0x44c] ss:$16 sps:$4 sm:$0xff]  }
 0x3d6   :  { %2044 = vadd.xlane.f32.xlu1 %v2043_v34  ;;  %v7244_v34 = vld [vmem:[%s10127_s4 + $0x28] ss:$16 sps:$4 sm:$0xff]   ;;  %3536 = vmatprep.subr.bf16.mxu0 %v7246_v32  ;;  %v7139_v32 = vld [vmem:[%s10127_s4 + $0x40] ss:$16 sps:$4 sm:$0xff]  }
 0x3d9   :  { %3537 = vmatpush1.bf16.msra.mxu0 %v7244_v34  ;;  %v7147_v34 = vld [vmem:[%s10127_s4 + $0x24] ss:$16 sps:$4 sm:$0xff]  }
 0x3da   :  { %3538 = vmatprep.subr.bf16.mxu0 %v7252_v35  ;;  %v7345_v35 = vld [vmem:[%s10127_s4 + $0x42c] ss:$16 sps:$4 sm:$0xff]  }
 0x3dd   :  { %3539 = vmatpush1.bf16.msra.mxu0 %v7250_v36  ;;  %v7343_v36 = vld [vmem:[%s10127_s4 + $0x428] ss:$16 sps:$4 sm:$0xff]  }
 0x3de   :  { %3540 = vmatprep.subr.bf16.mxu0 %v7258_v38  ;;  %v7145_v38 = vld [vmem:[%s10127_s4 + $0x20] ss:$16 sps:$4 sm:$0xff]  }
 0x3e1   :  { %3541 = vmatpush2.bf16.msra.mxu0 %v7256_v39  ;;  %v7153_v39 = vld [vmem:[%s10127_s4 + $0x4] ss:$16 sps:$4 sm:$0xff]  }
 0x3e2   :  { %3542 = vmatprep.subr.bf16.mxu0 %v7264_v40  ;;  %v7351_v40 = vld [vmem:[%s10127_s4 + $0x40c] ss:$16 sps:$4 sm:$0xff]  }
 0x3e5   :  { %3543 = vmatpush2.bf16.msra.mxu0 %v7262_v42  ;;  %v7349_v42 = vld [vmem:[%s10127_s4 + $0x408] ss:$16 sps:$4 sm:$0xff]  }
 0x3e6   :  { %3544 = vmatprep.subr.bf16.mxu0 %v7270_v44  ;;  %v7151_v44 = vld [vmem:[%s10127_s4] ss:$16 sps:$4 sm:$0xff]  }
 0x3e9   :  { %3545 = vmatpush2.bf16.msra.mxu0 %v7268_v46  ;;  %v7159_v46 = vld [vmem:[%s10127_s4 + $0x1e4] ss:$16 sps:$4 sm:$0xff]  }
 0x3ea   :  { %3546 = vmatprep.subr.bf16.mxu0 %v7276_v47  ;;  %v7357_v47 = vld [vmem:[%s10127_s4 + $0x5ec] ss:$16 sps:$4 sm:$0xff]  }
 0x3ed   :  { %3547 = vmatpush2.bf16.msra.mxu0 %v7274_v48  ;;  %v7355_v48 = vld [vmem:[%s10127_s4 + $0x5e8] ss:$16 sps:$4 sm:$0xff]  }
 0x3ee   :  { %3548 = vmatprep.subr.bf16.mxu0 %v7282_v52  ;;  %v7165_v52 = vld [vmem:[%s10127_s4 + $0x1c4] ss:$16 sps:$4 sm:$0xff]  }
 0x3f1   :  { %3549 = vmatpush2.bf16.msra.mxu0 %v7280_v53  ;;  %v7363_v53 = vld [vmem:[%s10127_s4 + $0x5cc] ss:$16 sps:$4 sm:$0xff]  }
 0x3f2   :  { %3550 = vmatprep.subr.bf16.mxu0 %v7288_v55  ;;  %v7163_v55 = vld [vmem:[%s10127_s4 + $0x1c0] ss:$16 sps:$4 sm:$0xff]  }
 0x3f5   :  { %3551 = vmatpush2.bf16.msra.mxu0 %v7286_v56  ;;  %v7171_v56 = vld [vmem:[%s10127_s4 + $0x1a4] ss:$16 sps:$4 sm:$0xff]  }
 0x3f6   :  { %3552 = vmatprep.subr.bf16.mxu0 %v7294_v57  ;;  %v7369_v57 = vld [vmem:[%s10127_s4 + $0x5ac] ss:$16 sps:$4 sm:$0xff]  }
 0x3f9   :  { %3553 = vmatpush2.bf16.msra.mxu0 %v7292_v58  ;;  %v7367_v58 = vld [vmem:[%s10127_s4 + $0x5a8] ss:$16 sps:$4 sm:$0xff]  }
 0x3fa   :  { %3554 = vmatprep.subr.bf16.mxu0 %v7300_v59  ;;  %v7169_v59 = vld [vmem:[%s10127_s4 + $0x1a0] ss:$16 sps:$4 sm:$0xff]  }
 0x3fd   :  { %3555 = vmatpush2.bf16.msra.mxu0 %v7298_v60  ;;  %v7177_v60 = vld [vmem:[%s10127_s4 + $0x184] ss:$16 sps:$4 sm:$0xff]  }
 0x3fe   :  { %3610 = vmatprep.subr.bf16.mxu0 %v7306_v62  ;;  %v7373_v62 = vld [vmem:[%s10127_s4 + $0x588] ss:$16 sps:$4 sm:$0xff]  }
 0x400   :  { %3557 = vmatmul.mubr.bf16.vlgmr.msra.gmra.mxu0 %v8882_v3 }
 0x401   :  { %3611 = vmatpush1.bf16.msra.mxu0 %v7304_v0  ;;  %3642 = vmatprep.mubr.bf16.mxu0 %v8890_v7  ;;  %v7183_v0 = vld [vmem:[%s10127_s4 + $0x164] ss:$16 sps:$4 sm:$0xff]  }
 0x402   :  { %3612 = vmatprep.subr.bf16.mxu0 %v7315_v8  ;;  %v7189_v8 = vld [vmem:[%s10127_s4 + $0x144] ss:$16 sps:$4 sm:$0xff]  }
 0x405   :  { %3613 = vmatpush1.bf16.msra.mxu0 %v7313_v9  ;;  %v7387_v9 = vld [vmem:[%s10127_s4 + $0x54c] ss:$16 sps:$4 sm:$0xff]  }
 0x406   :  { %3614 = vmatprep.subr.bf16.mxu0 %v7321_v13  ;;  %v7195_v13 = vld [vmem:[%s10127_s4 + $0x124] ss:$16 sps:$4 sm:$0xff]  }
 0x409   :  { %3615 = vmatpush1.bf16.msra.mxu0 %v7319_v4  ;;  %v7393_v4 = vld [vmem:[%s10127_s4 + $0x52c] ss:$16 sps:$4 sm:$0xff]  }
 0x40a   :  { %3616 = vmatprep.subr.bf16.mxu0 %v7327_v51  ;;  %v7201_v51 = vld [vmem:[%s10127_s4 + $0x104] ss:$16 sps:$4 sm:$0xff]  }
 0x40d   :  { %3617 = vmatpush1.bf16.msra.mxu0 %v7325_v22  ;;  %v7399_v22 = vld [vmem:[%s10127_s4 + $0x50c] ss:$16 sps:$4 sm:$0xff]  }
 0x40e   :  { %3618 = vmatprep.subr.bf16.mxu0 %v7333_v25  ;;  %v7213_v25 = vld [vmem:[%s10127_s4 + $0x4e4] ss:$16 sps:$4 sm:$0xff]  }
 0x411   :  { %3619 = vmatpush1.bf16.msra.mxu0 %v7331_v26  ;;  %v9084_v26 = vld [vmem:[%s10128_s8 + $0x10] ss:$24 sps:$4 sm:$0xff]  }
 0x412   :  { %3620 = vmatprep.subr.bf16.mxu0 %v7339_v29  ;;  %v7217_v29 = vld [vmem:[%s10127_s4 + $0x4c0] ss:$16 sps:$4 sm:$0xff]  }
 0x415   :  { %3621 = vmatpush1.bf16.msra.mxu0 %v7337_v30  ;;  %v7225_v30 = vld [vmem:[%s10127_s4 + $0x4a4] ss:$16 sps:$4 sm:$0xff]  }
 0x416   :  { %3622 = vmatprep.subr.bf16.mxu0 %v7345_v35  ;;  %v7235_v35 = vld [vmem:[%s10127_s4 + $0x460] ss:$16 sps:$4 sm:$0xff]  }
 0x419   :  { %3623 = vmatpush1.bf16.msra.mxu0 %v7343_v36  ;;  %v7243_v36 = vld [vmem:[%s10127_s4 + $0x444] ss:$16 sps:$4 sm:$0xff]  }
 0x41a   :  { %3624 = vmatprep.subr.bf16.mxu0 %v7351_v40  ;;  %v7247_v40 = vld [vmem:[%s10127_s4 + $0x420] ss:$16 sps:$4 sm:$0xff]  }
 0x41d   :  { %3625 = vmatpush1.bf16.msra.mxu0 %v7349_v42  ;;  %v7255_v42 = vld [vmem:[%s10127_s4 + $0x404] ss:$16 sps:$4 sm:$0xff]  }
 0x41e   :  { %3626 = vmatprep.subr.bf16.mxu0 %v7357_v47  ;;  %v7259_v47 = vld [vmem:[%s10127_s4 + $0x5e0] ss:$16 sps:$4 sm:$0xff]  }
 0x421   :  { %3627 = vmatpush2.bf16.msra.mxu0 %v7355_v48  ;;  %v7267_v48 = vld [vmem:[%s10127_s4 + $0x5c4] ss:$16 sps:$4 sm:$0xff]  }
 0x422   :  { %3628 = vmatprep.subr.bf16.mxu0 %v7363_v53  ;;  %v7271_v53 = vld [vmem:[%s10127_s4 + $0x5a0] ss:$16 sps:$4 sm:$0xff]  }
 0x45b   :  { %v2042_v50 = vpop.xlane.xlu1 %2041 }
 0x45c   :  { %7674 = vrcp.f32 %v2042_v50  ;;  %v7157_v50 = vld [vmem:[%s10127_s4 + $0x1e0] ss:$16 sps:$4 sm:$0xff]  }
 0x45f   :  { %v2045_v54 = vpop.xlane.xlu1 %2044 }
 0x460   :  { %7676 = vrcp.f32 %v2045_v54  ;;  %v7361_v54 = vld [vmem:[%s10127_s4 + $0x5c8] ss:$16 sps:$4 sm:$0xff]  }
 0x461   :  { %3629 = vmatpush2.bf16.msra.mxu0 %v7361_v54  ;;  %v7279_v54 = vld [vmem:[%s10127_s4 + $0x584] ss:$16 sps:$4 sm:$0xff]  }
 0x462   :  { %3630 = vmatprep.subr.bf16.mxu0 %v7369_v57  ;;  %v7283_v57 = vld [vmem:[%s10127_s4 + $0x560] ss:$16 sps:$4 sm:$0xff]  }
 0x465   :  { %3631 = vmatpush2.bf16.msra.mxu0 %v7367_v58  ;;  %v7291_v58 = vld [vmem:[%s10127_s4 + $0x544] ss:$16 sps:$4 sm:$0xff]  }
 0x469   :  { %v7675_v61 = vpop.eup %7674 }
 0x46a   :  { %v8874_v1 = vmul.f32 %v7675_v61, %v8640_v31  ;;  %v7375_v61 = vld [vmem:[%s10127_s4 + $0x58c] ss:$16 sps:$4 sm:$0xff]  }
 0x46b   :  { %3632 = vmatprep.subr.bf16.mxu0 %v7375_v61  ;;  %v7295_v61 = vld [vmem:[%s10127_s4 + $0x520] ss:$16 sps:$4 sm:$0xff]  }
 0x46c   :  { %3633 = vmatpush2.bf16.msra.mxu0 %v7373_v62  ;;  %v7303_v62 = vld [vmem:[%s10127_s4 + $0x504] ss:$16 sps:$4 sm:$0xff]  }
 0x46d   :  { %v7677_v63 = vpop.eup %7676 }
 0x46e   :  { %v8877_v2 = vmul.f32 %v7677_v63, %v8644_v33  ;;  %v7117_v33 = vld [vmem:[%s10127_s4 + $0xc4] ss:$16 sps:$4 sm:$0xff]   ;;  %v7175_v63 = vld [vmem:[%s10127_s4 + $0x180] ss:$16 sps:$4 sm:$0xff]  }
 0x470   :  { %v2105_v31 = vpack.c.bf16 %v8877_v2, %v8874_v1 }
 0x472   :  { %6714 = vmatmul.mubr.msk.bf16.vlgmr.msra.gmra.mxu1 %vm2027_vm1, %v2105_v31  ;;  %v7379_v31 = vld [vmem:[%s10127_s4 + $0x568] ss:$16 sps:$4 sm:$0xff]  }
 0x473   :  { %3396 = vmatpush1.bf16.msra.mxu1 %v7109_v6  ;;  %3427 = vmatprep.mubr.bf16.mxu1 %v8773_v20  ;;  %v7129_v20 = vld [vmem:[%s10127_s4 + $0x84] ss:$16 sps:$4 sm:$0xff]   ;;  %v7381_v6 = vld [vmem:[%s10127_s4 + $0x56c] ss:$16 sps:$4 sm:$0xff]  }
 0x474   :  { %3397 = vmatprep.subr.bf16.mxu1 %v7117_v33  ;;  %3634 = vmatprep.subr.bf16.mxu0 %v7381_v6  ;;  %v7181_v33 = vld [vmem:[%s10127_s4 + $0x160] ss:$16 sps:$4 sm:$0xff]   ;;  %v7310_v6 = vld [vmem:[%s10127_s4 + $0x2e8] ss:$16 sps:$4 sm:$0xff]  }
 0x475   :  { %3635 = vmatpush2.bf16.msra.mxu0 %v7379_v31  ;;  %v7318_v31 = vld [vmem:[%s10127_s4 + $0x2cc] ss:$16 sps:$4 sm:$0xff]  }
 0x476   :  { %3636 = vmatprep.subr.bf16.mxu0 %v7387_v9  ;;  %v7322_v9 = vld [vmem:[%s10127_s4 + $0x2a8] ss:$16 sps:$4 sm:$0xff]  }
 0x477   :  { %3398 = vmatpush1.bf16.msra.mxu1 %v7115_v11  ;;  %v7385_v11 = vld [vmem:[%s10127_s4 + $0x548] ss:$16 sps:$4 sm:$0xff]  }
 0x478   :  { %3399 = vmatprep.subr.bf16.mxu1 %v7123_v12  ;;  %v7187_v12 = vld [vmem:[%s10127_s4 + $0x140] ss:$16 sps:$4 sm:$0xff]  }
 0x479   :  { %3637 = vmatpush2.bf16.msra.mxu0 %v7385_v11  ;;  %v7330_v11 = vld [vmem:[%s10127_s4 + $0x28c] ss:$16 sps:$4 sm:$0xff]  }
 0x47a   :  { %3638 = vmatprep.subr.bf16.mxu0 %v7393_v4  ;;  %v7342_v4 = vld [vmem:[%s10127_s4 + $0x24c] ss:$16 sps:$4 sm:$0xff]  }
 0x47b   :  { %3400 = vmatpush1.bf16.msra.mxu1 %v7121_v19  ;;  %v7391_v19 = vld [vmem:[%s10127_s4 + $0x528] ss:$16 sps:$4 sm:$0xff]  }
 0x47c   :  { %3401 = vmatprep.subr.bf16.mxu1 %v7129_v20  ;;  %v7193_v20 = vld [vmem:[%s10127_s4 + $0x120] ss:$16 sps:$4 sm:$0xff]  }
 0x47d   :  { %3639 = vmatpush2.bf16.msra.mxu0 %v7391_v19  ;;  %v7340_v19 = vld [vmem:[%s10127_s4 + $0x248] ss:$16 sps:$4 sm:$0xff]  }
 0x47e   :  { %3640 = vmatprep.subr.bf16.mxu0 %v7399_v22  ;;  %v7354_v22 = vld [vmem:[%s10127_s4 + $0x20c] ss:$16 sps:$4 sm:$0xff]  }
 0x47f   :  { %3402 = vmatpush1.bf16.msra.mxu1 %v7127_v23  ;;  %v7397_v23 = vld [vmem:[%s10127_s4 + $0x508] ss:$16 sps:$4 sm:$0xff]  }
 0x480   :  { %3403 = vmatprep.subr.bf16.mxu1 %v7135_v24  ;;  %v7199_v24 = vld [vmem:[%s10127_s4 + $0x100] ss:$16 sps:$4 sm:$0xff]  }
 0x481   :  { %3641 = vmatpush2.bf16.msra.mxu0 %v7397_v23  ;;  %v7352_v23 = vld [vmem:[%s10127_s4 + $0x208] ss:$16 sps:$4 sm:$0xff]  }
 0x483   :  { %3404 = vmatpush1.bf16.msra.mxu1 %v7133_v27  ;;  %v7211_v27 = vld [vmem:[%s10127_s4 + $0x4e0] ss:$16 sps:$4 sm:$0xff]  }
 0x484   :  { %3405 = vmatprep.subr.bf16.mxu1 %v7141_v28  ;;  %v7219_v28 = vld [vmem:[%s10127_s4 + $0x4c4] ss:$16 sps:$4 sm:$0xff]   ;;  %3643 = vmatmul.mubr.bf16.vlgmr.msra.gmra.mxu0 %v9084_v26 }
 0x487   :  { %3406 = vmatpush1.bf16.msra.mxu1 %v7139_v32  ;;  %v7223_v32 = vld [vmem:[%s10127_s4 + $0x4a0] ss:$16 sps:$4 sm:$0xff]  }
 0x488   :  { %3407 = vmatprep.subr.bf16.mxu1 %v7147_v34  ;;  %v7237_v34 = vld [vmem:[%s10127_s4 + $0x464] ss:$16 sps:$4 sm:$0xff]  }
 0x48b   :  { %3408 = vmatpush1.bf16.msra.mxu1 %v7145_v38  ;;  %v7241_v38 = vld [vmem:[%s10127_s4 + $0x440] ss:$16 sps:$4 sm:$0xff]  }
 0x48c   :  { %3409 = vmatprep.subr.bf16.mxu1 %v7153_v39  ;;  %v7249_v39 = vld [vmem:[%s10127_s4 + $0x424] ss:$16 sps:$4 sm:$0xff]  }
 0x48f   :  { %3410 = vmatpush1.bf16.msra.mxu1 %v7151_v44  ;;  %v7253_v44 = vld [vmem:[%s10127_s4 + $0x400] ss:$16 sps:$4 sm:$0xff]  }
 0x490   :  { %3411 = vmatprep.subr.bf16.mxu1 %v7159_v46  ;;  %v7261_v46 = vld [vmem:[%s10127_s4 + $0x5e4] ss:$16 sps:$4 sm:$0xff]  }
 0x493   :  { %3412 = vmatpush2.bf16.msra.mxu1 %v7157_v50  ;;  %v7265_v50 = vld [vmem:[%s10127_s4 + $0x5c0] ss:$16 sps:$4 sm:$0xff]  }
 0x494   :  { %3413 = vmatprep.subr.bf16.mxu1 %v7165_v52  ;;  %v7273_v52 = vld [vmem:[%s10127_s4 + $0x5a4] ss:$16 sps:$4 sm:$0xff]  }
 0x497   :  { %3414 = vmatpush2.bf16.msra.mxu1 %v7163_v55  ;;  %v7277_v55 = vld [vmem:[%s10127_s4 + $0x580] ss:$16 sps:$4 sm:$0xff]  }
 0x498   :  { %3415 = vmatprep.subr.bf16.mxu1 %v7171_v56  ;;  %v7285_v56 = vld [vmem:[%s10127_s4 + $0x564] ss:$16 sps:$4 sm:$0xff]  }
 0x49b   :  { %3416 = vmatpush2.bf16.msra.mxu1 %v7169_v59  ;;  %v7289_v59 = vld [vmem:[%s10127_s4 + $0x540] ss:$16 sps:$4 sm:$0xff]  }
 0x49c   :  { %3417 = vmatprep.subr.bf16.mxu1 %v7177_v60  ;;  %v7297_v60 = vld [vmem:[%s10127_s4 + $0x524] ss:$16 sps:$4 sm:$0xff]  }
 0x49f   :  { %3418 = vmatpush2.bf16.msra.mxu1 %v7175_v63  ;;  %v7301_v63 = vld [vmem:[%s10127_s4 + $0x500] ss:$16 sps:$4 sm:$0xff]  }
 0x4a0   :  { %3419 = vmatprep.subr.bf16.mxu1 %v7183_v0  ;;  %v7312_v0 = vld [vmem:[%s10127_s4 + $0x2ec] ss:$16 sps:$4 sm:$0xff]  }
 0x4a3   :  { %3420 = vmatpush2.bf16.msra.mxu1 %v7181_v33  ;;  %v7316_v33 = vld [vmem:[%s10127_s4 + $0x2c8] ss:$16 sps:$4 sm:$0xff]  }
 0x4a4   :  { %3421 = vmatprep.subr.bf16.mxu1 %v7189_v8  ;;  %v7324_v8 = vld [vmem:[%s10127_s4 + $0x2ac] ss:$16 sps:$4 sm:$0xff]  }
 0x4a7   :  { %3422 = vmatpush2.bf16.msra.mxu1 %v7187_v12  ;;  %v7336_v12 = vld [vmem:[%s10127_s4 + $0x26c] ss:$16 sps:$4 sm:$0xff]  }
 0x4a8   :  { %3423 = vmatprep.subr.bf16.mxu1 %v7195_v13  ;;  %v7334_v13 = vld [vmem:[%s10127_s4 + $0x268] ss:$16 sps:$4 sm:$0xff]  }
 0x4ab   :  { %3424 = vmatpush2.bf16.msra.mxu1 %v7193_v20  ;;  %v7348_v20 = vld [vmem:[%s10127_s4 + $0x22c] ss:$16 sps:$4 sm:$0xff]  }
 0x4ac   :  { %3425 = vmatprep.subr.bf16.mxu1 %v7201_v51  ;;  %v7346_v51 = vld [vmem:[%s10127_s4 + $0x228] ss:$16 sps:$4 sm:$0xff]  }
 0x4af   :  { %3426 = vmatpush2.bf16.msra.mxu1 %v7199_v24  ;;  %v7360_v24 = vld [vmem:[%s10127_s4 + $0x3ec] ss:$16 sps:$4 sm:$0xff]  }
 0x4b0   :  { %3481 = vmatprep.subr.bf16.mxu1 %v7213_v25  ;;  %v7358_v25 = vld [vmem:[%s10127_s4 + $0x3e8] ss:$16 sps:$4 sm:$0xff]  }
 0x4b2   :  { %3428 = vmatmul.mubr.bf16.vlgmr.msra.gmra.mxu1 %v8882_v3  ;;  %v7231_v3 = vld [vmem:[%s10127_s4 + $0x484] ss:$16 sps:$4 sm:$0xff]  }
 0x4b3   :  { %3482 = vmatpush1.bf16.msra.mxu1 %v7211_v27  ;;  %3513 = vmatprep.mubr.bf16.mxu1 %v8890_v7  ;;  %v7229_v7 = vld [vmem:[%s10127_s4 + $0x480] ss:$16 sps:$4 sm:$0xff]   ;;  %v7364_v27 = vld [vmem:[%s10127_s4 + $0x3c8] ss:$16 sps:$4 sm:$0xff]  }
 0x4b4   :  { %3483 = vmatprep.subr.bf16.mxu1 %v7219_v28  ;;  %v7372_v28 = vld [vmem:[%s10127_s4 + $0x3ac] ss:$16 sps:$4 sm:$0xff]  }
 0x4b7   :  { %3484 = vmatpush1.bf16.msra.mxu1 %v7217_v29  ;;  %v7370_v29 = vld [vmem:[%s10127_s4 + $0x3a8] ss:$16 sps:$4 sm:$0xff]  }
 0x4b8   :  { %3485 = vmatprep.subr.bf16.mxu1 %v7225_v30  ;;  %v7378_v30 = vld [vmem:[%s10127_s4 + $0x38c] ss:$16 sps:$4 sm:$0xff]  }
 0x4bb   :  { %3486 = vmatpush1.bf16.msra.mxu1 %v7223_v32  ;;  %v7376_v32 = vld [vmem:[%s10127_s4 + $0x388] ss:$16 sps:$4 sm:$0xff]  }
 0x4bc   :  { %3487 = vmatprep.subr.bf16.mxu1 %v7231_v3  ;;  %v7384_v3 = vld [vmem:[%s10127_s4 + $0x36c] ss:$16 sps:$4 sm:$0xff]  }
 0x4bf   :  { %3488 = vmatpush1.bf16.msra.mxu1 %v7229_v7  ;;  %v7382_v7 = vld [vmem:[%s10127_s4 + $0x368] ss:$16 sps:$4 sm:$0xff]  }
 0x4c0   :  { %3489 = vmatprep.subr.bf16.mxu1 %v7237_v34  ;;  %v7390_v34 = vld [vmem:[%s10127_s4 + $0x34c] ss:$16 sps:$4 sm:$0xff]  }
 0x4c3   :  { %3490 = vmatpush1.bf16.msra.mxu1 %v7235_v35  ;;  %v7388_v35 = vld [vmem:[%s10127_s4 + $0x348] ss:$16 sps:$4 sm:$0xff]  }
 0x4c4   :  { %3491 = vmatprep.subr.bf16.mxu1 %v7243_v36  ;;  %v7396_v36 = vld [vmem:[%s10127_s4 + $0x32c] ss:$16 sps:$4 sm:$0xff]  }
 0x4c7   :  { %3492 = vmatpush1.bf16.msra.mxu1 %v7241_v38  ;;  %v7394_v38 = vld [vmem:[%s10127_s4 + $0x328] ss:$16 sps:$4 sm:$0xff]  }
 0x4c8   :  { %3493 = vmatprep.subr.bf16.mxu1 %v7249_v39  ;;  %v7402_v39 = vld [vmem:[%s10127_s4 + $0x30c] ss:$16 sps:$4 sm:$0xff]  }
 0x4cb   :  { %3494 = vmatpush1.bf16.msra.mxu1 %v7247_v40  ;;  %v7400_v40 = vld [vmem:[%s10127_s4 + $0x308] ss:$16 sps:$4 sm:$0xff]  }
 0x4cc   :  { %3495 = vmatprep.subr.bf16.mxu1 %v7255_v42  ;;  %v7403_v42 = vld [vmem:[%s10087_s12 + $0x78] sm:$0xff]  }
 0x4cf   :  { %3496 = vmatpush1.bf16.msra.mxu1 %v7253_v44  ;;  %v7404_v44 = vld [vmem:[%s10087_s12 + $0x38] sm:$0xff]  }
 0x4d0   :  { %3497 = vmatprep.subr.bf16.mxu1 %v7261_v46  ;;  %v7405_v46 = vld [vmem:[%s10087_s12 + $0x70] sm:$0xff]  }
 0x4d3   :  { %3498 = vmatpush2.bf16.msra.mxu1 %v7259_v47 }
 0x4d4   :  { %3499 = vmatprep.subr.bf16.mxu1 %v7267_v48  ;;  %v7406_v48 = vld [vmem:[%s10087_s12 + $0x30] sm:$0xff]  }
 0x4d7   :  { %3500 = vmatpush2.bf16.msra.mxu1 %v7265_v50 }
 0x4d8   :  { %3501 = vmatprep.subr.bf16.mxu1 %v7273_v52  ;;  %v7407_v52 = vld [vmem:[%s10087_s12 + $0x68] sm:$0xff]  }
 0x4db   :  { %3502 = vmatpush2.bf16.msra.mxu1 %v7271_v53 }
 0x4dc   :  { %3503 = vmatprep.subr.bf16.mxu1 %v7279_v54 }
 0x4df   :  { %3504 = vmatpush2.bf16.msra.mxu1 %v7277_v55  ;;  %v7409_v55 = vld [vmem:[%s10087_s12 + $0x60] sm:$0xff]  }
 0x4e0   :  { %3505 = vmatprep.subr.bf16.mxu1 %v7285_v56  ;;  %v7410_v56 = vld [vmem:[%s10087_s12 + $0x20] sm:$0xff]  }
 0x4e3   :  { %3506 = vmatpush2.bf16.msra.mxu1 %v7283_v57  ;;  %v7411_v57 = vld [vmem:[%s10087_s12 + $0x58] sm:$0xff]  }
 0x4e4   :  { %3507 = vmatprep.subr.bf16.mxu1 %v7291_v58  ;;  %v7412_v58 = vld [vmem:[%s10087_s12 + $0x18] sm:$0xff]  }
 0x4e7   :  { %3508 = vmatpush2.bf16.msra.mxu1 %v7289_v59  ;;  %v7413_v59 = vld [vmem:[%s10087_s12 + $0x50] sm:$0xff]  }
 0x4e8   :  { %3509 = vmatprep.subr.bf16.mxu1 %v7297_v60  ;;  %v7419_v60 = vld [vmem:[%s10087_s12 + $0xf8] sm:$0xff]  }
 0x4e9   :  { %6583 = vmatprep.subr.bf16.mxu0 %v7419_v60 }
 0x4eb   :  { %3510 = vmatpush2.bf16.msra.mxu1 %v7295_v61  ;;  %v7420_v61 = vld [vmem:[%s10087_s12 + $0xb8] sm:$0xff]  }
 0x4ec   :  { %3511 = vmatprep.subr.bf16.mxu1 %v7303_v62  ;;  %v7421_v62 = vld [vmem:[%s10087_s12 + $0xf0] sm:$0xff]   ;;  %6584 = vmatpush3.bf16.msra.mxu0 %v7420_v61 }
 0x4ed   :  { %6585 = vmatprep.subr.bf16.mxu0 %v7421_v62 }
 0x4ef   :  { %3512 = vmatpush2.bf16.msra.mxu1 %v7301_v63  ;;  %v7414_v63 = vld [vmem:[%s10087_s12 + $0x10] sm:$0xff]  }
 0x4f0   :  { %3567 = vmatprep.subr.bf16.mxu1 %v7312_v0  ;;  %v7422_v0 = vld [vmem:[%s10087_s12 + $0xb0] sm:$0xff]  }
 0x4f1   :  { %6586 = vmatpush3.bf16.msra.mxu0 %v7422_v0 }
 0x4f2   :  { %3514 = vmatmul.mubr.bf16.vlgmr.msra.gmra.mxu1 %v9084_v26  ;;  %v7366_v26 = vld [vmem:[%s10127_s4 + $0x3cc] ss:$16 sps:$4 sm:$0xff]  }
 0x4f3   :  { %3568 = vmatpush1.bf16.msra.mxu1 %v7310_v6  ;;  %3599 = vmatprep.mubr.bf16.mxu1 %v8761_v5  ;;  %v7328_v5 = vld [vmem:[%s10127_s4 + $0x288] ss:$16 sps:$4 sm:$0xff]  }
 0x4f4   :  { %3569 = vmatprep.subr.bf16.mxu1 %v7318_v31  ;;  %v7415_v6 = vld [vmem:[%s10087_s12 + $0x48] sm:$0xff]  }
 0x4f5   :  { %v7423_v31 = vld [vmem:[%s10087_s12 + $0xe8] sm:$0xff]  }
 0x4f6   :  { %6587 = vmatprep.subr.bf16.mxu0 %v7423_v31 }
 0x4f7   :  { %3570 = vmatpush1.bf16.msra.mxu1 %v7316_v33  ;;  %v7416_v33 = vld [vmem:[%s10087_s12 + $0x8] sm:$0xff]  }
 0x4f8   :  { %3571 = vmatprep.subr.bf16.mxu1 %v7324_v8  ;;  %v7424_v8 = vld [vmem:[%s10087_s12 + $0xa8] sm:$0xff]  }
 0x4f9   :  { %6588 = vmatpush3.bf16.msra.mxu0 %v7424_v8 }
 0x4fb   :  { %3572 = vmatpush1.bf16.msra.mxu1 %v7322_v9  ;;  %v7417_v9 = vld [vmem:[%s10087_s12 + $0x40] sm:$0xff]  }
 0x4fc   :  { %3573 = vmatprep.subr.bf16.mxu1 %v7330_v11  ;;  %v7425_v11 = vld [vmem:[%s10087_s12 + $0xe0] sm:$0xff]  }
 0x4fd   :  { %6589 = vmatprep.subr.bf16.mxu0 %v7425_v11 }
 0x4ff   :  { %3574 = vmatpush1.bf16.msra.mxu1 %v7328_v5  ;;  %v7418_v5 = vld [vmem:[%s10087_s12] sm:$0xff]  }
 0x500   :  { %3575 = vmatprep.subr.bf16.mxu1 %v7336_v12  ;;  %v7426_v12 = vld [vmem:[%s10087_s12 + $0xa0] sm:$0xff]  }
 0x501   :  { %6590 = vmatpush3.bf16.msra.mxu0 %v7426_v12 }
 0x503   :  { %3576 = vmatpush1.bf16.msra.mxu1 %v7334_v13  ;;  %v7427_v13 = vld [vmem:[%s10087_s12 + $0xd8] sm:$0xff]  }
 0x504   :  { %3577 = vmatprep.subr.bf16.mxu1 %v7342_v4  ;;  %v7428_v4 = vld [vmem:[%s10087_s12 + $0x98] sm:$0xff]   ;;  %6591 = vmatprep.subr.bf16.mxu0 %v7427_v13 }
 0x505   :  { %6592 = vmatpush3.bf16.msra.mxu0 %v7428_v4 }
 0x507   :  { %3578 = vmatpush1.bf16.msra.mxu1 %v7340_v19  ;;  %v7429_v19 = vld [vmem:[%s10087_s12 + $0xd0] sm:$0xff]  }
 0x508   :  { %3579 = vmatprep.subr.bf16.mxu1 %v7348_v20  ;;  %v7430_v20 = vld [vmem:[%s10087_s12 + $0x90] sm:$0xff]   ;;  %6593 = vmatprep.subr.bf16.mxu0 %v7429_v19 }
 0x509   :  { %6594 = vmatpush3.bf16.msra.mxu0 %v7430_v20 }
 0x50b   :  { %3580 = vmatpush1.bf16.msra.mxu1 %v7346_v51  ;;  %v7431_v51 = vld [vmem:[%s10087_s12 + $0xc8] sm:$0xff]  }
 0x50c   :  { %3581 = vmatprep.subr.bf16.mxu1 %v7354_v22  ;;  %v7432_v22 = vld [vmem:[%s10087_s12 + $0x88] sm:$0xff]   ;;  %6595 = vmatprep.subr.bf16.mxu0 %v7431_v51 }
 0x50d   :  { %6596 = vmatpush3.bf16.msra.mxu0 %v7432_v22 }
 0x50f   :  { %3582 = vmatpush1.bf16.msra.mxu1 %v7352_v23  ;;  %v7433_v23 = vld [vmem:[%s10087_s12 + $0xc0] sm:$0xff]  }
 0x510   :  { %3583 = vmatprep.subr.bf16.mxu1 %v7360_v24  ;;  %v7434_v24 = vld [vmem:[%s10087_s12 + $0x80] sm:$0xff]   ;;  %6597 = vmatprep.subr.bf16.mxu0 %v7433_v23 }
 0x511   :  { %6598 = vmatpush3.bf16.msra.mxu0 %v7434_v24 }
 0x513   :  { %3584 = vmatpush2.bf16.msra.mxu1 %v7358_v25 }
 0x514   :  { %3585 = vmatprep.subr.bf16.mxu1 %v7366_v26 }
 0x517   :  { %3586 = vmatpush2.bf16.msra.mxu1 %v7364_v27  ;;  %v3472_v27 = vpop.f32.mrf.mxu0 }
 0x518   :  { %3587 = vmatprep.subr.bf16.mxu1 %v7372_v28  ;;  %v2383_v28 = vld [vmem:[%s10088_s11] sm:$0xf] }
 0x519   :  { %v2400_v11 = vrot.slane %v2383_v28, %v299_v10 }
 0x51b   :  { %3588 = vmatpush2.bf16.msra.mxu1 %v7370_v29 }
 0x51c   :  { %3589 = vmatprep.subr.bf16.mxu1 %v7378_v30  ;;  %v2392_v30 = vrot.slane %v2383_v28, %v8566_v43 }
 0x51f   :  { %3590 = vmatpush2.bf16.msra.mxu1 %v7376_v32  ;;  %v3474_v32 = vpop.f32.mrf.mxu0 }
 0x520   :  { %3591 = vmatprep.subr.bf16.mxu1 %v7384_v3  ;;  %v2388_v3 = vrot.slane %v2383_v28, %v8572_v45 }
 0x523   :  { %3592 = vmatpush2.bf16.msra.mxu1 %v7382_v7 }
 0x524   :  { %3593 = vmatprep.subr.bf16.mxu1 %v7390_v34 }
 0x527   :  { %3594 = vmatpush2.bf16.msra.mxu1 %v7388_v35 }
 0x528   :  { %3595 = vmatprep.subr.bf16.mxu1 %v7396_v36 }
 0x52b   :  { %3596 = vmatpush2.bf16.msra.mxu1 %v7394_v38  ;;  %v3476_v38 = vpop.f32.mrf.mxu0 }
 0x52c   :  { %3597 = vmatprep.subr.bf16.mxu1 %v7402_v39 }
 0x52f   :  { %3598 = vmatpush2.bf16.msra.mxu1 %v7400_v40 }
 0x530   :  { %6561 = vmatprep.subr.bf16.mxu1 %v7403_v42 }
 0x532   :  { %3600 = vmatmul.mubr.bf16.vlgmr.msra.gmra.mxu1 %v8756_v14  ;;  %v9290_v47 = vpop.f32.mrf.mxu1  ;;  %v7408_v14 = vld [vmem:[%s10087_s12 + $0x28] sm:$0xff]  }
 0x533   :  { %6562 = vmatpush3.bf16.msra.mxu1 %v7404_v44 }
 0x534   :  { %v6715_v50 = vpop.f32.mrf.mxu1  ;;  %6563 = vmatprep.subr.bf16.mxu1 %v7405_v46 }
 0x536   :  { %v9298_v53 = vpop.f32.mrf.mxu1 }
 0x537   :  { %6564 = vmatpush3.bf16.msra.mxu1 %v7406_v48  ;;  %v3478_v48 = vpop.f32.mrf.mxu0 }
 0x538   :  { %v6716_v54 = vpop.f32.mrf.mxu1  ;;  %6565 = vmatprep.subr.bf16.mxu1 %v7407_v52 }
 0x53b   :  { %6566 = vmatpush3.bf16.msra.mxu1 %v7408_v14 }
 0x53c   :  { %6567 = vmatprep.subr.bf16.mxu1 %v7409_v55 }
 0x53f   :  { %6568 = vmatpush3.bf16.msra.mxu1 %v7410_v56 }
 0x540   :  { %6569 = vmatprep.subr.bf16.mxu1 %v7411_v57 }
 0x543   :  { %6570 = vmatpush3.bf16.msra.mxu1 %v7412_v58 }
 0x544   :  { %6571 = vmatprep.subr.bf16.mxu1 %v7413_v59 }
 0x547   :  { %6572 = vmatpush3.bf16.msra.mxu1 %v7414_v63 }
 0x548   :  { %6573 = vmatprep.subr.bf16.mxu1 %v7415_v6  ;;  %v3558_v6 = vpop.f32.mrf.mxu0 }
 0x54a   :  { %v3560_v31 = vpop.f32.mrf.mxu0 }
 0x54b   :  { %6574 = vmatpush3.bf16.msra.mxu1 %v7416_v33  ;;  %v3561_v4 = vadd.f32 %v3560_v31, %v2400_v11 }
 0x54c   :  { %6575 = vmatprep.subr.bf16.mxu1 %v7417_v9  ;;  %v3562_v33 = vpop.f32.mrf.mxu0 }
 0x54e   :  { %v3564_v8 = vpop.f32.mrf.mxu0 }
 0x54f   :  { %6576 = vmatpush3.bf16.msra.mxu1 %v7418_v5  ;;  %v2396_v5 = vrot.slane %v2383_v28, %v8578_v17 }
 0x550   :  { %6717 = vmatprep.subr.bf16.mxu1 %v7718_v49  ;;  %v3644_v9 = vpop.f32.mrf.mxu0 }
 0x551   :  { %v3559_v19 = vadd.f32 %v3558_v6, %v2396_v5  ;;  %v3563_v51 = vadd.f32 %v3562_v33, %v2396_v5 }
 0x552   :  { %v3646_v12 = vpop.f32.mrf.mxu0 }
 0x554   :  { %v3648_v24 = vpop.f32.mrf.mxu0 }
 0x556   :  { %v3650_v10 = vpop.f32.mrf.mxu0 }
 0x572   :  { %v3429_v25 = vpop.f32.mrf.mxu1 }
 0x573   :  { %v3430_v36 = vadd.f32 %v3429_v25, %v2388_v3 }
 0x574   :  { %v3431_v26 = vpop.f32.mrf.mxu1 }
 0x575   :  { %v3432_v34 = vadd.f32 %v3431_v26, %v2392_v30  ;;  %v3473_v50 = vadd.f32 %v3472_v27, %v3430_v36  ;;  %v3565_v26 = vadd.f32 %v3564_v8, %v2400_v11 }
 0x576   :  { %v3433_v29 = vpop.f32.mrf.mxu1 }
 0x577   :  { %v3434_v35 = vadd.f32 %v3433_v29, %v2388_v3  ;;  %v3475_v44 = vadd.f32 %v3474_v32, %v3432_v34 }
 0x578   :  { %v3435_v7 = vpop.f32.mrf.mxu1 }
 0x579   :  { %v3436_v40 = vadd.f32 %v3435_v7, %v2392_v30  ;;  %v3477_v46 = vadd.f32 %v3476_v38, %v3434_v35 }
 0x57b   :  { %v3479_v55 = vadd.f32 %v3478_v48, %v3436_v40  ;;  %v7435_v40 = vld [vmem:[%s10089_s14 + $0x38] sm:$0xff]  }
 0x57c   :  { %v7439_v48 = vld [vmem:[%s10089_s14 + $0x18] sm:$0xff]  }
 0x5b2   :  { %v3515_v39 = vpop.f32.mrf.mxu1 }
 0x5b3   :  { %v3516_v56 = vadd.f32 %v3515_v39, %v3473_v50  ;;  %v7440_v50 = vld [vmem:[%s10089_s14 + $0x10] sm:$0xff]  }
 0x5b4   :  { %v3517_v42 = vpop.f32.mrf.mxu1 }
 0x5b5   :  { %v3518_v14 = vadd.f32 %v3517_v42, %v3475_v44  ;;  %v3653_v62 = vmax.f32 %v3516_v56, 0.0  ;;  %v7436_v42 = vld [vmem:[%s10089_s14 + $0x30] sm:$0xff]   ;;  %v7437_v44 = vld [vmem:[%s10089_s14 + $0x28] sm:$0xff]  }
 0x5b6   :  { %v3519_v52 = vpop.f32.mrf.mxu1 }
 0x5b7   :  { %v3520_v54 = vadd.f32 %v3519_v52, %v3477_v46  ;;  %v3654_v60 = vmax.f32 %v3518_v14, 0.0  ;;  %v7438_v46 = vld [vmem:[%s10089_s14 + $0x20] sm:$0xff]   ;;  %v7441_v52 = vld [vmem:[%s10089_s14 + $0x8] sm:$0xff]  }
 0x5b8   :  { %v3521_v57 = vpop.f32.mrf.mxu1  ;;  %v7442_v14 = vld [vmem:[%s10089_s14] sm:$0xff]  }
 0x5b9   :  { %v3522_v58 = vadd.f32 %v3521_v57, %v3479_v55  ;;  %v3657_v59 = vmax.f32 %v3520_v54, 0.0 }
 0x5bb   :  { %v3658_v61 = vmax.f32 %v3522_v58, 0.0  ;;  %v3661_v0 = vpack.c.bf16 %v3657_v59, %v3653_v62 }
 0x5bd   :  { %v3662_v63 = vpack.c.bf16 %v3658_v61, %v3654_v60  ;;  %v6291_v60 = vld [vmem:[%s10090_s13] ss:$0 sm:$0xff] }
 0x5bf   :  { %3960 = vmatprep.mubr.bf16.mxu1 %v3662_v63 }
 0x5c0   :  { %3961 = vmatmul.mubr.bf16.vlgmr.msra.gmra.mxu1 %v3661_v0 }
 0x5c1   :  { %6733 = vmatprep.mubr.msk.bf16.mxu1 %vm7719_vm0, %v7718_v49  ;;  %6718 = vmatpush3.bf16.msra.mxu1 %v7435_v40 }
 0x5c2   :  { %6719 = vmatprep.subr.bf16.mxu1 %v7718_v49 }
 0x5c5   :  { %6720 = vmatpush3.bf16.msra.mxu1 %v7436_v42 }
 0x5c6   :  { %6721 = vmatprep.subr.bf16.mxu1 %v7718_v49 }
 0x5c9   :  { %6722 = vmatpush3.bf16.msra.mxu1 %v7437_v44  ;;  %v7443_v44 = vld [vmem:[%s10092_s17 + $0x170] ss:$12 sps:$4 sm:$0xff]  }
 0x5ca   :  { %6723 = vmatprep.subr.bf16.mxu1 %v7718_v49 }
 0x5cd   :  { %6724 = vmatpush3.bf16.msra.mxu1 %v7438_v46  ;;  %v7446_v46 = vld [vmem:[%s10092_s17 + $0xac] ss:$12 sps:$4 sm:$0xff]  }
 0x5ce   :  { %6725 = vmatprep.subr.bf16.mxu1 %v7718_v49  ;;  %4676 = vmatprep.subr.bf16.mxu0 %v7446_v46  ;;  %v7467_v46 = vld [vmem:[%s10092_s17 + $0x50] ss:$12 sps:$4 sm:$0xff]  }
 0x5d1   :  { %6726 = vmatpush3.bf16.msra.mxu1 %v7439_v48  ;;  %v7449_v48 = vld [vmem:[%s10092_s17 + $0x90] ss:$12 sps:$4 sm:$0xff]  }
 0x5d2   :  { %6727 = vmatprep.subr.bf16.mxu1 %v7718_v49 }
 0x5d5   :  { %6728 = vmatpush3.bf16.msra.mxu1 %v7440_v50  ;;  %v7451_v50 = vld [vmem:[%s10092_s17 + $0x94] ss:$12 sps:$4 sm:$0xff]  }
 0x5d6   :  { %6729 = vmatprep.subr.bf16.mxu1 %v7718_v49 }
 0x5d9   :  { %6730 = vmatpush3.bf16.msra.mxu1 %v7441_v52  ;;  %v7456_v52 = vld [vmem:[%s10092_s17 + $0x7c] ss:$12 sps:$4 sm:$0xff]  }
 0x5da   :  { %6731 = vmatprep.subr.bf16.mxu1 %v7718_v49 }
 0x5dd   :  { %6732 = vmatpush3.bf16.msra.mxu1 %v7442_v14  ;;  %v7454_v14 = vld [vmem:[%s10092_s17 + $0x78] ss:$12 sps:$4 sm:$0xff]  }
 0x5de   :  { %6737 = vmatprep.subr.bf16.mxu1 %v7718_v49 }
 0x5f2   :  { %v3601_v13 = vpop.f32.mrf.mxu1 }
 0x5f3   :  { %v3602_v23 = vadd.f32 %v3601_v13, %v3559_v19 }
 0x5f4   :  { %v3603_v20 = vpop.f32.mrf.mxu1 }
 0x5f5   :  { %v3604_v22 = vadd.f32 %v3603_v20, %v3561_v4  ;;  %v3645_v41 = vadd.f32 %v3644_v9, %v3602_v23  ;;  %v6332_v4 = vld [vmem:[%s10091_s15] ss:$0 sm:$0xff] }
 0x5f6   :  { %v3605_v25 = vpop.f32.mrf.mxu1 }
 0x5f7   :  { %v3606_v27 = vadd.f32 %v3605_v25, %v3563_v51  ;;  %v3647_v30 = vadd.f32 %v3646_v12, %v3604_v22  ;;  %v3655_v36 = vmax.f32 %v3645_v41, 0.0 }
 0x5f8   :  { %v3607_v29 = vpop.f32.mrf.mxu1 }
 0x5f9   :  { %v3649_v32 = vadd.f32 %v3648_v24, %v3606_v27  ;;  %v3608_v3 = vadd.f32 %v3607_v29, %v3565_v26  ;;  %v3656_v34 = vmax.f32 %v3647_v30, 0.0 }
 0x5fb   :  { %v3651_v7 = vadd.f32 %v3650_v10, %v3608_v3  ;;  %v3659_v28 = vmax.f32 %v3649_v32, 0.0  ;;  %v2050_v10 = vmul.f32 10.0, %v8632_v18 }
 0x5fd   :  { %v3660_v35 = vmax.f32 %v3651_v7, 0.0  ;;  %v3663_v39 = vpack.c.bf16 %v3659_v28, %v3655_v36  ;;  %v2053_v36 = vsel %vm2052_vm3, %v2050_v10, -inf }
 0x5ff   :  { %v3664_v38 = vpack.c.bf16 %v3660_v35, %v3656_v34  ;;  %v2051_v34 = vmul.f32 10.0, %v8636_v21  ;;  %v7444_v21 = vld [vmem:[%s10092_s17 + $0xa8] ss:$12 sps:$4 sm:$0xff]  }
 0x601   :  { %4001 = vmatprep.mubr.bf16.mxu0 %v3664_v38  ;;  %v2056_v42 = vsel %vm2052_vm3, %v2051_v34, -inf }
 0x602   :  { %4002 = vmatmul.mubr.bf16.vlgmr.msra.gmra.mxu0 %v3663_v39 }
 0x603   :  { %4677 = vmatpush1.bf16.msra.mxu0 %v7444_v21 }
 0x604   :  { %4678 = vmatprep.subr.bf16.mxu0 %v7451_v50  ;;  %v7495_v50 = vld [vmem:[%s10092_s17 + $0x138] ss:$12 sps:$4 sm:$0xff]  }
 0x607   :  { %4679 = vmatpush1.bf16.msra.mxu0 %v7449_v48  ;;  %v7468_v48 = vld [vmem:[%s10092_s17 + $0xf8] ss:$12 sps:$4 sm:$0xff]  }
 0x608   :  { %4680 = vmatprep.subr.bf16.mxu0 %v7456_v52  ;;  %v7503_v52 = vld [vmem:[%s10092_s17 + $0x124] ss:$12 sps:$4 sm:$0xff]  }
 0x60b   :  { %4681 = vmatpush1.bf16.msra.mxu0 %v7454_v14  ;;  %v7472_v14 = vld [vmem:[%s10092_s17 + $0x38] ss:$12 sps:$4 sm:$0xff]  }
 0x680   :  { %v6577_v54 = vpop.f32.mrf.mxu1 }
 0x682   :  { %v6578_v55 = vpop.f32.mrf.mxu1 }
 0x683   :  { %v6579_v59 = vadd.f32 %v6578_v55, %v6577_v54  ;;  %v7459_v54 = vld [vmem:[%s10092_s17 + $0x60] ss:$12 sps:$4 sm:$0xff]   ;;  %v7461_v55 = vld [vmem:[%s10092_s17 + $0x64] ss:$12 sps:$4 sm:$0xff]  }
 0x684   :  { %v6580_v56 = vpop.f32.mrf.mxu1  ;;  %4682 = vmatprep.subr.bf16.mxu0 %v7461_v55  ;;  %v7501_v55 = vld [vmem:[%s10092_s17 + $0x120] ss:$12 sps:$4 sm:$0xff]  }
 0x685   :  { %v3963_v6 = vadd.f32 %v6579_v59, %v6291_v60  ;;  %4683 = vmatpush1.bf16.msra.mxu0 %v7459_v54  ;;  %v7473_v54 = vld [vmem:[%s10092_s17 + $0xe0] ss:$12 sps:$4 sm:$0xff]  }
 0x686   :  { %v6581_v57 = vpop.f32.mrf.mxu1 }
 0x687   :  { %v6582_v62 = vadd.f32 %v6581_v57, %v6580_v56 }
 0x689   :  { %v3966_v33 = vadd.f32 %v6582_v62, %v6291_v60 }
 0x6c2   :  { %v6599_v58 = vpop.f32.mrf.mxu0 }
 0x6c4   :  { %v6600_v61 = vpop.f32.mrf.mxu0 }
 0x6c5   :  { %v6601_v63 = vadd.f32 %v6600_v61, %v6599_v58 }
 0x6c6   :  { %v6602_v0 = vpop.f32.mrf.mxu0 }
 0x6c7   :  { %v4004_v8 = vadd.f32 %v6601_v63, %v3963_v6 }
 0x6c8   :  { %v6603_v31 = vpop.f32.mrf.mxu0 }
 0x6c9   :  { %v6604_v9 = vadd.f32 %v6603_v31, %v6602_v0  ;;  %v9427_v5 = vmax.f32 %v4004_v8, 0.0  ;;  %v7466_v8 = vld [vmem:[%s10092_s17 + $0x4c] ss:$12 sps:$4 sm:$0xff]  }
 0x6ca   :  { %4684 = vmatprep.subr.bf16.mxu0 %v7466_v8  ;;  %v7519_v8 = vld [vmem:[%s10092_s17 + $0xd8] ss:$12 sps:$4 sm:$0xff]  }
 0x6cb   :  { %v4007_v11 = vadd.f32 %v6604_v9, %v3966_v33  ;;  %v7464_v33 = vld [vmem:[%s10092_s17 + $0x48] ss:$12 sps:$4 sm:$0xff]  }
 0x6cc   :  { %4685 = vmatpush1.bf16.msra.mxu0 %v7464_v33  ;;  %v7500_v33 = vld [vmem:[%s10094_s16 + $0x94] ss:$12 sps:$4 sm:$0xff]  }
 0x6cd   :  { %v9429_v12 = vmax.f32 %v4007_v11, 0.0 }
 0x6cf   :  { %v4012_v13 = vpack.c.bf16 %v9429_v12, %v9427_v5 }
 0x6d1   :  { %6734 = vmatmul.mubr.bf16.vlgmr.msra.gmra.mxu1 %v4012_v13 }
 0x6d2   :  { %6738 = vmatpush3.bf16.msra.mxu1 %v8654_v37  ;;  %6739 = vmatprep.mubr.msk.bf16.mxu1 %vm7719_vm0, %v7718_v49 }
 0x6d3   :  { %6616 = vmatprep.subr.bf16.mxu1 %v7443_v44  ;;  %v7497_v44 = vld [vmem:[%s10092_s17 + $0x13c] ss:$12 sps:$4 sm:$0xff]  }
 0x791   :  { %v4111_v19 = vpop.f32.mrf.mxu1 }
 0x792   :  { %v4125_v20 = vadd.f32 %v6332_v4, %v4111_v19  ;;  %v4149_v35 = vmul.f32 10.0, %v4111_v19  ;;  %v7471_v19 = vld [vmem:[%s10092_s17 + $0x34] ss:$12 sps:$4 sm:$0xff]  }
 0x793   :  { %v6735_v51 = vpop.f32.mrf.mxu1  ;;  %4686 = vmatprep.subr.bf16.mxu0 %v7471_v19  ;;  %v7537_v19 = vld [vmem:[%s10094_s16 + $0x170] ss:$12 sps:$4 sm:$0xff]  }
 0x794   :  { %v4127_v22 = vsel %vm2027_vm1, %v4125_v20, -inf  ;;  %v4151_v40 = vsel %vm2052_vm3, %v4149_v35, -inf }
 0x795   :  { %4128 = vmax.xlane.f32.xlu0 %v4127_v22  ;;  %v4114_v23 = vpop.f32.mrf.mxu1 }
 0x796   :  { %v4126_v24 = vadd.f32 %v6332_v4, %v4114_v23  ;;  %v4150_v39 = vmul.f32 10.0, %v4114_v23  ;;  %v7469_v4 = vld [vmem:[%s10092_s17 + $0x30] ss:$12 sps:$4 sm:$0xff]  }
 0x797   :  { %v6736_v25 = vpop.f32.mrf.mxu1  ;;  %4687 = vmatpush1.bf16.msra.mxu0 %v7469_v4  ;;  %v7525_v4 = vld [vmem:[%s10092_s17 + $0xc0] ss:$12 sps:$4 sm:$0xff]  }
 0x798   :  { %v4130_v26 = vsel %vm2027_vm1, %v4126_v24, -inf  ;;  %v4154_v18 = vsel %vm2052_vm3, %v4150_v39, -inf  ;;  %v7474_v25 = vld [vmem:[%s10092_s17 + $0x18] ss:$12 sps:$4 sm:$0xff]  }
 0x799   :  { %4131 = vmax.xlane.f32.xlu1 %v4130_v26  ;;  %v7476_v26 = vld [vmem:[%s10092_s17 + $0x1c] ss:$12 sps:$4 sm:$0xff]  }
 0x79a   :  { %4688 = vmatprep.subr.bf16.mxu0 %v7476_v26  ;;  %v7542_v26 = vld [vmem:[%s10094_s16 + $0x158] ss:$12 sps:$4 sm:$0xff]  }
 0x79b   :  { %4689 = vmatpush1.bf16.msra.mxu0 %v7474_v25  ;;  %v7510_v25 = vld [vmem:[%s10094_s16 + $0x60] ss:$12 sps:$4 sm:$0xff]  }
 0x81e   :  { %v4129_v37 = vpop.xlane.xlu0 %4128 }
 0x81f   :  { %v4133_v27 = vsub.f32 %v4125_v20, %v4129_v37 }
 0x821   :  { %v4135_v29 = vmul.f32 1.442695, %v4133_v27  ;;  %v7448_v27 = vld [vmem:[%s10092_s17 + $0x158] ss:$12 sps:$4 sm:$0xff]  }
 0x822   :  { %v4132_v30 = vpop.xlane.xlu1 %4131 }
 0x823   :  { %7678 = vpow2.f32 %v4135_v29  ;;  %v4134_v32 = vsub.f32 %v4126_v24, %v4132_v30  ;;  %v7447_v24 = vld [vmem:[%s10092_s17 + $0xb0] ss:$12 sps:$4 sm:$0xff]   ;;  %v7452_v30 = vld [vmem:[%s10092_s17 + $0x98] ss:$12 sps:$4 sm:$0xff]  }
 0x825   :  { %v4137_v3 = vmul.f32 1.442695, %v4134_v32  ;;  %v7453_v32 = vld [vmem:[%s10092_s17 + $0x140] ss:$12 sps:$4 sm:$0xff]  }
 0x827   :  { %7680 = vpow2.f32 %v4137_v3  ;;  %v7481_v3 = vld [vmem:[%s10092_s17 + $0x4] ss:$12 sps:$4 sm:$0xff]  }
 0x828   :  { %4690 = vmatprep.subr.bf16.mxu0 %v7481_v3  ;;  %v7524_v3 = vld [vmem:[%s10094_s16 + $0x34] ss:$12 sps:$4 sm:$0xff]  }
 0x830   :  { %v9441_v41 = vpop.eup %7678 }
 0x831   :  { %v4139_v7 = vsel %vm2027_vm1, %v9441_v41, 0.0 }
 0x832   :  { %4140 = vadd.xlane.f32.xlu0 %v4139_v7  ;;  %v7488_v7 = vld [vmem:[%s10092_s17 + $0x16c] ss:$12 sps:$4 sm:$0xff]  }
 0x834   :  { %v7681_v28 = vpop.eup %7680 }
 0x835   :  { %v4142_v38 = vsel %vm2027_vm1, %v7681_v28, 0.0 }
 0x836   :  { %2054 = vmax.xlane.f32.xlu0 %v2053_v36  ;;  %4143 = vadd.xlane.f32.xlu1 %v4142_v38  ;;  %v7486_v36 = vld [vmem:[%s10092_s17 + $0x168] ss:$12 sps:$4 sm:$0xff]  }
 0x837   :  { %v7491_v38 = vld [vmem:[%s10092_s17 + $0x154] ss:$12 sps:$4 sm:$0xff]  }
 0x83a   :  { %4152 = vmax.xlane.f32.xlu0 %v4151_v40  ;;  %2057 = vmax.xlane.f32.xlu1 %v2056_v42  ;;  %v7462_v40 = vld [vmem:[%s10092_s17 + $0x68] ss:$12 sps:$4 sm:$0xff]   ;;  %v7463_v42 = vld [vmem:[%s10092_s17 + $0x110] ss:$12 sps:$4 sm:$0xff]  }
 0x83e   :  { %4155 = vmax.xlane.f32.xlu1 %v4154_v18  ;;  %v7489_v18 = vld [vmem:[%s10092_s17 + $0x150] ss:$12 sps:$4 sm:$0xff]  }
 0x8bb   :  { %v4141_v56 = vpop.xlane.xlu0 %4140 }
 0x8bc   :  { %7682 = vrcp.f32 %v4141_v56  ;;  %v7509_v56 = vld [vmem:[%s10092_s17 + $0x10c] ss:$12 sps:$4 sm:$0xff]  }
 0x8bf   :  { %v2055_v57 = vpop.xlane.xlu0 %2054  ;;  %v4144_v58 = vpop.xlane.xlu1 %4143 }
 0x8c0   :  { %v2059_v59 = vsub.f32 %v2050_v10, %v2055_v57  ;;  %7684 = vrcp.f32 %v4144_v58  ;;  %v7485_v10 = vld [vmem:[%s10093_s2 + $0x4] ss:$8 sps:$4 sm:$0xff]   ;;  %v7478_v58 = vld [vmem:[%s10092_s17 + $0xc8] ss:$12 sps:$4 sm:$0xff]  }
 0x8c1   :  { %4708 = vmatprep.mubr.bf16.mxu0 %v7485_v10  ;;  %v7477_v57 = vld [vmem:[%s10092_s17 + $0x20] ss:$12 sps:$4 sm:$0xff]  }
 0x8c2   :  { %v2061_v60 = vmul.f32 1.442695, %v2059_v59  ;;  %v7507_v59 = vld [vmem:[%s10092_s17 + $0x108] ss:$12 sps:$4 sm:$0xff]  }
 0x8c3   :  { %v4153_v61 = vpop.xlane.xlu0 %4152  ;;  %v2058_v62 = vpop.xlane.xlu1 %2057 }
 0x8c4   :  { %7686 = vpow2.f32 %v2061_v60  ;;  %v2060_v63 = vsub.f32 %v2051_v34, %v2058_v62  ;;  %v4157_v0 = vsub.f32 %v4149_v35, %v4153_v61  ;;  %v7457_v34 = vld [vmem:[%s10092_s17 + $0x80] ss:$12 sps:$4 sm:$0xff]   ;;  %v7458_v35 = vld [vmem:[%s10092_s17 + $0x128] ss:$12 sps:$4 sm:$0xff]  }
 0x8c5   :  { %v7515_v60 = vld [vmem:[%s10092_s17 + $0xf4] ss:$12 sps:$4 sm:$0xff]   ;;  %v7494_v62 = vld [vmem:[%s10094_s16 + $0xac] ss:$12 sps:$4 sm:$0xff]  }
 0x8c6   :  { %v2063_v6 = vmul.f32 1.442695, %v2060_v63  ;;  %v4159_v9 = vmul.f32 1.442695, %v4157_v0  ;;  %v7482_v61 = vld [vmem:[%s10092_s17 + $0x8] ss:$12 sps:$4 sm:$0xff]  }
 0x8c7   :  { %v4156_v31 = vpop.xlane.xlu1 %4155  ;;  %v7513_v63 = vld [vmem:[%s10092_s17 + $0xf0] ss:$12 sps:$4 sm:$0xff]  }
 0x8c8   :  { %7688 = vpow2.f32 %v2063_v6  ;;  %v4158_v11 = vsub.f32 %v4150_v39, %v4156_v31  ;;  %v7521_v0 = vld [vmem:[%s10092_s17 + $0xdc] ss:$12 sps:$4 sm:$0xff]  }
 0x8c9   :  { %v7683_v13 = vpop.eup %7682  ;;  %7690 = vpow2.f32 %v4159_v9  ;;  %v7483_v6 = vld [vmem:[%s10093_s2] ss:$8 sps:$4 sm:$0xff]   ;;  %v7527_v9 = vld [vmem:[%s10092_s17 + $0xc4] ss:$12 sps:$4 sm:$0xff]  }
 0x8ca   :  { %v4161_v51 = vmul.f32 1.442695, %v4158_v11  ;;  %v9488_v22 = vmul.f32 %v7683_v13, %v9441_v41  ;;  %v7479_v41 = vld [vmem:[%s10092_s17] ss:$12 sps:$4 sm:$0xff]   ;;  %v7492_v31 = vld [vmem:[%s10094_s16 + $0xa8] ss:$12 sps:$4 sm:$0xff]  }
 0x8cb   :  { %4691 = vmatpush1.bf16.msra.mxu0 %v7479_v41  ;;  %v7498_v11 = vld [vmem:[%s10094_s16 + $0x90] ss:$12 sps:$4 sm:$0xff]   ;;  %v7548_v41 = vld [vmem:[%s10094_s16 + $0x80] ss:$12 sps:$4 sm:$0xff]  }
 0x8cc   :  { %7692 = vpow2.f32 %v4161_v51  ;;  %4692 = vmatprep.subr.bf16.mxu0 %v7488_v7  ;;  %v7506_v13 = vld [vmem:[%s10094_s16 + $0x7c] ss:$12 sps:$4 sm:$0xff]   ;;  %v7512_v51 = vld [vmem:[%s10094_s16 + $0x64] ss:$12 sps:$4 sm:$0xff]  }
 0x8cd   :  { %v7685_v20 = vpop.eup %7684  ;;  %v7522_v7 = vld [vmem:[%s10094_s16 + $0x30] ss:$12 sps:$4 sm:$0xff]  }
 0x8ce   :  { %v9490_v23 = vmul.f32 %v7685_v20, %v7681_v28  ;;  %v7504_v20 = vld [vmem:[%s10094_s16 + $0x78] ss:$12 sps:$4 sm:$0xff]  }
 0x8cf   :  { %4693 = vmatpush2.bf16.msra.mxu0 %v7486_v36  ;;  %v7557_v36 = vld [vmem:[%s10094_s16 + $0x110] ss:$12 sps:$4 sm:$0xff]  }
 0x8d0   :  { %v4203_v37 = vpack.c.bf16 %v9490_v23, %v9488_v22  ;;  %4694 = vmatprep.subr.bf16.mxu0 %v7491_v38  ;;  %v7528_v38 = vld [vmem:[%s10094_s16 + $0x18] ss:$12 sps:$4 sm:$0xff]  }
 0x8d1   :  { %v9506_v29 = vpop.eup %7686 }
 0x8d2   :  { %2067 = vrot.lane.b32.xlu0 %v9506_v29, %s7720_s10  ;;  %6740 = vmatmul.mubr.msk.bf16.vlgmr.msra.gmra.mxu1 %vm2027_vm1, %v4203_v37  ;;  %v7518_v37 = vld [vmem:[%s10094_s16 + $0x4c] ss:$12 sps:$4 sm:$0xff]  }
 0x8d3   :  { %6617 = vmatpush3.bf16.msra.mxu1 %v7447_v24  ;;  %4751 = vmatprep.mubr.bf16.mxu1 %v7485_v10  ;;  %v7538_v24 = vld [vmem:[%s10094_s16 + $0xb0] ss:$12 sps:$4 sm:$0xff]   ;;  %v7552_v10 = vld [vmem:[%s10094_s16 + $0x128] ss:$12 sps:$4 sm:$0xff]  }
 0x8d4   :  { %6618 = vmatprep.subr.bf16.mxu1 %v7448_v27  ;;  %4695 = vmatpush2.bf16.msra.mxu0 %v7489_v18  ;;  %v7543_v27 = vld [vmem:[%s10094_s16 + $0x98] ss:$12 sps:$4 sm:$0xff]  }
 0x8d5   :  { %v9529_v28 = vpop.eup %7688  ;;  %4696 = vmatprep.subr.bf16.mxu0 %v7497_v44  ;;  %v7562_v18 = vld [vmem:[%s10094_s16 + $0xf8] ss:$12 sps:$4 sm:$0xff]   ;;  %v7531_v44 = vld [vmem:[%s10094_s16] ss:$12 sps:$4 sm:$0xff]  }
 0x8d6   :  { %2069 = vrot.lane.b32.xlu1 %v9529_v28, %s7720_s10  ;;  %v9545_v39 = vpop.eup %7690 }
 0x8d7   :  { %6619 = vmatpush3.bf16.msra.mxu1 %v7452_v30  ;;  %v7547_v30 = vld [vmem:[%s10094_s16 + $0x140] ss:$12 sps:$4 sm:$0xff]  }
 0x8d8   :  { %6620 = vmatprep.subr.bf16.mxu1 %v7453_v32  ;;  %4697 = vmatpush2.bf16.msra.mxu0 %v7495_v50  ;;  %v7516_v32 = vld [vmem:[%s10094_s16 + $0x48] ss:$12 sps:$4 sm:$0xff]  }
 0x8d9   :  { %v9561_v21 = vpop.eup %7692  ;;  %4698 = vmatprep.subr.bf16.mxu0 %v7503_v52  ;;  %v7534_v50 = vld [vmem:[%s10094_s16 + $0x168] ss:$12 sps:$4 sm:$0xff]  }
 0x8da   :  { %4165 = vrot.lane.b32.xlu1 %v9545_v39, %s7720_s10  ;;  %v7541_v52 = vld [vmem:[%s10094_s16 + $0x154] ss:$12 sps:$4 sm:$0xff]  }
 0x8db   :  { %6621 = vmatpush3.bf16.msra.mxu1 %v7457_v34  ;;  %v7530_v34 = vld [vmem:[%s10094_s16 + $0x1c] ss:$12 sps:$4 sm:$0xff]  }
 0x8dc   :  { %6622 = vmatprep.subr.bf16.mxu1 %v7458_v35  ;;  %4699 = vmatpush2.bf16.msra.mxu0 %v7501_v55  ;;  %v7553_v35 = vld [vmem:[%s10094_s16 + $0x68] ss:$12 sps:$4 sm:$0xff]  }
 0x8dd   :  { %4700 = vmatprep.subr.bf16.mxu0 %v7509_v56  ;;  %v7546_v55 = vld [vmem:[%s10094_s16 + $0x13c] ss:$12 sps:$4 sm:$0xff]   ;;  %v7568_v56 = vld [vmem:[%s10094_s16 + $0x20] ss:$12 sps:$4 sm:$0xff]  }
 0x8de   :  { %4167 = vrot.lane.b32.xlu1 %v9561_v21, %s7720_s10 }
 0x8df   :  { %6623 = vmatpush3.bf16.msra.mxu1 %v7462_v40  ;;  %v7533_v40 = vld [vmem:[%s10094_s16 + $0x4] ss:$12 sps:$4 sm:$0xff]  }
 0x8e0   :  { %6624 = vmatprep.subr.bf16.mxu1 %v7463_v42  ;;  %4701 = vmatpush2.bf16.msra.mxu0 %v7507_v59  ;;  %v7558_v42 = vld [vmem:[%s10094_s16 + $0x50] ss:$12 sps:$4 sm:$0xff]  }
 0x8e1   :  { %4702 = vmatprep.subr.bf16.mxu0 %v7515_v60  ;;  %v7551_v59 = vld [vmem:[%s10094_s16 + $0x124] ss:$12 sps:$4 sm:$0xff]   ;;  %v7573_v60 = vld [vmem:[%s10094_s16 + $0x8] ss:$12 sps:$4 sm:$0xff]  }
 0x8e3   :  { %6625 = vmatpush3.bf16.msra.mxu1 %v7467_v46  ;;  %v7536_v46 = vld [vmem:[%s10094_s16 + $0x16c] ss:$12 sps:$4 sm:$0xff]  }
 0x8e4   :  { %6626 = vmatprep.subr.bf16.mxu1 %v7468_v48  ;;  %4703 = vmatpush2.bf16.msra.mxu0 %v7513_v63  ;;  %v7563_v48 = vld [vmem:[%s10094_s16 + $0x38] ss:$12 sps:$4 sm:$0xff]   ;;  %v7554_v63 = vld [vmem:[%s10094_s16 + $0x108] ss:$12 sps:$4 sm:$0xff]  }
 0x8e5   :  { %4704 = vmatprep.subr.bf16.mxu0 %v7521_v0  ;;  %v7561_v0 = vld [vmem:[%s10094_s16 + $0xf4] ss:$12 sps:$4 sm:$0xff]  }
 0x8e7   :  { %6627 = vmatpush3.bf16.msra.mxu1 %v7472_v14  ;;  %v7539_v14 = vld [vmem:[%s10094_s16 + $0x150] ss:$12 sps:$4 sm:$0xff]  }
 0x8e8   :  { %6628 = vmatprep.subr.bf16.mxu1 %v7473_v54  ;;  %4705 = vmatpush2.bf16.msra.mxu0 %v7519_v8  ;;  %v7567_v54 = vld [vmem:[%s10094_s16 + $0xe0] ss:$12 sps:$4 sm:$0xff]   ;;  %v7571_v8 = vld [vmem:[%s10094_s16 + $0xc4] ss:$12 sps:$4 sm:$0xff]  }
 0x8e9   :  { %4706 = vmatprep.subr.bf16.mxu0 %v7527_v9  ;;  %v7569_v9 = vld [vmem:[%s10094_s16 + $0xc0] ss:$12 sps:$4 sm:$0xff]  }
 0x8eb   :  { %6629 = vmatpush3.bf16.msra.mxu1 %v7477_v57  ;;  %v7544_v57 = vld [vmem:[%s10094_s16 + $0x138] ss:$12 sps:$4 sm:$0xff]  }
 0x8ec   :  { %6630 = vmatprep.subr.bf16.mxu1 %v7478_v58  ;;  %4707 = vmatpush2.bf16.msra.mxu0 %v7525_v4  ;;  %v7572_v58 = vld [vmem:[%s10094_s16 + $0xc8] ss:$12 sps:$4 sm:$0xff]  }
 0x8ed   :  { %6638 = vmatprep.subr.bf16.mxu0 %v7537_v19 }
 0x8ef   :  { %6631 = vmatpush3.bf16.msra.mxu1 %v7482_v61  ;;  %4709 = vmatmul.mubr.bf16.vlgmr.msra.gmra.mxu0 %v7483_v6  ;;  %v7549_v61 = vld [vmem:[%s10094_s16 + $0x120] ss:$12 sps:$4 sm:$0xff]  }
 0x8f0   :  { %5016 = vmatprep.subr.bf16.mxu1 %v7494_v62  ;;  %6639 = vmatpush3.bf16.msra.mxu0 %v7538_v24  ;;  %v7556_v62 = vld [vmem:[%s10094_s16 + $0x10c] ss:$12 sps:$4 sm:$0xff]  }
 0x8f1   :  { %6640 = vmatprep.subr.bf16.mxu0 %v7542_v26 }
 0x8f2   :  { %4752 = vmatmul.mubr.bf16.vlgmr.msra.gmra.mxu1 %v7483_v6  ;;  %v7559_v6 = vld [vmem:[%s10094_s16 + $0xf0] ss:$12 sps:$4 sm:$0xff]  }
 0x8f3   :  { %5017 = vmatpush1.bf16.msra.mxu1 %v7492_v31  ;;  %v7566_v31 = vld [vmem:[%s10094_s16 + $0xdc] ss:$12 sps:$4 sm:$0xff]  }
 0x8f4   :  { %5018 = vmatprep.subr.bf16.mxu1 %v7500_v33  ;;  %6641 = vmatpush3.bf16.msra.mxu0 %v7543_v27  ;;  %v7564_v33 = vld [vmem:[%s10094_s16 + $0xd8] ss:$12 sps:$4 sm:$0xff]  }
 0x8f5   :  { %6642 = vmatprep.subr.bf16.mxu0 %v7547_v30 }
 0x8f7   :  { %5019 = vmatpush1.bf16.msra.mxu1 %v7498_v11 }
 0x8f8   :  { %5020 = vmatprep.subr.bf16.mxu1 %v7506_v13  ;;  %6643 = vmatpush3.bf16.msra.mxu0 %v7548_v41 }
 0x8f9   :  { %6644 = vmatprep.subr.bf16.mxu0 %v7552_v10 }
 0x8fb   :  { %5021 = vmatpush1.bf16.msra.mxu1 %v7504_v20 }
 0x8fc   :  { %5022 = vmatprep.subr.bf16.mxu1 %v7512_v51  ;;  %6645 = vmatpush3.bf16.msra.mxu0 %v7553_v35  ;;  %v7574_v35 = vld [vmem:[%s10095_s19 + $0x70] ss:$8 sps:$4 sm:$0xff]  }
 0x8fd   :  { %6646 = vmatprep.subr.bf16.mxu0 %v7557_v36  ;;  %v7576_v36 = vld [vmem:[%s10095_s19 + $0x74] ss:$8 sps:$4 sm:$0xff]  }
 0x8ff   :  { %5023 = vmatpush1.bf16.msra.mxu1 %v7510_v25 }
 0x900   :  { %5024 = vmatprep.subr.bf16.mxu1 %v7518_v37  ;;  %6647 = vmatpush3.bf16.msra.mxu0 %v7558_v42  ;;  %v7582_v42 = vld [vmem:[%s10095_s19 + $0x54] ss:$8 sps:$4 sm:$0xff]  }
 0x901   :  { %6648 = vmatprep.subr.bf16.mxu0 %v7562_v18  ;;  %v7580_v18 = vld [vmem:[%s10095_s19 + $0x50] ss:$8 sps:$4 sm:$0xff]  }
 0x903   :  { %5025 = vmatpush1.bf16.msra.mxu1 %v7516_v32 }
 0x904   :  { %5026 = vmatprep.subr.bf16.mxu1 %v7524_v3  ;;  %6649 = vmatpush3.bf16.msra.mxu0 %v7563_v48  ;;  %v7588_v48 = vld [vmem:[%s10095_s19 + $0x34] ss:$8 sps:$4 sm:$0xff]  }
 0x905   :  { %6650 = vmatprep.subr.bf16.mxu0 %v7567_v54  ;;  %v7609_v54 = vld [vmem:[%s10095_s19 + $0x164] ss:$8 sps:$4 sm:$0xff]  }
 0x907   :  { %5027 = vmatpush1.bf16.msra.mxu1 %v7522_v7 }
 0x908   :  { %5028 = vmatprep.subr.bf16.mxu1 %v7530_v34  ;;  %6651 = vmatpush3.bf16.msra.mxu0 %v7568_v56  ;;  %v7591_v56 = vld [vmem:[%s10095_s19 + $0x24] ss:$8 sps:$4 sm:$0xff]  }
 0x909   :  { %6652 = vmatprep.subr.bf16.mxu0 %v7572_v58  ;;  %v7589_v58 = vld [vmem:[%s10095_s19 + $0x20] ss:$8 sps:$4 sm:$0xff]  }
 0x90b   :  { %5029 = vmatpush1.bf16.msra.mxu1 %v7528_v38  ;;  %v7579_v38 = vld [vmem:[%s10095_s19 + $0x64] ss:$8 sps:$4 sm:$0xff]  }
 0x90c   :  { %5030 = vmatprep.subr.bf16.mxu1 %v7533_v40  ;;  %6653 = vmatpush3.bf16.msra.mxu0 %v7573_v60  ;;  %v7577_v40 = vld [vmem:[%s10095_s19 + $0x60] ss:$8 sps:$4 sm:$0xff]   ;;  %v7613_v60 = vld [vmem:[%s10095_s19 + $0x150] ss:$8 sps:$4 sm:$0xff]  }
 0x90d   :  { %5432 = vmatprep.subr.bf16.mxu0 %v7576_v36  ;;  %v7633_v36 = vld [vmem:[%s10095_s19 + $0x124] ss:$8 sps:$4 sm:$0xff]  }
 0x90f   :  { %5031 = vmatpush1.bf16.msra.mxu1 %v7531_v44  ;;  %v7585_v44 = vld [vmem:[%s10095_s19 + $0x44] ss:$8 sps:$4 sm:$0xff]  }
 0x910   :  { %5032 = vmatprep.subr.bf16.mxu1 %v7536_v46  ;;  %v7583_v46 = vld [vmem:[%s10095_s19 + $0x40] ss:$8 sps:$4 sm:$0xff]  }
 0x913   :  { %5033 = vmatpush2.bf16.msra.mxu1 %v7534_v50  ;;  %v7601_v50 = vld [vmem:[%s10095_s19 + $0x170] ss:$8 sps:$4 sm:$0xff]  }
 0x914   :  { %5034 = vmatprep.subr.bf16.mxu1 %v7541_v52  ;;  %v7603_v52 = vld [vmem:[%s10095_s19 + $0x174] ss:$8 sps:$4 sm:$0xff]  }
 0x917   :  { %5035 = vmatpush2.bf16.msra.mxu1 %v7539_v14  ;;  %v7586_v14 = vld [vmem:[%s10095_s19 + $0x30] ss:$8 sps:$4 sm:$0xff]  }
 0x918   :  { %5036 = vmatprep.subr.bf16.mxu1 %v7546_v55  ;;  %v7607_v55 = vld [vmem:[%s10095_s19 + $0x160] ss:$8 sps:$4 sm:$0xff]  }
 0x91b   :  { %5037 = vmatpush2.bf16.msra.mxu1 %v7544_v57  ;;  %v7615_v57 = vld [vmem:[%s10095_s19 + $0x154] ss:$8 sps:$4 sm:$0xff]  }
 0x91c   :  { %5038 = vmatprep.subr.bf16.mxu1 %v7551_v59  ;;  %v7594_v59 = vld [vmem:[%s10095_s19 + $0x14] ss:$8 sps:$4 sm:$0xff]  }
 0x91f   :  { %5039 = vmatpush2.bf16.msra.mxu1 %v7549_v61  ;;  %v7621_v61 = vld [vmem:[%s10095_s19 + $0x144] ss:$8 sps:$4 sm:$0xff]  }
 0x920   :  { %5040 = vmatprep.subr.bf16.mxu1 %v7556_v62  ;;  %v7592_v62 = vld [vmem:[%s10095_s19 + $0x10] ss:$8 sps:$4 sm:$0xff]  }
 0x923   :  { %5041 = vmatpush2.bf16.msra.mxu1 %v7554_v63  ;;  %v7619_v63 = vld [vmem:[%s10095_s19 + $0x140] ss:$8 sps:$4 sm:$0xff]  }
 0x924   :  { %5042 = vmatprep.subr.bf16.mxu1 %v7561_v0  ;;  %v7597_v0 = vld [vmem:[%s10095_s19 + $0x4] ss:$8 sps:$4 sm:$0xff]  }
 0x927   :  { %5043 = vmatpush2.bf16.msra.mxu1 %v7559_v6  ;;  %v7595_v6 = vld [vmem:[%s10095_s19] ss:$8 sps:$4 sm:$0xff]  }
 0x928   :  { %5044 = vmatprep.subr.bf16.mxu1 %v7566_v31  ;;  %v7600_v31 = vld [vmem:[%s10095_s19 + $0xf4] ss:$8 sps:$4 sm:$0xff]  }
 0x92b   :  { %5045 = vmatpush2.bf16.msra.mxu1 %v7564_v33  ;;  %v7598_v33 = vld [vmem:[%s10095_s19 + $0xf0] ss:$8 sps:$4 sm:$0xff]  }
 0x92c   :  { %5046 = vmatprep.subr.bf16.mxu1 %v7571_v8  ;;  %v7606_v8 = vld [vmem:[%s10095_s19 + $0xe4] ss:$8 sps:$4 sm:$0xff]  }
 0x92f   :  { %5047 = vmatpush2.bf16.msra.mxu1 %v7569_v9 }
 0x930   :  { %5475 = vmatprep.subr.bf16.mxu1 %v7603_v52  ;;  %v7642_v52 = vld [vmem:[%s10095_s19 + $0x84] ss:$8 sps:$4 sm:$0xff]  }
 0x944   :  { %v2068_v11 = vpop.permute.xlu0 %2067 }
 0x945   :  { %v2073_v13 = vsel %vm2027_vm1, %v2068_v11, 0.0  ;;  %v7604_v11 = vld [vmem:[%s10095_s19 + $0xe0] ss:$8 sps:$4 sm:$0xff]  }
 0x946   :  { %2074 = vadd.xlane.f32.xlu0 %v2073_v13  ;;  %v7612_v13 = vld [vmem:[%s10095_s19 + $0xd4] ss:$8 sps:$4 sm:$0xff]  }
 0x948   :  { %v2070_v4 = vpop.permute.xlu1 %2069 }
 0x949   :  { %v2076_v19 = vsel %vm2027_vm1, %v2070_v4, 0.0  ;;  %v7610_v4 = vld [vmem:[%s10095_s19 + $0xd0] ss:$8 sps:$4 sm:$0xff]  }
 0x94a   :  { %2077 = vadd.xlane.f32.xlu1 %v2076_v19 }
 0x94c   :  { %v4166_v20 = vpop.permute.xlu1 %4165 }
 0x94d   :  { %v4171_v51 = vsel %vm2027_vm1, %v4166_v20, 0.0  ;;  %v7618_v20 = vld [vmem:[%s10095_s19 + $0xc4] ss:$8 sps:$4 sm:$0xff]  }
 0x94e   :  { %4172 = vadd.xlane.f32.xlu0 %v4171_v51  ;;  %v7616_v51 = vld [vmem:[%s10095_s19 + $0xc0] ss:$8 sps:$4 sm:$0xff]  }
 0x950   :  { %v4168_v24 = vpop.permute.xlu1 %4167 }
 0x951   :  { %v4174_v25 = vsel %vm2027_vm1, %v4168_v24, 0.0 }
 0x952   :  { %4175 = vadd.xlane.f32.xlu0 %v4174_v25  ;;  %v7624_v25 = vld [vmem:[%s10095_s19 + $0xb4] ss:$8 sps:$4 sm:$0xff]  }
 0x992   :  { %v9770_v26 = vpop.f32.mrf.mxu1 }
 0x993   :  { %v4274_v30 = vmul.f32 %v9770_v26, %v9290_v47  ;;  %v4276_v32 = vsub.f32 %v9290_v47, %v9770_v26 }
 0x994   :  { %v6741_v37 = vpop.f32.mrf.mxu1 }
 0x996   :  { %v9772_v27 = vpop.f32.mrf.mxu1 }
 0x997   :  { %v4275_v3 = vmul.f32 %v9772_v27, %v9298_v53  ;;  %v4277_v41 = vsub.f32 %v9298_v53, %v9772_v27 }
 0x998   :  { %v6742_v10 = vpop.f32.mrf.mxu1 }
 0x999   :  { %v4279_v7 = vpack.c.bf16 %v4277_v41, %v4276_v32  ;;  %v4278_v34 = vpack.c.bf16 %v4275_v3, %v4274_v30  ;;  %v7622_v30 = vld [vmem:[%s10095_s19 + $0xb0] ss:$8 sps:$4 sm:$0xff]   ;;  %v7627_v32 = vld [vmem:[%s10095_s19 + $0x134] ss:$8 sps:$4 sm:$0xff]  }
 0x99a   :  { %v7625_v41 = vld [vmem:[%s10095_s19 + $0x130] ss:$8 sps:$4 sm:$0xff]  }
 0x99b   :  { %5048 = vmatprep.mubr.bf16.mxu1 %v4279_v7  ;;  %5091 = vmatprep.mubr.bf16.mxu0 %v4279_v7  ;;  %v7630_v7 = vld [vmem:[%s10095_s19 + $0xa4] ss:$8 sps:$4 sm:$0xff]  }
 0x99c   :  { %5049 = vmatmul.mubr.bf16.vlgmr.msra.gmra.mxu1 %v4278_v34  ;;  %5092 = vmatmul.mubr.bf16.vlgmr.msra.gmra.mxu0 %v4278_v34 }
 0x99d   :  { %5433 = vmatpush1.bf16.msra.mxu0 %v7574_v35  ;;  %5476 = vmatpush1.bf16.msra.mxu1 %v7601_v50  ;;  %v7628_v35 = vld [vmem:[%s10095_s19 + $0xa0] ss:$8 sps:$4 sm:$0xff]  }
 0x99e   :  { %5434 = vmatprep.subr.bf16.mxu0 %v7579_v38  ;;  %5477 = vmatprep.subr.bf16.mxu1 %v7609_v54  ;;  %v7645_v54 = vld [vmem:[%s10095_s19 + $0x104] ss:$8 sps:$4 sm:$0xff]  }
 0x9a1   :  { %5435 = vmatpush1.bf16.msra.mxu0 %v7577_v40  ;;  %5478 = vmatpush1.bf16.msra.mxu1 %v7607_v55 }
 0x9a2   :  { %5436 = vmatprep.subr.bf16.mxu0 %v7582_v42  ;;  %5479 = vmatprep.subr.bf16.mxu1 %v7615_v57  ;;  %v7636_v42 = vld [vmem:[%s10095_s19 + $0x94] ss:$8 sps:$4 sm:$0xff]  }
 0x9a5   :  { %5437 = vmatpush1.bf16.msra.mxu0 %v7580_v18  ;;  %5480 = vmatpush1.bf16.msra.mxu1 %v7613_v60  ;;  %v7634_v18 = vld [vmem:[%s10095_s19 + $0x90] ss:$8 sps:$4 sm:$0xff]  }
 0x9a6   :  { %5438 = vmatprep.subr.bf16.mxu0 %v7585_v44  ;;  %5481 = vmatprep.subr.bf16.mxu1 %v7621_v61  ;;  %v7639_v44 = vld [vmem:[%s10095_s19 + $0x114] ss:$8 sps:$4 sm:$0xff]  }
 0x9a9   :  { %5439 = vmatpush1.bf16.msra.mxu0 %v7583_v46  ;;  %5482 = vmatpush1.bf16.msra.mxu1 %v7619_v63 }
 0x9aa   :  { %5440 = vmatprep.subr.bf16.mxu0 %v7588_v48  ;;  %5483 = vmatprep.subr.bf16.mxu1 %v7627_v32  ;;  %v5100_v32 = vld [vmem:[%s10096_s18] sm:$0x7] }
 0x9ad   :  { %5441 = vmatpush1.bf16.msra.mxu0 %v7586_v14  ;;  %5484 = vmatpush1.bf16.msra.mxu1 %v7625_v41  ;;  %v7640_v14 = vld [vmem:[%s10095_s19 + $0x80] ss:$8 sps:$4 sm:$0xff]  }
 0x9ae   :  { %5442 = vmatprep.subr.bf16.mxu0 %v7591_v56  ;;  %5485 = vmatprep.subr.bf16.mxu1 %v7633_v36  ;;  %v5105_v36 = vrot.slane %v5100_v32, %v8572_v45 }
 0x9b1   :  { %5443 = vmatpush1.bf16.msra.mxu0 %v7589_v58 }
 0x9b2   :  { %5444 = vmatprep.subr.bf16.mxu0 %v7594_v59  ;;  %v7721_v59 = vmov 0  }
 0x9b3   :  { %5507 = vmatprep.mubr.bf16.mxu1 %v7721_v59 }
 0x9b5   :  { %5445 = vmatpush1.bf16.msra.mxu0 %v7592_v62 }
 0x9b6   :  { %5446 = vmatprep.subr.bf16.mxu0 %v7597_v0 }
 0x9b9   :  { %5447 = vmatpush1.bf16.msra.mxu0 %v7595_v6 }
 0x9ba   :  { %5448 = vmatprep.subr.bf16.mxu0 %v7600_v31 }
 0x9bd   :  { %5449 = vmatpush2.bf16.msra.mxu0 %v7598_v33  ;;  %v2165_v33 = vmul.f32 %v8623_v15, %v8623_v15 }
 0x9be   :  { %5450 = vmatprep.subr.bf16.mxu0 %v7606_v8  ;;  %v4254_v8 = vmul.f32 %v9427_v5, %v9427_v5 }
 0x9c1   :  { %5451 = vmatpush2.bf16.msra.mxu0 %v7604_v11  ;;  %v6632_v11 = vpop.f32.mrf.mxu1 }
 0x9c2   :  { %5452 = vmatprep.subr.bf16.mxu0 %v7612_v13  ;;  %v4710_v13 = vpop.f32.mrf.mxu0 }
 0x9c5   :  { %5453 = vmatpush2.bf16.msra.mxu0 %v7610_v4  ;;  %v6633_v4 = vpop.f32.mrf.mxu1 }
 0x9c6   :  { %5454 = vmatprep.subr.bf16.mxu0 %v7618_v20 }
 0x9c7   :  { %v6635_v20 = vpop.f32.mrf.mxu1 }
 0x9c9   :  { %5455 = vmatpush2.bf16.msra.mxu0 %v7616_v51 }
 0x9ca   :  { %5456 = vmatprep.subr.bf16.mxu0 %v7624_v25 }
 0x9cd   :  { %5457 = vmatpush2.bf16.msra.mxu0 %v7622_v30 }
 0x9ce   :  { %5458 = vmatprep.subr.bf16.mxu0 %v7630_v7 }
 0x9cf   :  { %v2075_v9 = vpop.xlane.xlu0 %2074 }
 0x9d0   :  { %7694 = vrcp.f32 %v2075_v9  ;;  %v2159_v9 = vmul.f32 %v9290_v47, %v8623_v15  ;;  %v5109_v15 = vrot.slane %v5100_v32, %v8566_v43 }
 0x9d1   :  { %5459 = vmatpush2.bf16.msra.mxu0 %v7628_v35 }
 0x9d2   :  { %5460 = vmatprep.subr.bf16.mxu0 %v7636_v42 }
 0x9d3   :  { %v2078_v19 = vpop.xlane.xlu1 %2077 }
 0x9d4   :  { %7696 = vrcp.f32 %v2078_v19  ;;  %v4712_v19 = vpop.f32.mrf.mxu0 }
 0x9d5   :  { %5461 = vmatpush2.bf16.msra.mxu0 %v7634_v18  ;;  %v5113_v18 = vrot.slane %v5100_v32, %v8578_v17  ;;  %v7646_v32 = vld [vmem:[%s10097_s21 + $0x78] sm:$0xff]  }
 0x9d6   :  { %5462 = vmatprep.subr.bf16.mxu0 %v7642_v52  ;;  %v4714_v51 = vpop.f32.mrf.mxu0 }
 0x9d7   :  { %v4173_v24 = vpop.xlane.xlu0 %4172 }
 0x9d8   :  { %7698 = vrcp.f32 %v4173_v24  ;;  %v6636_v24 = vpop.f32.mrf.mxu1  ;;  %v4716_v25 = vpop.f32.mrf.mxu0 }
 0x9d9   :  { %5463 = vmatpush2.bf16.msra.mxu0 %v7640_v14  ;;  %v6637_v52 = vadd.f32 %v6636_v24, %v6635_v20  ;;  %v2172_v20 = vmul.f32 %v9298_v53, %v9298_v53 }
 0x9da   :  { %6743 = vmatprep.subr.bf16.mxu0 %v7718_v49 }
 0x9db   :  { %v4176_v37 = vpop.xlane.xlu0 %4175 }
 0x9dc   :  { %7700 = vrcp.f32 %v4176_v37 }
 0x9dd   :  { %v7695_v3 = vpop.eup %7694 }
 0x9de   :  { %v2080_v10 = vmul.f32 %v7695_v3, %v9506_v29  ;;  %v7631_v29 = vld [vmem:[%s10095_s19 + $0x120] ss:$8 sps:$4 sm:$0xff]  }
 0x9df   :  { %5486 = vmatpush1.bf16.msra.mxu1 %v7631_v29 }
 0x9e0   :  { %v2083_v34 = vadd.f32 1e-10, %v2080_v10  ;;  %5487 = vmatprep.subr.bf16.mxu1 %v7639_v44 }
 0x9e1   :  { %v7697_v38 = vpop.eup %7696 }
 0x9e2   :  { %7702 = vlog2.f32 %v2083_v34  ;;  %v2082_v40 = vmul.f32 %v7697_v38, %v9529_v28  ;;  %v7637_v28 = vld [vmem:[%s10095_s19 + $0x110] ss:$8 sps:$4 sm:$0xff]   ;;  %v6634_v34 = vadd.f32 %v6633_v4, %v6632_v11  ;;  %v2171_v4 = vmul.f32 %v9290_v47, %v9290_v47 }
 0x9e3   :  { %5488 = vmatpush1.bf16.msra.mxu1 %v7637_v28 }
 0x9e4   :  { %v2084_v46 = vadd.f32 1e-10, %v2082_v40  ;;  %5489 = vmatprep.subr.bf16.mxu1 %v7645_v54 }
 0x9e5   :  { %v7699_v48 = vpop.eup %7698 }
 0x9e6   :  { %7704 = vlog2.f32 %v2084_v46  ;;  %v4178_v50 = vmul.f32 %v7699_v48, %v9545_v39  ;;  %v7643_v39 = vld [vmem:[%s10095_s19 + $0x100] ss:$8 sps:$4 sm:$0xff]  }
 0x9e7   :  { %5490 = vmatpush1.bf16.msra.mxu1 %v7643_v39 }
 0x9e8   :  { %v4181_v55 = vadd.f32 1e-10, %v4178_v50  ;;  %6660 = vmatprep.subr.bf16.mxu1 %v7646_v32 }
 0x9e9   :  { %v7701_v56 = vpop.eup %7700 }
 0x9ea   :  { %7706 = vlog2.f32 %v4181_v55  ;;  %v4180_v57 = vmul.f32 %v7701_v56, %v9561_v21 }
 0x9ec   :  { %v4182_v58 = vadd.f32 1e-10, %v4180_v57 }
 0x9ee   :  { %7708 = vlog2.f32 %v4182_v58 }
 0x9ef   :  { %v7703_v60 = vpop.eup %7702 }
 0x9f0   :  { %v2086_v61 = vmul.f32 0.6931472, %v7703_v60 }
 0x9f2   :  { %2091 = vrot.lane.b32.xlu0 %v2086_v61, %s7720_s10 }
 0x9f3   :  { %v7705_v62 = vpop.eup %7704 }
 0x9f4   :  { %v2088_v63 = vmul.f32 0.6931472, %v7705_v62 }
 0x9f6   :  { %2093 = vrot.lane.b32.xlu1 %v2088_v63, %s7720_s10 }
 0x9f7   :  { %v7707_v0 = vpop.eup %7706 }
 0x9f8   :  { %v4184_v6 = vmul.f32 0.6931472, %v7707_v0 }
 0x9fa   :  { %4189 = vrot.lane.b32.xlu1 %v4184_v6, %s7720_s10 }
 0x9fb   :  { %v7709_v21 = vpop.eup %7708 }
 0x9fc   :  { %v4186_v31 = vmul.f32 0.6931472, %v7709_v21  ;;  %v2166_v21 = vmul.f32 %v8625_v16, %v8625_v16 }
 0x9fe   :  { %4191 = vrot.lane.b32.xlu1 %v4186_v31, %s7720_s10 }
 0xa22   :  { %2167 = vadd.xlane.f32.xlu1 %v2165_v33 }
 0xa26   :  { %4256 = vadd.xlane.f32.xlu1 %v4254_v8 }
 0xa2a   :  { %2161 = vadd.xlane.f32.xlu1 %v2159_v9 }
 0xa5c   :  { %v5050_v37 = vpop.f32.mrf.mxu1  ;;  %v6654_v30 = vpop.f32.mrf.mxu0 }
 0xa5d   :  { %v5051_v35 = vadd.f32 %v5050_v37, %v4710_v13  ;;  %v2160_v37 = vmul.f32 %v9298_v53, %v8625_v16  ;;  %v7647_v16 = vld [vmem:[%s10097_s21 + $0x38] sm:$0xff]   ;;  %v7648_v53 = vld [vmem:[%s10097_s21 + $0x70] sm:$0xff]  }
 0xa5e   :  { %v5052_v3 = vpop.f32.mrf.mxu1  ;;  %v6655_v41 = vpop.f32.mrf.mxu0 }
 0xa5f   :  { %v5053_v10 = vadd.f32 %v5052_v3, %v4712_v19  ;;  %v6656_v7 = vadd.f32 %v6655_v41, %v6654_v30  ;;  %v5117_v14 = vadd.f32 %v5105_v36, %v5051_v35  ;;  %v4260_v19 = vmul.f32 %v9770_v26, %v9770_v26  ;;  %v7652_v3 = vld [vmem:[%s10097_s21 + $0x60] sm:$0xff]   ;;  %v7658_v35 = vld [vmem:[%s10097_s21 + $0x48] sm:$0xff]  }
 0xa60   :  { %v5054_v29 = vpop.f32.mrf.mxu1  ;;  %v6657_v38 = vpop.f32.mrf.mxu0  ;;  %v4261_v30 = vmul.f32 %v9772_v27, %v9772_v27  ;;  %v7653_v41 = vld [vmem:[%s10097_s21 + $0x20] sm:$0xff]  }
 0xa61   :  { %v5055_v40 = vadd.f32 %v5054_v29, %v4714_v51  ;;  %v5094_v42 = vadd.f32 %v6656_v7, %v6634_v34  ;;  %v5118_v28 = vadd.f32 %v5109_v15, %v5053_v10  ;;  %v5123_v17 = vmax.f32 %v5117_v14, 0.0  ;;  %v7654_v10 = vld [vmem:[%s10097_s21 + $0x58] sm:$0xff]   ;;  %v7656_v7 = vld [vmem:[%s10097_s21 + $0x50] sm:$0xff]   ;;  %v7660_v29 = vld [vmem:[%s10097_s21 + $0x40] sm:$0xff]  }
 0xa62   :  { %v5056_v44 = vpop.f32.mrf.mxu1  ;;  %v6658_v46 = vpop.f32.mrf.mxu0  ;;  %v4248_v51 = vmul.f32 %v9770_v26, %v9427_v5  ;;  %v4249_v5 = vmul.f32 %v9772_v27, %v9429_v12  ;;  %v7651_v27 = vld [vmem:[%s10097_s21 + $0x28] sm:$0xff]   ;;  %v7657_v34 = vld [vmem:[%s10097_s21 + $0x10] sm:$0xff]  }
 0xa63   :  { %v5120_v48 = vadd.f32 %v5105_v36, %v5055_v40  ;;  %v5057_v50 = vadd.f32 %v5056_v44, %v4716_v25  ;;  %v6659_v54 = vadd.f32 %v6658_v46, %v6657_v38  ;;  %v5119_v57 = vadd.f32 %v5113_v18, %v5094_v42  ;;  %v7659_v36 = vld [vmem:[%s10097_s21 + $0x8] sm:$0xff]   ;;  %v7661_v38 = vld [vmem:[%s10097_s21] sm:$0xff]   ;;  %v7662_v40 = vld [vmem:[%s10098_s23 + $0x38] sm:$0xff]  }
 0xa64   :  { %v2092_v55 = vpop.permute.xlu0 %2091  ;;  %v5124_v60 = vmax.f32 %v5118_v28, 0.0  ;;  %v4255_v25 = vmul.f32 %v9429_v12, %v9429_v12  ;;  %v7649_v12 = vld [vmem:[%s10097_s21 + $0x30] sm:$0xff]   ;;  %v7665_v44 = vld [vmem:[%s10098_s23 + $0x20] sm:$0xff]  }
 0xa65   :  { %v5121_v39 = vadd.f32 %v5109_v15, %v5057_v50  ;;  %v2097_v56 = vmul.f32 %v2092_v55, %v8874_v1  ;;  %v5126_v58 = vmax.f32 %v5120_v48, 0.0  ;;  %v5097_v59 = vadd.f32 %v6659_v54, %v6637_v52  ;;  %v7655_v15 = vld [vmem:[%s10097_s21 + $0x18] sm:$0xff]   ;;  %v7663_v42 = vld [vmem:[%s10098_s23 + $0x30] sm:$0xff]   ;;  %v5180_v46 = vld [vmem:[%s10099_s20] sm:$0x3] }
 0xa66   :  { %v5125_v31 = vmax.f32 %v5119_v57, 0.0  ;;  %v5189_v28 = vrot.slane %v5180_v46, %v8566_v43  ;;  %v5185_v48 = vrot.slane %v5180_v46, %v8572_v45 }
 0xa67   :  { %v5127_v61 = vmax.f32 %v5121_v39, 0.0  ;;  %v2099_v62 = vsel %vm2027_vm1, %v2097_v56, 0.0  ;;  %v5122_v63 = vadd.f32 %v5113_v18, %v5097_v59  ;;  %v5129_v33 = vpack.c.bf16 %v5126_v58, %v5123_v17  ;;  %v7664_v18 = vld [vmem:[%s10098_s23 + $0x28] sm:$0xff]  }
 0xa68   :  { %2100 = vadd.xlane.f32.xlu0 %v2099_v62  ;;  %v2094_v0 = vpop.permute.xlu1 %2093 }
 0xa69   :  { %v5130_v6 = vpack.c.bf16 %v5127_v61, %v5124_v60  ;;  %v5128_v8 = vmax.f32 %v5122_v63, 0.0  ;;  %v2098_v1 = vmul.f32 %v2094_v0, %v8877_v2 }
 0xa6b   :  { %5464 = vmatprep.mubr.bf16.mxu0 %v5130_v6  ;;  %v5131_v9 = vpack.c.bf16 %v5128_v8, %v5125_v31  ;;  %v2102_v11 = vsel %vm2027_vm1, %v2098_v1, 0.0  ;;  %v7666_v8 = vld [vmem:[%s10098_s23 + $0x18] sm:$0xff]   ;;  %v7667_v1 = vld [vmem:[%s10098_s23 + $0x10] sm:$0xff]  }
 0xa6c   :  { %2169 = vadd.xlane.f32.xlu0 %v2166_v21  ;;  %5465 = vmatmul.mubr.bf16.vlgmr.msra.gmra.mxu0 %v5129_v33  ;;  %v4190_v13 = vpop.permute.xlu1 %4189 }
 0xa6d   :  { %2103 = vadd.xlane.f32.xlu1 %v2102_v11  ;;  %6759 = vmatprep.mubr.msk.bf16.mxu0 %vm7719_vm0, %v7718_v49  ;;  %v7669_v11 = vld [vmem:[%s10098_s23] sm:$0xff]  }
 0xa6e   :  { %5508 = vmatmul.mubr.bf16.vlgmr.msra.gmra.mxu1 %v5131_v9  ;;  %6744 = vmatpush3.bf16.msra.mxu0 %v7662_v40  ;;  %v7668_v9 = vld [vmem:[%s10098_s23 + $0x8] sm:$0xff]   ;;  %s7722_s23 = smov 4  }
 0xa6f   :  { %6661 = vmatpush3.bf16.msra.mxu1 %v7647_v16  ;;  %6745 = vmatprep.subr.bf16.mxu0 %v7718_v49 }
 0xa70   :  { %2173 = vadd.xlane.f32.xlu0 %v2171_v4  ;;  %v4192_v2 = vpop.permute.xlu1 %4191  ;;  %6662 = vmatprep.subr.bf16.mxu1 %v7648_v53 }
 0xa71   :  { %4262 = vadd.xlane.f32.xlu1 %v4260_v19  ;;  %v4196_v24 = vmul.f32 %v4192_v2, %v9490_v23  ;;  %v4195_v23 = vmul.f32 %v4190_v13, %v9488_v22  ;;  %v7650_v22 = vld [vmem:[%s10097_s21 + $0x68] sm:$0xff]   ;;  %v30_v13 = vstv %s10100_s24 }
 0xa72   :  { %6746 = vmatpush3.bf16.msra.mxu0 %v7663_v42  ;;  %31 = vst [vmem:[#allocation2] sm:$0x1] %v30_v13 }
 0xa73   :  { %v4200_v47 = vsel %vm2027_vm1, %v4196_v24, 0.0  ;;  %v4197_v26 = vsel %vm2027_vm1, %v4195_v23, 0.0  ;;  %6663 = vmatpush3.bf16.msra.mxu1 %v7649_v12  ;;  %6747 = vmatprep.subr.bf16.mxu0 %v7718_v49 }
 0xa74   :  { %2175 = vadd.xlane.f32.xlu0 %v2172_v20  ;;  %6664 = vmatprep.subr.bf16.mxu1 %v7650_v22  ;;  %v6480_v20 = vld [vmem:[%s10101_s22] ss:$0 sm:$0xff] }
 0xa75   :  { %4250 = vadd.xlane.f32.xlu1 %v4248_v51 }
 0xa76   :  { %6748 = vmatpush3.bf16.msra.mxu0 %v7664_v18 }
 0xa77   :  { %6665 = vmatpush3.bf16.msra.mxu1 %v7651_v27  ;;  %6749 = vmatprep.subr.bf16.mxu0 %v7718_v49 }
 0xa78   :  { %4258 = vadd.xlane.f32.xlu0 %v4255_v25  ;;  %6666 = vmatprep.subr.bf16.mxu1 %v7652_v3 }
 0xa79   :  { %4201 = vadd.xlane.f32.xlu1 %v4200_v47  ;;  %v6497_v23 = vld [vmem:[#allocation2] ss:$0 sm:$0xff] }
 0xa7a   :  { %6750 = vmatpush3.bf16.msra.mxu0 %v7665_v44 }
 0xa7b   :  { %6667 = vmatpush3.bf16.msra.mxu1 %v7653_v41  ;;  %6751 = vmatprep.subr.bf16.mxu0 %v7718_v49 }
 0xa7c   :  { %2163 = vadd.xlane.f32.xlu0 %v2160_v37  ;;  %6668 = vmatprep.subr.bf16.mxu1 %v7654_v10 }
 0xa7e   :  { %6752 = vmatpush3.bf16.msra.mxu0 %v7666_v8 }
 0xa7f   :  { %6669 = vmatpush3.bf16.msra.mxu1 %v7655_v15  ;;  %6753 = vmatprep.subr.bf16.mxu0 %v7718_v49 }
 0xa80   :  { %4264 = vadd.xlane.f32.xlu0 %v4261_v30  ;;  %6670 = vmatprep.subr.bf16.mxu1 %v7656_v7 }
 0xa82   :  { %6754 = vmatpush3.bf16.msra.mxu0 %v7667_v1 }
 0xa83   :  { %6671 = vmatpush3.bf16.msra.mxu1 %v7657_v34  ;;  %6755 = vmatprep.subr.bf16.mxu0 %v7718_v49 }
 0xa84   :  { %4252 = vadd.xlane.f32.xlu0 %v4249_v5  ;;  %6672 = vmatprep.subr.bf16.mxu1 %v7658_v35 }
 0xa86   :  { %6756 = vmatpush3.bf16.msra.mxu0 %v7668_v9 }
 0xa87   :  { %6673 = vmatpush3.bf16.msra.mxu1 %v7659_v36  ;;  %6757 = vmatprep.subr.bf16.mxu0 %v7718_v49 }
 0xa88   :  { %4198 = vadd.xlane.f32.xlu0 %v4197_v26  ;;  %6674 = vmatprep.subr.bf16.mxu1 %v7660_v29 }
 0xa8a   :  { %6758 = vmatpush3.bf16.msra.mxu0 %v7669_v11 }
 0xa8b   :  { %6675 = vmatpush3.bf16.msra.mxu1 %v7661_v38 }
 0xaab   :  { %v2168_v41 = vpop.xlane.xlu1 %2167 }
 0xaaf   :  { %v4257_v15 = vpop.xlane.xlu1 %4256 }
 0xab3   :  { %v2162_v34 = vpop.xlane.xlu1 %2161 }
 0xaf1   :  { %v2101_v27 = vpop.xlane.xlu0 %2100 }
 0xaf5   :  { %v2170_v3 = vpop.xlane.xlu0 %2169 }
 0xaf6   :  { %v2104_v36 = vpop.xlane.xlu1 %2103 }
 0xaf9   :  { %v2174_v10 = vpop.xlane.xlu0 %2173 }
 0xafa   :  { %v4263_v38 = vpop.xlane.xlu1 %4262  ;;  %v2177_v40 = vmul.f32 %v2174_v10, %v2168_v41 }
 0xafb   :  { %v4266_v18 = vmul.f32 %v4263_v38, %v4257_v15 }
 0xafc   :  { %v2179_v46 = vmax.f32 %v2177_v40, 1e-16 }
 0xafd   :  { %v2176_v7 = vpop.xlane.xlu0 %2175 }
 0xafe   :  { %7710 = vrsqrt.f32 %v2179_v46 }
 0xb01   :  { %v4259_v35 = vpop.xlane.xlu0 %4258 }
 0xb05   :  { %v2164_v29 = vpop.xlane.xlu0 %2163 }
 0xb09   :  { %v4265_v42 = vpop.xlane.xlu0 %4264 }
 0xb0a   :  { %v4267_v44 = vmul.f32 %v4265_v42, %v4259_v35 }
 0xb2c   :  { %v5466_v50 = vpop.f32.mrf.mxu0 }
 0xb2d   :  { %v5467_v55 = vadd.f32 %v5466_v50, %v5185_v48  ;;  %v4269_v50 = vmax.f32 %v4267_v44, 1e-16 }
 0xb2e   :  { %v5509_v52 = vpop.f32.mrf.mxu1  ;;  %v5468_v14 = vpop.f32.mrf.mxu0 }
 0xb2f   :  { %v5469_v54 = vadd.f32 %v5468_v14, %v5189_v28  ;;  %v5510_v17 = vadd.f32 %v5509_v52, %v5467_v55  ;;  %v7711_v14 = vpop.eup %7710  ;;  %v4253_v55 = vpop.xlane.xlu0 %4252 }
 0xb30   :  { %v5511_v39 = vpop.f32.mrf.mxu1  ;;  %v5470_v56 = vpop.f32.mrf.mxu0 }
 0xb31   :  { %v5471_v57 = vadd.f32 %v5470_v56, %v5185_v48  ;;  %v5512_v60 = vadd.f32 %v5511_v39, %v5469_v54  ;;  %v5518_v45 = vmax.f32 %v5510_v17, 0.0  ;;  %v2178_v48 = vmul.f32 %v2176_v7, %v2170_v3  ;;  %v4251_v56 = vpop.xlane.xlu1 %4250 }
 0xb32   :  { %v5513_v58 = vpop.f32.mrf.mxu1  ;;  %v5472_v59 = vpop.f32.mrf.mxu0 }
 0xb33   :  { %v5514_v61 = vadd.f32 %v5513_v58, %v5471_v57  ;;  %v5473_v62 = vadd.f32 %v5472_v59, %v5189_v28  ;;  %v5519_v43 = vmax.f32 %v5512_v60, 0.0  ;;  %v4268_v28 = vmax.f32 %v4266_v18, 1e-16  ;;  %v4199_v17 = vpop.xlane.xlu0 %4198 }
 0xb34   :  { %v5515_v63 = vpop.f32.mrf.mxu1  ;;  %v2180_v52 = vmax.f32 %v2178_v48, 1e-16  ;;  %v2183_v57 = vmul.f32 %v7711_v14, %v2162_v34 }
 0xb35   :  { %v5516_v0 = vadd.f32 %v5515_v63, %v5473_v62  ;;  %v5520_v6 = vmax.f32 %v5514_v61, 0.0  ;;  %7712 = vrsqrt.f32 %v4268_v28 }
 0xb36   :  { %7714 = vrsqrt.f32 %v4269_v50 }
 0xb37   :  { %v5521_v21 = vmax.f32 %v5516_v0, 0.0  ;;  %v5522_v33 = vpack.c.bf16 %v5520_v6, %v5518_v45  ;;  %7716 = vrsqrt.f32 %v2180_v52  ;;  %v4202_v6 = vpop.xlane.xlu1 %4201 }
 0xb39   :  { %v5523_v31 = vpack.c.bf16 %v5521_v21, %v5519_v43 }
 0xb3b   :  { %5691 = vmatprep.mubr.bf16.mxu1 %v5523_v31 }
 0xb3c   :  { %5692 = vmatmul.mubr.bf16.vlgmr.msra.gmra.mxu1 %v5522_v33 }
 0xb42   :  { %v7713_v54 = vpop.eup %7712 }
 0xb43   :  { %v7715_v39 = vpop.eup %7714  ;;  %v4272_v58 = vmul.f32 %v7713_v54, %v4251_v56 }
 0xb44   :  { %v7717_v59 = vpop.eup %7716  ;;  %v4273_v60 = vmul.f32 %v7715_v39, %v4253_v55 }
 0xb45   :  { %v5824_v61 = vsel %vm5823_vm4, %v2183_v57, %v4272_v58  ;;  %v2184_v62 = vmul.f32 %v7717_v59, %v2164_v29 }
 0xb46   :  { %v5827_v0 = vsel %vm5826_vm5, %v5824_v61, %v2101_v27 }
 0xb47   :  { %v5825_v63 = vsel %vm5823_vm4, %v2184_v62, %v4273_v60  ;;  %v5830_v43 = vsel %vm5829_vm6, %v5827_v0, %v4199_v17 }
 0xb48   :  { %v5828_v31 = vsel %vm5826_vm5, %v5825_v63, %v2104_v36 }
 0xb49   :  { %v5831_v9 = vsel %vm5829_vm6, %v5828_v31, %v4202_v6 }
 0xbfc   :  { %v6676_v4 = vpop.f32.mrf.mxu1 }
 0xbfe   :  { %v6677_v19 = vpop.f32.mrf.mxu1 }
 0xbff   :  { %v6678_v2 = vadd.f32 %v6677_v19, %v6676_v4 }
 0xc00   :  { %v6679_v51 = vpop.f32.mrf.mxu1 }
 0xc01   :  { %v5694_v49 = vadd.f32 %v6678_v2, %v6480_v20 }
 0xc02   :  { %v6680_v24 = vpop.f32.mrf.mxu1 }
 0xc03   :  { %v6681_v25 = vadd.f32 %v6680_v24, %v6679_v51  ;;  %v5700_v37 = vmax.f32 %v5694_v49, 0.0 }
 0xc05   :  { %v5697_v47 = vadd.f32 %v6681_v25, %v6480_v20 }
 0xc07   :  { %v5701_v30 = vmax.f32 %v5697_v47, 0.0 }
 0xc09   :  { %v5702_v5 = vpack.c.bf16 %v5701_v30, %v5700_v37 }
 0xc0b   :  { %6760 = vmatmul.mubr.bf16.vlgmr.msra.gmra.mxu0 %v5702_v5 }
 0xccb   :  { %v5808_v26 = vpop.f32.mrf.mxu0 }
 0xccc   :  { %v5809_v32 = vadd.f32 %v6497_v23, %v5808_v26 }
 0xccd   :  { %v6761_v16 = vpop.f32.mrf.mxu0 }
 0xcce   :  { %5817 = vrot.lane.b32.xlu0 %v5809_v32, %s7722_s23 }
 0xccf   :  { %v5811_v53 = vpop.f32.mrf.mxu0 }
 0xcd0   :  { %v5812_v12 = vadd.f32 %v6497_v23, %v5811_v53 }
 0xcd1   :  { %v6762_v22 = vpop.f32.mrf.mxu0 }
 0xcd2   :  { %5819 = vrot.lane.b32.xlu1 %v5812_v12, %s7722_s23 }
 0xd40   :  { %v5818_v21 = vpop.permute.xlu0 %5817 }
 0xd41   :  { %v5833_v45 = vsel %vm5832_vm7, %v5830_v43, %v5818_v21 }
 0xd42   :  { %v5836_v33 = vsel %vm5835_vm8, %v5833_v45, 0.0 }
 0xd43   :  { %v5839_v8 = vsel %vm5838_vm9, %v5836_v33, 0.0 }
 0xd44   :  { %v5842_v1 = vsel %vm5841_vm10, %v5839_v8, 0.0  ;;  %v5820_v11 = vpop.permute.xlu1 %5819 }
 0xd45   :  { %5845 = vst.msk [vmem:[%s10102_s25] sm:$0xff] %vm5844_vm11, %v5842_v1  ;;  %v5834_v13 = vsel %vm5832_vm7, %v5831_v9, %v5820_v11 }
 0xd46   :  { %v5837_v4 = vsel %vm5835_vm8, %v5834_v13, 0.0 }
 0xd47   :  { %v5840_v19 = vsel %vm5838_vm9, %v5837_v4, 0.0 }
 0xd48   :  { %v5843_v2 = vsel %vm5841_vm10, %v5840_v19, 0.0 }
 0xd49   :  { %5846 = vst.msk [vmem:[%s10102_s25 + $0x8] sm:$0xff] %vm5844_vm11, %v5843_v2 }

</bundles_post_ra>
